<compile_context>
chip_gen: v7x
topology: tpu7x:2x2x1
jax: 0.10.0
libtpu: 0.0.40
codegen_flags: <defaults>
</compile_context>

<pallas_src>
import functools

import jax
import jax.numpy as jnp
from jax.experimental import pallas as pl
from jax.experimental.pallas import tpu as pltpu


def _round_up(x, m):
    return ((x + m - 1) // m) * m


def _tpu_generation():
    try:
        kind = jax.devices()[0].device_kind.lower()
    except Exception:
        return "unknown"
    if ("v5 lite" in kind) or ("v5e" in kind) or ("v5lite" in kind):
        return "v5e"
    if "v6" in kind:
        return "v6e"
    if "7" in kind:
        return "v7x"
    return "unknown"


def _mti_kernel(h_ref, r_ref, a_ref, w_ref, out_ref, xs_ref, *,
                beta, num_heads, head_dim, t_data, fold_scores, score_scale,
                y_dtype):
    """One grid step processes `block_n` destination nodes.

    h_ref, r_ref, a_ref : (Bn, M, D+1) f32 mailboxes (bias column folded in)
    w_ref               : (D+1, T[+H]) fc weight^T + bias row [+ score cols], bf16
    out_ref             : (Bn, T)      f32
    xs_ref              : (2*Bn, M+1, D+1) f32 scratch (relu'd rows, both branches)
    """
    h = h_ref[...]
    r = r_ref[...]
    a = a_ref[...]

    bn, m, d = h.shape
    k = m + 1                                  # K = M edge rows + 1 mean row
    inv_m = 1.0 / m

    # --- message construction (both branches), rows written to VMEM scratch ----
    x1 = h + r                                             # msg  = h_src + r
    x2 = a + r                                             # agg' = agg_src + r
    mean1 = jnp.sum(x1, axis=1, keepdims=True) * inv_m     # (Bn, 1, D+1)
    mean2 = jnp.sum(x2, axis=1, keepdims=True) * inv_m

    xs_ref[:bn, :m, :] = jnp.maximum(x1, 0.0)
    xs_ref[:bn, m:m + 1, :] = jnp.maximum(mean1, 0.0)
    xs_ref[bn:, :m, :] = jnp.maximum(x2, 0.0)
    xs_ref[bn:, m:m + 1, :] = jnp.maximum(mean2, 0.0)

    # --- single flattened fc matmul (MXU, bf16 operands, f32 accumulate) -------
    # Per node the K = M+1 = 8 rows form one (8,128)-padded sublane tile, so the
    # flatten below is layout-trivial.  Bias (and score columns when folded) come
    # out of this same matmul.
    w = w_ref[...]
    rows = 2 * bn * k
    xr = xs_ref[...].reshape(rows, d).astype(w.dtype)
    y = jnp.dot(xr, w, preferred_element_type=jnp.float32)   # (rows, T[+H]) f32

    if fold_scores:
        # Pre-scaled per-head logits read directly from the matmul output.
        s = y[:, t_data:t_data + num_heads].reshape(2 * bn, k, num_heads)
        s = s - jnp.max(s, axis=1, keepdims=True)
        e = jnp.exp(s)
        denom = jnp.sum(e, axis=1, keepdims=True)
        att_all = e * pl.reciprocal(denom, approx=True)       # (2*Bn, K, H) f32
    else:
        att_all = None

    yd = y[:, :t_data].astype(y_dtype).reshape(2 * bn, k, t_data)

    # --- parameter-free multi-head softmax pooling over K, direct output write -
    one_minus_beta = 1.0 - beta
    for hh in range(num_heads):
        p = yd[:, :, hh * head_dim:(hh + 1) * head_dim]        # (2*Bn, K, hd)
        pf = p.astype(jnp.float32)
        if fold_scores:
            a_h = att_all[:, :, hh:hh + 1]                     # (2*Bn, K, 1)
        else:
            sh = jnp.sum(pf, axis=-1, keepdims=True) * score_scale
            sh = sh - jnp.max(sh, axis=1, keepdims=True)
            eh = jnp.exp(sh)
            a_h = eh * pl.reciprocal(jnp.sum(eh, axis=1, keepdims=True),
                                     approx=True)
        pooled = jnp.sum(a_h * pf, axis=1)                     # (2*Bn, hd) f32
        comb = beta * pooled[:bn] + one_minus_beta * pooled[bn:]
        out_ref[:, hh * head_dim:(hh + 1) * head_dim] = comb.astype(out_ref.dtype)


def mti_layer_pallas(h_mail, r_mail, agg_mail, w, b, *,
                     beta, num_heads=5, temperature=1.0,
                     block_n=None, fold_scores=None, y_dtype=None,
                     vmem_limit_bytes=None, ensure_two_steps=None,
                     use_bf16_matmul=True):
    """h_mail, r_mail, agg_mail: (N, M, D); w: (D, T); b: (1, T) -> (N, T)."""
    n, m, d = h_mail.shape
    t = w.shape[1]
    assert t % num_heads == 0
    head_dim = t // num_heads
    score_scale = 1.0 / (float(temperature) * head_dim)

    # --- per-generation defaults (see review feedback) ------------------------
    gen = _tpu_generation()
    if block_n is None:
        block_n = 256 if gen in ("v5e", "v6e") else 128
    if fold_scores is None:
        # Free on v6e/v7x (640 -> 645 stays within 768-lane output padding);
        # would add a 6th 128-lane weight tile on v5e, so keep lane reduction there.
        fold_scores = gen != "v5e"
    if y_dtype is None:
        y_dtype = jnp.float32 if gen == "v5e" else jnp.bfloat16
    if vmem_limit_bytes is None:
        vmem_limit_bytes = (64 * 1024 * 1024 if gen in ("v5e", "v6e")
                            else 40 * 1024 * 1024)
    if ensure_two_steps is None:
        ensure_two_steps = gen == "v7x"          # 2 TensorCores per chip

    # --- bias fold: extra mailbox column so (h+r) and (agg+r) end with 1 -------
    ones_col = jnp.ones((n, m, 1), jnp.float32)
    zeros_col = jnp.zeros((n, m, 1), jnp.float32)
    h_aug = jnp.concatenate([h_mail.astype(jnp.float32), zeros_col], axis=-1)
    a_aug = jnp.concatenate([agg_mail.astype(jnp.float32), zeros_col], axis=-1)
    r_aug = jnp.concatenate([r_mail.astype(jnp.float32), ones_col], axis=-1)
    d_aug = d + 1

    # fc weight^T with bias row; optionally fold per-head score columns.
    w_aug = jnp.concatenate(
        [w.astype(jnp.float32), b.reshape(1, t).astype(jnp.float32)], axis=0)
    if fold_scores:
        w3 = w_aug.reshape(d_aug, num_heads, head_dim)
        w_score = jnp.sum(w3, axis=-1) * score_scale          # (D+1, H)
        w_aug = jnp.concatenate([w_aug, w_score], axis=-1)    # (D+1, T+H)
    t_total = w_aug.shape[1]
    w_in = w_aug.astype(jnp.bfloat16) if use_bf16_matmul else w_aug

    # --- choose block size / pad destination-node count ------------------------
    block_n = max(8, min(block_n, _round_up(n, 8)))
    n_pad = _round_up(n, block_n)
    if ensure_two_steps and (n_pad // block_n) < 2:
        block_n = max(8, _round_up(-(-n // 2), 8))
        n_pad = max(_round_up(n, block_n), 2 * block_n)
    if n_pad != n:
        pad = ((0, n_pad - n), (0, 0), (0, 0))
        h_aug = jnp.pad(h_aug, pad)     # padded nodes: all-zero mailboxes
        r_aug = jnp.pad(r_aug, pad)     # (finite, NaN-free output, sliced off)
        a_aug = jnp.pad(a_aug, pad)

    grid = (n_pad // block_n,)
    mail_spec = pl.BlockSpec((block_n, m, d_aug), lambda i: (i, 0, 0))

    kernel = functools.partial(
        _mti_kernel,
        beta=float(beta),
        num_heads=num_heads,
        head_dim=head_dim,
        t_data=t,
        fold_scores=fold_scores,
        score_scale=score_scale,
        y_dtype=y_dtype,
    )

    out = pl.pallas_call(
        kernel,
        out_shape=jax.ShapeDtypeStruct((n_pad, t), jnp.float32),
        grid_spec=pltpu.PrefetchScalarGridSpec(
            num_scalar_prefetch=0,
            grid=grid,
            in_specs=[
                mail_spec,                                       # h mailbox
                mail_spec,                                       # r mailbox
                mail_spec,                                       # agg mailbox
                pl.BlockSpec((d_aug, t_total), lambda i: (0, 0)),  # fc weight^T (+bias row, +score cols)
            ],
            out_specs=pl.BlockSpec((block_n, t), lambda i: (i, 0)),
            scratch_shapes=[pltpu.VMEM((2 * block_n, m + 1, d_aug), jnp.float32)],
        ),
        compiler_params=pltpu.CompilerParams(
            dimension_semantics=("parallel",),
            vmem_limit_bytes=vmem_limit_bytes,
        ),
    )(h_aug, r_aug, a_aug, w_in)
    return out[:n]


def mti_layer_ref(h_mail, r_mail, agg_mail, w, b, *,
                  beta, num_heads=5, temperature=1.0):
    """Pure-JAX f32 reference with identical semantics."""
    t = w.shape[1]
    head_dim = t // num_heads
    head_id = jnp.arange(t) // head_dim
    head_exp = (head_id[None, :] == jnp.arange(num_heads)[:, None]
                ).astype(jnp.float32)                      # (H, T)
    head_avg = head_exp.T / float(head_dim)                # (T, H)

    def branch(base):
        x = base + r_mail
        y1 = jnp.einsum("nmd,dt->nmt", jnp.maximum(x, 0.0), w) + b[None]
        y2 = jnp.dot(jnp.maximum(jnp.mean(x, axis=1), 0.0), w) + b
        return jnp.concatenate([y1, y2[:, None, :]], axis=1)

    def mha(pred):
        s = jnp.einsum("nkt,th->nkh", pred, head_avg) / temperature
        a = jax.nn.softmax(s, axis=1)
        return jnp.sum(jnp.einsum("nkh,ht->nkt", a, head_exp) * pred, axis=1)

    return beta * mha(branch(h_mail)) + (1.0 - beta) * mha(branch(agg_mail))


if __name__ == "__main__":
    key = jax.random.PRNGKey(0)

    # Module hyperparameters (small synthetic sizes).
    embedding_dim = 32      # D
    num_types = 640         # T (divisible by num_heads=5, lane-aligned heads)
    beta = 0.4
    num_heads = 5           # MHA(5, 1.0)
    temperature = 1.0

    # Synthetic dense-degree graph: N destination nodes, each with M in-edges.
    n_dst = 16
    m_deg = 7
    n_src = 24
    n_edges = n_dst * m_deg

    k1, k2, k3, k4, k5 = jax.random.split(key, 5)
    src_embedding = jax.random.normal(k1, (n_src, embedding_dim), jnp.float32)
    edge_embedding = jax.random.normal(k2, (n_edges, embedding_dim), jnp.float32)
    agg = jax.random.normal(k3, (n_src, embedding_dim), jnp.float32)

    # fc = nn.Linear(embedding_dim, num_types): weight (T, D), bias (T,).
    # Stored transposed as (D, T) for the kernel.
    fc_w = (jax.random.normal(k4, (num_types, embedding_dim), jnp.float32)
            / jnp.sqrt(embedding_dim)).T                   # (D, T)
    fc_b = jax.random.normal(k5, (1, num_types), jnp.float32) * 0.01

    # Glue (plain JAX): build the DGL-style mailboxes by gathering per-edge data
    # grouped by destination node (deterministic edge pattern).
    edge_src = (jnp.arange(n_edges) * 3 + (jnp.arange(n_edges) // m_deg)) % n_src
    h_mail = src_embedding[edge_src].reshape(n_dst, m_deg, embedding_dim)
    agg_mail = agg[edge_src].reshape(n_dst, m_deg, embedding_dim)
    r_mail = edge_embedding.reshape(n_dst, m_deg, embedding_dim)

    out = mti_layer_pallas(h_mail, r_mail, agg_mail, fc_w, fc_b,
                           beta=beta, num_heads=num_heads,
                           temperature=temperature)
    out = jax.block_until_ready(out)

    ref = mti_layer_ref(h_mail, r_mail, agg_mail, fc_w, fc_b,
                        beta=beta, num_heads=num_heads, temperature=temperature)
    assert out.shape == (n_dst, num_types)
    # Tolerance accounts for bf16 MXU operands (incl. folded bias / score cols)
    # and the approx reciprocal in the softmax (reference is pure f32).
    assert jnp.allclose(out, ref, atol=5e-2, rtol=5e-2)
    print("KERNEL_OK")
</pallas_src>

<mosaic_0001>
module attributes {stable_mosaic.version = 11 : i64} {
  func.func @_mti_kernel(%arg0: i32, %arg1: memref<16x7x33xf32, #tpu.memory_space<vmem>>, %arg2: memref<16x7x33xf32, #tpu.memory_space<vmem>>, %arg3: memref<16x7x33xf32, #tpu.memory_space<vmem>>, %arg4: memref<33x645xbf16, #tpu.memory_space<vmem>>, %arg5: memref<16x640xf32, #tpu.memory_space<vmem>>, %arg6: memref<32x8x33xf32, #tpu.memory_space<vmem>>) attributes {dimension_semantics = [#tpu.dimension_semantics<parallel>], iteration_bounds = array<i64: 1>, scalar_prefetch = 0 : i64, scratch_operands = 1 : i64, tpu.core_type = #tpu.core_type<tc>, window_params = [{transform_indices = @transform_0, window_bounds = array<i64: 16, 7, 33>}, {transform_indices = @transform_1, window_bounds = array<i64: 16, 7, 33>}, {transform_indices = @transform_2, window_bounds = array<i64: 16, 7, 33>}, {pipeline_mode = #tpu.pipeline_mode<synchronous>, transform_indices = @transform_3, window_bounds = array<i64: 33, 645>}, {transform_indices = @transform_4, window_bounds = array<i64: 16, 640>}]} {
    %c0 = arith.constant 0 : index
    %c0_0 = arith.constant 0 : index
    %c0_1 = arith.constant 0 : index
    %0 = vector.load %arg1[%c0, %c0_0, %c0_1] : memref<16x7x33xf32, #tpu.memory_space<vmem>>, vector<16x7x33xf32>
    %c0_2 = arith.constant 0 : index
    %c0_3 = arith.constant 0 : index
    %c0_4 = arith.constant 0 : index
    %1 = vector.load %arg2[%c0_2, %c0_3, %c0_4] : memref<16x7x33xf32, #tpu.memory_space<vmem>>, vector<16x7x33xf32>
    %c0_5 = arith.constant 0 : index
    %c0_6 = arith.constant 0 : index
    %c0_7 = arith.constant 0 : index
    %2 = vector.load %arg3[%c0_5, %c0_6, %c0_7] : memref<16x7x33xf32, #tpu.memory_space<vmem>>, vector<16x7x33xf32>
    %3 = arith.addf %0, %1 : vector<16x7x33xf32>
    %4 = arith.addf %2, %1 : vector<16x7x33xf32>
    %cst = arith.constant dense<0.000000e+00> : vector<16x33xf32>
    %5 = vector.multi_reduction <add>, %3, %cst [1] : vector<16x7x33xf32> to vector<16x33xf32>
    %6 = vector.shape_cast %5 : vector<16x33xf32> to vector<16x1x33xf32>
    %cst_8 = arith.constant 0.142857149 : f32
    %7 = vector.broadcast %cst_8 : f32 to vector<16x1x33xf32>
    %8 = arith.mulf %6, %7 : vector<16x1x33xf32>
    %cst_9 = arith.constant dense<0.000000e+00> : vector<16x33xf32>
    %9 = vector.multi_reduction <add>, %4, %cst_9 [1] : vector<16x7x33xf32> to vector<16x33xf32>
    %10 = vector.shape_cast %9 : vector<16x33xf32> to vector<16x1x33xf32>
    %cst_10 = arith.constant 0.142857149 : f32
    %11 = vector.broadcast %cst_10 : f32 to vector<16x1x33xf32>
    %12 = arith.mulf %10, %11 : vector<16x1x33xf32>
    %cst_11 = arith.constant 0.000000e+00 : f32
    %13 = vector.broadcast %cst_11 : f32 to vector<16x7x33xf32>
    %14 = arith.maximumf %3, %13 : vector<16x7x33xf32>
    %c0_12 = arith.constant 0 : index
    %c0_13 = arith.constant 0 : index
    %c0_14 = arith.constant 0 : index
    %15 = vector.load %arg6[%c0_12, %c0_13, %c0_14] : memref<32x8x33xf32, #tpu.memory_space<vmem>>, vector<16x7x33xf32>
    tpu.vector_store %arg6[%c0_12, %c0_13, %c0_14], %14 {strides = array<i32>} : memref<32x8x33xf32, #tpu.memory_space<vmem>>, vector<16x7x33xf32>,
    %cst_15 = arith.constant 0.000000e+00 : f32
    %16 = vector.broadcast %cst_15 : f32 to vector<16x1x33xf32>
    %17 = arith.maximumf %8, %16 : vector<16x1x33xf32>
    %c0_16 = arith.constant 0 : index
    %c7 = arith.constant 7 : index
    %c0_17 = arith.constant 0 : index
    %18 = vector.load %arg6[%c0_16, %c7, %c0_17] : memref<32x8x33xf32, #tpu.memory_space<vmem>>, vector<16x1x33xf32>
    tpu.vector_store %arg6[%c0_16, %c7, %c0_17], %17 {strides = array<i32>} : memref<32x8x33xf32, #tpu.memory_space<vmem>>, vector<16x1x33xf32>,
    %cst_18 = arith.constant 0.000000e+00 : f32
    %19 = vector.broadcast %cst_18 : f32 to vector<16x7x33xf32>
    %20 = arith.maximumf %4, %19 : vector<16x7x33xf32>
    %c16 = arith.constant 16 : index
    %c0_19 = arith.constant 0 : index
    %c0_20 = arith.constant 0 : index
    %21 = vector.load %arg6[%c16, %c0_19, %c0_20] : memref<32x8x33xf32, #tpu.memory_space<vmem>>, vector<16x7x33xf32>
    tpu.vector_store %arg6[%c16, %c0_19, %c0_20], %20 {strides = array<i32>} : memref<32x8x33xf32, #tpu.memory_space<vmem>>, vector<16x7x33xf32>,
    %cst_21 = arith.constant 0.000000e+00 : f32
    %22 = vector.broadcast %cst_21 : f32 to vector<16x1x33xf32>
    %23 = arith.maximumf %12, %22 : vector<16x1x33xf32>
    %c16_22 = arith.constant 16 : index
    %c7_23 = arith.constant 7 : index
    %c0_24 = arith.constant 0 : index
    %24 = vector.load %arg6[%c16_22, %c7_23, %c0_24] : memref<32x8x33xf32, #tpu.memory_space<vmem>>, vector<16x1x33xf32>
    tpu.vector_store %arg6[%c16_22, %c7_23, %c0_24], %23 {strides = array<i32>} : memref<32x8x33xf32, #tpu.memory_space<vmem>>, vector<16x1x33xf32>,
    %c0_25 = arith.constant 0 : index
    %c0_26 = arith.constant 0 : index
    %25 = vector.load %arg4[%c0_25, %c0_26] : memref<33x645xbf16, #tpu.memory_space<vmem>>, vector<33x645xbf16>
    %c0_27 = arith.constant 0 : index
    %c0_28 = arith.constant 0 : index
    %c0_29 = arith.constant 0 : index
    %26 = vector.load %arg6[%c0_27, %c0_28, %c0_29] : memref<32x8x33xf32, #tpu.memory_space<vmem>>, vector<32x8x33xf32>
    %27 = vector.shape_cast %26 : vector<32x8x33xf32> to vector<256x33xf32>
    %28 = arith.truncf %27 : vector<256x33xf32> to vector<256x33xbf16>
    %cst_30 = arith.constant dense<0.000000e+00> : vector<256x645xf32>
    %29 = tpu.matmul %28, %25, %cst_30 {dimension_numbers = #tpu.dot_dimension_numbers<[1], [0], [0], [1], [0, 0, 1, 1], [], []>} : vector<256x33xbf16>, vector<33x645xbf16>, vector<256x645xf32> -> vector<256x645xf32>
    %30 = vector.extract_strided_slice %29 {offsets = [0, 640], sizes = [256, 5], strides = [1, 1]} : vector<256x645xf32> to vector<256x5xf32>
    %31 = vector.shape_cast %30 : vector<256x5xf32> to vector<32x8x5xf32>
    %cst_31 = arith.constant dense<0xFF800000> : vector<32x5xf32>
    %32 = vector.multi_reduction <maximumf>, %31, %cst_31 [1] : vector<32x8x5xf32> to vector<32x5xf32>
    %33 = vector.shape_cast %32 : vector<32x5xf32> to vector<32x1x5xf32>
    %34 = vector.broadcast %33 : vector<32x1x5xf32> to vector<32x8x5xf32>
    %35 = arith.subf %31, %34 : vector<32x8x5xf32>
    %36 = math.exp %35 : vector<32x8x5xf32>
    %cst_32 = arith.constant dense<0.000000e+00> : vector<32x5xf32>
    %37 = vector.multi_reduction <add>, %36, %cst_32 [1] : vector<32x8x5xf32> to vector<32x5xf32>
    %38 = vector.shape_cast %37 : vector<32x5xf32> to vector<32x1x5xf32>
    %39 = tpu.reciprocal %38 {approx = true} : vector<32x1x5xf32> -> vector<32x1x5xf32>
    %40 = vector.broadcast %39 : vector<32x1x5xf32> to vector<32x8x5xf32>
    %41 = arith.mulf %36, %40 : vector<32x8x5xf32>
    %42 = vector.extract_strided_slice %29 {offsets = [0, 0], sizes = [256, 640], strides = [1, 1]} : vector<256x645xf32> to vector<256x640xf32>
    %43 = arith.truncf %42 : vector<256x640xf32> to vector<256x640xbf16>
    %44 = vector.shape_cast %43 : vector<256x640xbf16> to vector<32x8x640xbf16>
    %45 = vector.extract_strided_slice %44 {offsets = [0, 0, 0], sizes = [32, 8, 128], strides = [1, 1, 1]} : vector<32x8x640xbf16> to vector<32x8x128xbf16>
    %46 = arith.extf %45 : vector<32x8x128xbf16> to vector<32x8x128xf32>
    %47 = vector.extract_strided_slice %41 {offsets = [0, 0, 0], sizes = [32, 8, 1], strides = [1, 1, 1]} : vector<32x8x5xf32> to vector<32x8x1xf32>
    %48 = vector.broadcast %47 : vector<32x8x1xf32> to vector<32x8x128xf32>
    %49 = arith.mulf %48, %46 : vector<32x8x128xf32>
    %cst_33 = arith.constant dense<0.000000e+00> : vector<32x128xf32>
    %50 = vector.multi_reduction <add>, %49, %cst_33 [1] : vector<32x8x128xf32> to vector<32x128xf32>
    %51 = vector.extract_strided_slice %50 {offsets = [0, 0], sizes = [16, 128], strides = [1, 1]} : vector<32x128xf32> to vector<16x128xf32>
    %cst_34 = arith.constant 4.000000e-01 : f32
    %52 = vector.broadcast %cst_34 : f32 to vector<16x128xf32>
    %53 = arith.mulf %52, %51 : vector<16x128xf32>
    %54 = vector.extract_strided_slice %50 {offsets = [16, 0], sizes = [16, 128], strides = [1, 1]} : vector<32x128xf32> to vector<16x128xf32>
    %cst_35 = arith.constant 6.000000e-01 : f32
    %55 = vector.broadcast %cst_35 : f32 to vector<16x128xf32>
    %56 = arith.mulf %55, %54 : vector<16x128xf32>
    %57 = arith.addf %53, %56 : vector<16x128xf32>
    %c0_36 = arith.constant 0 : index
    %c0_37 = arith.constant 0 : index
    %58 = vector.load %arg5[%c0_36, %c0_37] : memref<16x640xf32, #tpu.memory_space<vmem>>, vector<16x128xf32>
    tpu.vector_store %arg5[%c0_36, %c0_37], %57 {strides = array<i32>} : memref<16x640xf32, #tpu.memory_space<vmem>>, vector<16x128xf32>,
    %59 = vector.extract_strided_slice %44 {offsets = [0, 0, 128], sizes = [32, 8, 128], strides = [1, 1, 1]} : vector<32x8x640xbf16> to vector<32x8x128xbf16>
    %60 = arith.extf %59 : vector<32x8x128xbf16> to vector<32x8x128xf32>
    %61 = vector.extract_strided_slice %41 {offsets = [0, 0, 1], sizes = [32, 8, 1], strides = [1, 1, 1]} : vector<32x8x5xf32> to vector<32x8x1xf32>
    %62 = vector.broadcast %61 : vector<32x8x1xf32> to vector<32x8x128xf32>
    %63 = arith.mulf %62, %60 : vector<32x8x128xf32>
    %cst_38 = arith.constant dense<0.000000e+00> : vector<32x128xf32>
    %64 = vector.multi_reduction <add>, %63, %cst_38 [1] : vector<32x8x128xf32> to vector<32x128xf32>
    %65 = vector.extract_strided_slice %64 {offsets = [0, 0], sizes = [16, 128], strides = [1, 1]} : vector<32x128xf32> to vector<16x128xf32>
    %cst_39 = arith.constant 4.000000e-01 : f32
    %66 = vector.broadcast %cst_39 : f32 to vector<16x128xf32>
    %67 = arith.mulf %66, %65 : vector<16x128xf32>
    %68 = vector.extract_strided_slice %64 {offsets = [16, 0], sizes = [16, 128], strides = [1, 1]} : vector<32x128xf32> to vector<16x128xf32>
    %cst_40 = arith.constant 6.000000e-01 : f32
    %69 = vector.broadcast %cst_40 : f32 to vector<16x128xf32>
    %70 = arith.mulf %69, %68 : vector<16x128xf32>
    %71 = arith.addf %67, %70 : vector<16x128xf32>
    %c0_41 = arith.constant 0 : index
    %c128 = arith.constant 128 : index
    %72 = vector.load %arg5[%c0_41, %c128] : memref<16x640xf32, #tpu.memory_space<vmem>>, vector<16x128xf32>
    tpu.vector_store %arg5[%c0_41, %c128], %71 {strides = array<i32>} : memref<16x640xf32, #tpu.memory_space<vmem>>, vector<16x128xf32>,
    %73 = vector.extract_strided_slice %44 {offsets = [0, 0, 256], sizes = [32, 8, 128], strides = [1, 1, 1]} : vector<32x8x640xbf16> to vector<32x8x128xbf16>
    %74 = arith.extf %73 : vector<32x8x128xbf16> to vector<32x8x128xf32>
    %75 = vector.extract_strided_slice %41 {offsets = [0, 0, 2], sizes = [32, 8, 1], strides = [1, 1, 1]} : vector<32x8x5xf32> to vector<32x8x1xf32>
    %76 = vector.broadcast %75 : vector<32x8x1xf32> to vector<32x8x128xf32>
    %77 = arith.mulf %76, %74 : vector<32x8x128xf32>
    %cst_42 = arith.constant dense<0.000000e+00> : vector<32x128xf32>
    %78 = vector.multi_reduction <add>, %77, %cst_42 [1] : vector<32x8x128xf32> to vector<32x128xf32>
    %79 = vector.extract_strided_slice %78 {offsets = [0, 0], sizes = [16, 128], strides = [1, 1]} : vector<32x128xf32> to vector<16x128xf32>
    %cst_43 = arith.constant 4.000000e-01 : f32
    %80 = vector.broadcast %cst_43 : f32 to vector<16x128xf32>
    %81 = arith.mulf %80, %79 : vector<16x128xf32>
    %82 = vector.extract_strided_slice %78 {offsets = [16, 0], sizes = [16, 128], strides = [1, 1]} : vector<32x128xf32> to vector<16x128xf32>
    %cst_44 = arith.constant 6.000000e-01 : f32
    %83 = vector.broadcast %cst_44 : f32 to vector<16x128xf32>
    %84 = arith.mulf %83, %82 : vector<16x128xf32>
    %85 = arith.addf %81, %84 : vector<16x128xf32>
    %c0_45 = arith.constant 0 : index
    %c256 = arith.constant 256 : index
    %86 = vector.load %arg5[%c0_45, %c256] : memref<16x640xf32, #tpu.memory_space<vmem>>, vector<16x128xf32>
    tpu.vector_store %arg5[%c0_45, %c256], %85 {strides = array<i32>} : memref<16x640xf32, #tpu.memory_space<vmem>>, vector<16x128xf32>,
    %87 = vector.extract_strided_slice %44 {offsets = [0, 0, 384], sizes = [32, 8, 128], strides = [1, 1, 1]} : vector<32x8x640xbf16> to vector<32x8x128xbf16>
    %88 = arith.extf %87 : vector<32x8x128xbf16> to vector<32x8x128xf32>
    %89 = vector.extract_strided_slice %41 {offsets = [0, 0, 3], sizes = [32, 8, 1], strides = [1, 1, 1]} : vector<32x8x5xf32> to vector<32x8x1xf32>
    %90 = vector.broadcast %89 : vector<32x8x1xf32> to vector<32x8x128xf32>
    %91 = arith.mulf %90, %88 : vector<32x8x128xf32>
    %cst_46 = arith.constant dense<0.000000e+00> : vector<32x128xf32>
    %92 = vector.multi_reduction <add>, %91, %cst_46 [1] : vector<32x8x128xf32> to vector<32x128xf32>
    %93 = vector.extract_strided_slice %92 {offsets = [0, 0], sizes = [16, 128], strides = [1, 1]} : vector<32x128xf32> to vector<16x128xf32>
    %cst_47 = arith.constant 4.000000e-01 : f32
    %94 = vector.broadcast %cst_47 : f32 to vector<16x128xf32>
    %95 = arith.mulf %94, %93 : vector<16x128xf32>
    %96 = vector.extract_strided_slice %92 {offsets = [16, 0], sizes = [16, 128], strides = [1, 1]} : vector<32x128xf32> to vector<16x128xf32>
    %cst_48 = arith.constant 6.000000e-01 : f32
    %97 = vector.broadcast %cst_48 : f32 to vector<16x128xf32>
    %98 = arith.mulf %97, %96 : vector<16x128xf32>
    %99 = arith.addf %95, %98 : vector<16x128xf32>
    %c0_49 = arith.constant 0 : index
    %c384 = arith.constant 384 : index
    %100 = vector.load %arg5[%c0_49, %c384] : memref<16x640xf32, #tpu.memory_space<vmem>>, vector<16x128xf32>
    tpu.vector_store %arg5[%c0_49, %c384], %99 {strides = array<i32>} : memref<16x640xf32, #tpu.memory_space<vmem>>, vector<16x128xf32>,
    %101 = vector.extract_strided_slice %44 {offsets = [0, 0, 512], sizes = [32, 8, 128], strides = [1, 1, 1]} : vector<32x8x640xbf16> to vector<32x8x128xbf16>
    %102 = arith.extf %101 : vector<32x8x128xbf16> to vector<32x8x128xf32>
    %103 = vector.extract_strided_slice %41 {offsets = [0, 0, 4], sizes = [32, 8, 1], strides = [1, 1, 1]} : vector<32x8x5xf32> to vector<32x8x1xf32>
    %104 = vector.broadcast %103 : vector<32x8x1xf32> to vector<32x8x128xf32>
    %105 = arith.mulf %104, %102 : vector<32x8x128xf32>
    %cst_50 = arith.constant dense<0.000000e+00> : vector<32x128xf32>
    %106 = vector.multi_reduction <add>, %105, %cst_50 [1] : vector<32x8x128xf32> to vector<32x128xf32>
    %107 = vector.extract_strided_slice %106 {offsets = [0, 0], sizes = [16, 128], strides = [1, 1]} : vector<32x128xf32> to vector<16x128xf32>
    %cst_51 = arith.constant 4.000000e-01 : f32
    %108 = vector.broadcast %cst_51 : f32 to vector<16x128xf32>
    %109 = arith.mulf %108, %107 : vector<16x128xf32>
    %110 = vector.extract_strided_slice %106 {offsets = [16, 0], sizes = [16, 128], strides = [1, 1]} : vector<32x128xf32> to vector<16x128xf32>
    %cst_52 = arith.constant 6.000000e-01 : f32
    %111 = vector.broadcast %cst_52 : f32 to vector<16x128xf32>
    %112 = arith.mulf %111, %110 : vector<16x128xf32>
    %113 = arith.addf %109, %112 : vector<16x128xf32>
    %c0_53 = arith.constant 0 : index
    %c512 = arith.constant 512 : index
    %114 = vector.load %arg5[%c0_53, %c512] : memref<16x640xf32, #tpu.memory_space<vmem>>, vector<16x128xf32>
    tpu.vector_store %arg5[%c0_53, %c512], %113 {strides = array<i32>} : memref<16x640xf32, #tpu.memory_space<vmem>>, vector<16x128xf32>,
    return
  }
  func.func @transform_0(%arg0: i32) -> (i32, i32, i32) {
    %c0_i32 = arith.constant 0 : i32
    %c0_i32_0 = arith.constant 0 : i32
    %c0_i32_1 = arith.constant 0 : i32
    return %arg0, %c0_i32, %c0_i32_0 : i32, i32, i32
  }
  func.func @transform_1(%arg0: i32) -> (i32, i32, i32) {
    %c0_i32 = arith.constant 0 : i32
    %c0_i32_0 = arith.constant 0 : i32
    %c0_i32_1 = arith.constant 0 : i32
    return %arg0, %c0_i32, %c0_i32_0 : i32, i32, i32
  }
  func.func @transform_2(%arg0: i32) -> (i32, i32, i32) {
    %c0_i32 = arith.constant 0 : i32
    %c0_i32_0 = arith.constant 0 : i32
    %c0_i32_1 = arith.constant 0 : i32
    return %arg0, %c0_i32, %c0_i32_0 : i32, i32, i32
  }
  func.func @transform_3(%arg0: i32) -> (i32, i32) {
    %c0_i32 = arith.constant 0 : i32
    %c0_i32_0 = arith.constant 0 : i32
    %c0_i32_1 = arith.constant 0 : i32
    return %c0_i32, %c0_i32_0 : i32, i32
  }
  func.func @transform_4(%arg0: i32) -> (i32, i32) {
    %c0_i32 = arith.constant 0 : i32
    %c0_i32_0 = arith.constant 0 : i32
    return %arg0, %c0_i32 : i32, i32
  }
}

</mosaic_0001>

<bundles_post_ra>
// kernel: tpu_custom_call.1
= control target key start
LH: loop header
LB: loop body
LE: loop exit
PB: predicated region body
PF: predicated region fallthrough
CT: control target
= control target key end

     0   :  { %vm673_vm0 = vcmask 1040384   ;;  %v8303_v2 = vmov 0   ;;  %vm99_vm1 = vcmask 268288   ;;  %vm404_vm2 = vcmask 262144   ;;  %s8296_s0 = inlined_call_operand.vmem [shape: f32[16,7,33], index: 0, kind: input, shape index: {}]   ;;  %s8297_s1 = inlined_call_operand.vmem [shape: f32[16,7,33], index: 1, kind: input, shape index: {}]   ;;  %s8298_s2 = inlined_call_operand.vmem [shape: f32[16,7,33], index: 2, kind: input, shape index: {}]   ;;  %s8299_s3 = inlined_call_operand.vmem [shape: bf16[33,645], index: 3, kind: input, shape index: {}]   ;;  %s8300_s4 = inlined_call_operand.hbm [shape: f32[16,640], index: 4, kind: output, shape index: {}]  }
   0x1   :  { %v5339_v0 = vld [vmem:[%s8299_s3 + $0x4] ss:$24 sps:$4 sm:$0xff]   ;;  %v5341_v1 = vld [vmem:[%s8299_s3] ss:$24 sps:$4 sm:$0xff]   ;;  %726 = vmatprep.mubr.bf16.mxu0 %v8303_v2  ;;  %806 = vmatprep.mubr.bf16.mxu1 %v8303_v2  ;;  %v5342_v3 = vld [vmem:[%s8299_s3 + $0x34] ss:$24 sps:$4 sm:$0xff]  }
   0x2   :  { %694 = vmatprep.subr.bf16.mxu0 %v5339_v0  ;;  %v498_v4 = vld [vmem:[%s8299_s3 + $0x60] sm:$0x11]  ;;  %v5563_v5 = vsel %vm673_vm0, 65535, %v8303_v2  ;;  %5165 = vmatprep.subr.bf16.mxu1 %v5339_v0  ;;  %v5344_v6 = vld [vmem:[%s8299_s3 + $0x30] ss:$24 sps:$4 sm:$0xff]   ;;  %vm624_vm3 = vcmask 269312  }
   0x3   :  { %695 = vmatpush1.bf16.msra.mxu0 %v5341_v1  ;;  %v4920_v7 = vcombine.high %v498_v4, %v498_v4  ;;  %v4919_v8 = vcombine.low %v498_v4, %v498_v4  ;;  %5168 = vmatpush1.bf16.msra.mxu1 %v5341_v1  ;;  %v19_v9 = vld [vmem:[%s8296_s0] sm:$0x7f]  ;;  %v20_v10 = vld [vmem:[%s8296_s0 + $0x8] sm:$0x7f]  ;;  %v21_v14 = vld [vmem:[%s8296_s0 + $0x10] sm:$0x7f] }
   0x4   :  { %696 = vmatprep.subr.bf16.mxu0 %v5342_v3  ;;  %5166 = vmatprep.subr.bf16.mxu1 %v5342_v3  ;;  %v5578_v12 = vld [vmem:[%s8297_s1] sm:$0x7f]  ;;  %v5583_v13 = vld [vmem:[%s8297_s1 + $0x8] sm:$0x7f]  ;;  %v22_v18 = vld [vmem:[%s8296_s0 + $0x18] sm:$0x7f] }
   0x5   :  { %v680_v11 = vand.u32 %v4920_v7, %v5563_v5  ;;  %5179 = vset.pattern.permute.xlu0 %v8303_v2  ;;  %v5349_v15 = vld [vmem:[%s8299_s3 + $0x14] ss:$24 sps:$4 sm:$0xff]   ;;  %v67_v16 = vadd.f32 %v5578_v12, %v19_v9  ;;  %v68_v17 = vadd.f32 %v5583_v13, %v20_v10  ;;  %v5605_v20 = vld [vmem:[%s8297_s1 + $0x18] sm:$0x7f]  ;;  %v677_v21 = vand.u32 %v4919_v8, %v5563_v5  ;;  %v23_v24 = vld [vmem:[%s8296_s0 + $0x20] sm:$0x7f] }
   0x6   :  { %v5600_v19 = vld [vmem:[%s8297_s1 + $0x10] sm:$0x7f]  ;;  %v70_v23 = vadd.f32 %v5605_v20, %v22_v18  ;;  %v24_v25 = vld [vmem:[%s8296_s0 + $0x28] sm:$0x7f]  ;;  %v5619_v26 = vld [vmem:[%s8297_s1 + $0x20] sm:$0x7f] }
   0x7   :  { %697 = vmatpush1.bf16.msra.mxu0 %v5344_v6  ;;  %v69_v22 = vadd.f32 %v5600_v19, %v21_v14  ;;  %5169 = vmatpush1.bf16.msra.mxu1 %v5344_v6  ;;  %v100_v27 = vsel %vm99_vm1, %v67_v16, 0.0  ;;  %v107_v28 = vsel %vm99_vm1, %v68_v17, 0.0  ;;  %v356_v29 = vmax.f32 %v67_v16, 0.0  ;;  %v5626_v31 = vld [vmem:[%s8297_s1 + $0x28] sm:$0x7f] }
   0x8   :  { %698 = vmatprep.subr.bf16.mxu0 %v680_v11  ;;  %v357_v30 = vmax.f32 %v68_v17, 0.0  ;;  %5167 = vmatprep.subr.bf16.mxu1 %v680_v11  ;;  %v101_v32 = vrot.slane %v100_v27, 4  ;;  %v108_v33 = vrot.slane %v107_v28, 4  ;;  %v121_v35 = vsel %vm99_vm1, %v70_v23, 0.0  ;;  %v25_v46 = vld [vmem:[%s8296_s0 + $0x30] sm:$0x7f] }
   0x9   :  { %v114_v34 = vsel %vm99_vm1, %v69_v22, 0.0  ;;  %372 = vst.msk [vmem:[#allocation2] sm:$0x7f] %vm99_vm1, %v356_v29  ;;  %v122_v37 = vrot.slane %v121_v35, 4  ;;  %v358_v38 = vmax.f32 %v69_v22, 0.0  ;;  %v359_v39 = vmax.f32 %v70_v23, 0.0 }
   0xa   :  { %373 = vst.msk [vmem:[#allocation2 + $0x8] sm:$0x7f] %vm99_vm1, %v357_v30  ;;  %v115_v36 = vrot.slane %v114_v34, 4  ;;  %v102_v40 = vadd.f32 %v101_v32, %v100_v27  ;;  %v109_v41 = vadd.f32 %v108_v33, %v107_v28  ;;  %v71_v42 = vadd.f32 %v5619_v26, %v23_v24  ;;  %v26_v47 = vld [vmem:[%s8296_s0 + $0x38] sm:$0x7f] }
   0xb   :  { %699 = vmatpush1.bf16.msra.mxu0 %v677_v21  ;;  %v72_v43 = vadd.f32 %v5626_v31, %v24_v25  ;;  %v123_v45 = vadd.f32 %v122_v37, %v121_v35  ;;  %374 = vst.msk [vmem:[#allocation2 + $0x10] sm:$0x7f] %vm99_vm1, %v358_v38  ;;  %375 = vst.msk [vmem:[#allocation2 + $0x18] sm:$0x7f] %vm99_vm1, %v359_v39  ;;  %5170 = vmatpush1.bf16.msra.mxu1 %v677_v21  ;;  %v5647_v52 = vld [vmem:[%s8297_s1 + $0x30] sm:$0x7f] }
   0xc   :  { %1080 = vmatprep.subr.bf16.mxu0 %v5349_v15  ;;  %v116_v44 = vadd.f32 %v115_v36, %v114_v34  ;;  %v103_v48 = vrot.slane %v102_v40, 2  ;;  %v110_v49 = vrot.slane %v109_v41, 2  ;;  %v128_v50 = vsel %vm99_vm1, %v71_v42, 0.0  ;;  %v5652_v57 = vld [vmem:[%s8297_s1 + $0x38] sm:$0x7f] }
   0xd   :  { %v135_v51 = vsel %vm99_vm1, %v72_v43, 0.0  ;;  %v124_v54 = vrot.slane %v123_v45, 2  ;;  %v129_v55 = vrot.slane %v128_v50, 4  ;;  %v360_v60 = vmax.f32 %v71_v42, 0.0  ;;  %v27_v29 = vld [vmem:[%s8296_s0 + $0x40] sm:$0x7f] }
   0xe   :  { %v117_v53 = vrot.slane %v116_v44, 2  ;;  %v136_v56 = vrot.slane %v135_v51, 4  ;;  %v104_v58 = vadd.f32 %v103_v48, %v102_v40  ;;  %v111_v59 = vadd.f32 %v110_v49, %v109_v41  ;;  %v28_v30 = vld [vmem:[%s8296_s0 + $0x48] sm:$0x7f]  ;;  %v5669_v32 = vld [vmem:[%s8297_s1 + $0x40] sm:$0x7f] }
   0xf   :  { %v361_v61 = vmax.f32 %v72_v43, 0.0  ;;  %v125_v63 = vadd.f32 %v124_v54, %v123_v45  ;;  %v130_v0 = vadd.f32 %v129_v55, %v128_v50  ;;  %376 = vst.msk [vmem:[#allocation2 + $0x20] sm:$0x7f] %vm99_vm1, %v360_v60  ;;  %v73_v6 = vadd.f32 %v5647_v52, %v25_v46  ;;  %v5674_v33 = vld [vmem:[%s8297_s1 + $0x48] sm:$0x7f] }
  0x10   :  { %v118_v62 = vadd.f32 %v117_v53, %v116_v44  ;;  %v137_v1 = vadd.f32 %v136_v56, %v135_v51  ;;  %v105_v3 = vrot.slane %v104_v58, 1  ;;  %v112_v4 = vrot.slane %v111_v59, 1  ;;  %v29_v42 = vld [vmem:[%s8296_s0 + $0x50] sm:$0x7f]  ;;  %v30_v43 = vld [vmem:[%s8296_s0 + $0x58] sm:$0x7f] }
  0x11   :  { %377 = vst.msk [vmem:[#allocation2 + $0x28] sm:$0x7f] %vm99_vm1, %v361_v61  ;;  %v74_v7 = vadd.f32 %v5652_v57, %v26_v47  ;;  %v126_v9 = vrot.slane %v125_v63, 1  ;;  %v131_v10 = vrot.slane %v130_v0, 2  ;;  %v142_v16 = vsel %vm99_vm1, %v73_v6, 0.0 }
  0x12   :  { %v119_v8 = vrot.slane %v118_v62, 1  ;;  %v138_v11 = vrot.slane %v137_v1, 2  ;;  %v106_v14 = vadd.f32 %v105_v3, %v104_v58  ;;  %v113_v15 = vadd.f32 %v112_v4, %v111_v59  ;;  %v5685_v48 = vld [vmem:[%s8297_s1 + $0x50] sm:$0x7f]  ;;  %v5690_v49 = vld [vmem:[%s8297_s1 + $0x58] sm:$0x7f] }
  0x13   :  { %v149_v17 = vsel %vm99_vm1, %v74_v7, 0.0  ;;  %v127_v21 = vadd.f32 %v126_v9, %v125_v63  ;;  %v132_v22 = vadd.f32 %v131_v10, %v130_v0  ;;  %v143_v27 = vrot.slane %v142_v16, 4  ;;  %v500_v10 = vld [vmem:[%s8299_s3 + $0x70] sm:$0x11] }
  0x14   :  { %v120_v18 = vadd.f32 %v119_v8, %v118_v62  ;;  %v139_v23 = vadd.f32 %v138_v11, %v137_v1  ;;  %v212_v24 = vmul.f32 0.14285715, %v106_v14  ;;  %v213_v25 = vmul.f32 0.14285715, %v113_v15  ;;  %v5347_v11 = vld [vmem:[%s8299_s3 + $0x10] ss:$24 sps:$4 sm:$0xff]  }
  0x15   :  { %v150_v28 = vrot.slane %v149_v17, 4  ;;  %v215_v35 = vmul.f32 0.14285715, %v127_v21  ;;  %v133_v36 = vrot.slane %v132_v22, 1  ;;  %v144_v40 = vadd.f32 %v143_v27, %v142_v16 }
  0x16   :  { %v214_v34 = vmul.f32 0.14285715, %v120_v18  ;;  %v140_v37 = vrot.slane %v139_v23, 1  ;;  %v388_v38 = vmax.f32 %v212_v24, 0.0  ;;  %v389_v39 = vmax.f32 %v213_v25, 0.0 }
  0x17   :  { %v151_v41 = vadd.f32 %v150_v28, %v149_v17  ;;  %v391_v45 = vmax.f32 %v215_v35, 0.0  ;;  %v134_v46 = vadd.f32 %v133_v36, %v132_v22  ;;  %v145_v50 = vrot.slane %v144_v40, 2  ;;  %v5352_v18 = vld [vmem:[%s8299_s3 + $0x44] ss:$24 sps:$4 sm:$0xff]  }
  0x18   :  { %v390_v44 = vmax.f32 %v214_v34, 0.0  ;;  %v141_v47 = vadd.f32 %v140_v37, %v139_v23  ;;  %405 = vst.msk [vmem:[#allocation2 + $0x7] sm:$0x1] %vm404_vm2, %v388_v38  ;;  %406 = vst.msk [vmem:[#allocation2 + $0xf] sm:$0x1] %vm404_vm2, %v389_v39  ;;  %v362_v53 = vmax.f32 %v73_v6, 0.0  ;;  %v75_v58 = vadd.f32 %v5669_v32, %v27_v29 }
  0x19   :  { %v152_v51 = vrot.slane %v151_v41, 2  ;;  %v363_v54 = vmax.f32 %v74_v7, 0.0  ;;  %408 = vst.msk [vmem:[#allocation2 + $0x1f] sm:$0x1] %vm404_vm2, %v391_v45  ;;  %v216_v55 = vmul.f32 0.14285715, %v134_v46  ;;  %v76_v59 = vadd.f32 %v5674_v33, %v28_v30 }
  0x1a   :  { %407 = vst.msk [vmem:[#allocation2 + $0x17] sm:$0x1] %vm404_vm2, %v390_v44  ;;  %v217_v56 = vmul.f32 0.14285715, %v141_v47  ;;  %v146_v60 = vadd.f32 %v145_v50, %v144_v40  ;;  %v77_v62 = vadd.f32 %v5685_v48, %v29_v42  ;;  %v78_v63 = vadd.f32 %v5690_v49, %v30_v43 }
  0x1b   :  { %v153_v61 = vadd.f32 %v152_v51, %v151_v41  ;;  %378 = vst.msk [vmem:[#allocation2 + $0x30] sm:$0x7f] %vm99_vm1, %v362_v53  ;;  %379 = vst.msk [vmem:[#allocation2 + $0x38] sm:$0x7f] %vm99_vm1, %v363_v54  ;;  %v392_v0 = vmax.f32 %v216_v55, 0.0  ;;  %v156_v3 = vsel %vm99_vm1, %v75_v58, 0.0 }
  0x1c   :  { %v393_v1 = vmax.f32 %v217_v56, 0.0  ;;  %v163_v4 = vsel %vm99_vm1, %v76_v59, 0.0  ;;  %v147_v6 = vrot.slane %v146_v60, 1  ;;  %v157_v8 = vrot.slane %v156_v3, 4 }
  0x1d   :  { %v154_v7 = vrot.slane %v153_v61, 1  ;;  %v164_v9 = vrot.slane %v163_v4, 4  ;;  %409 = vst.msk [vmem:[#allocation2 + $0x27] sm:$0x1] %vm404_vm2, %v392_v0  ;;  %v364_v14 = vmax.f32 %v75_v58, 0.0  ;;  %v365_v15 = vmax.f32 %v76_v59, 0.0 }
  0x1e   :  { %410 = vst.msk [vmem:[#allocation2 + $0x2f] sm:$0x1] %vm404_vm2, %v393_v1  ;;  %v170_v16 = vsel %vm99_vm1, %v77_v62, 0.0  ;;  %v177_v17 = vsel %vm99_vm1, %v78_v63, 0.0  ;;  %v148_v21 = vadd.f32 %v147_v6, %v146_v60  ;;  %v158_v23 = vadd.f32 %v157_v8, %v156_v3 }
  0x1f   :  { %v155_v22 = vadd.f32 %v154_v7, %v153_v61  ;;  %v165_v24 = vadd.f32 %v164_v9, %v163_v4 }
  0x20   :  { %9 = vsyncpa [#allocation4], 0  ;;  %v501_v25 = vld [vmem:[#allocation2] sm:$0xff]  ;;  %v502_v27 = vld [vmem:[#allocation2 + $0x8] sm:$0xff]  ;;  %380 = vst.msk [vmem:[#allocation2 + $0x40] sm:$0x7f] %vm99_vm1, %v364_v14  ;;  %v4923_v45 = vcombine.low %v500_v10, %v500_v10  ;;  %v4924_v54 = vcombine.high %v500_v10, %v500_v10 }
  0x21   :  { %381 = vst.msk [vmem:[#allocation2 + $0x48] sm:$0x7f] %vm99_vm1, %v365_v15  ;;  %v171_v28 = vrot.slane %v170_v16, 4  ;;  %v178_v29 = vrot.slane %v177_v17, 4  ;;  %v366_v30 = vmax.f32 %v77_v62, 0.0  ;;  %v367_v34 = vmax.f32 %v78_v63, 0.0 }
  0x22   :  { %v31_v35 = vld [vmem:[%s8296_s0 + $0x60] sm:$0x7f]  ;;  %v32_v36 = vld [vmem:[%s8296_s0 + $0x68] sm:$0x7f]  ;;  %v5725_v37 = vpack.c.bf16 %v502_v27, %v501_v25  ;;  %v503_v38 = vld [vmem:[#allocation2 + $0x10] sm:$0xff]  ;;  %v159_v42 = vrot.slane %v158_v23, 2  ;;  %v692_v62 = vand.u32 %v4924_v54, %v5563_v5  ;;  %v689_v6 = vand.u32 %v4923_v45, %v5563_v5 }
  0x23   :  { %v504_v39 = vld [vmem:[#allocation2 + $0x18] sm:$0xff]  ;;  %v218_v40 = vmul.f32 0.14285715, %v148_v21  ;;  %v219_v41 = vmul.f32 0.14285715, %v155_v22  ;;  %v166_v43 = vrot.slane %v165_v24, 2  ;;  %v172_v44 = vadd.f32 %v171_v28, %v170_v16 }
  0x24   :  { %382 = vst.msk [vmem:[#allocation2 + $0x50] sm:$0x7f] %vm99_vm1, %v366_v30  ;;  %383 = vst.msk [vmem:[#allocation2 + $0x58] sm:$0x7f] %vm99_vm1, %v367_v34  ;;  %v5732_v46 = vld [vmem:[%s8297_s1 + $0x60] sm:$0x7f]  ;;  %4925 = vmatmul.mubr.msk.bf16.vlgmr.msra.gmra.mrb[0].mxu0 %vm624_vm3, %v5725_v37  ;;  %v179_v53 = vadd.f32 %v178_v29, %v177_v17  ;;  %v5742_v55 = vpack.c.bf16 %v504_v39, %v503_v38  ;;  %v160_v58 = vadd.f32 %v159_v42, %v158_v23 }
  0x25   :  { %v5737_v47 = vld [vmem:[%s8297_s1 + $0x68] sm:$0x7f]  ;;  %v394_v50 = vmax.f32 %v218_v40, 0.0  ;;  %v395_v51 = vmax.f32 %v219_v41, 0.0  ;;  %1081 = vmatpush1.bf16.msra.mxu0 %v5347_v11  ;;  %736 = vmatprep.mubr.bf16.mxu0 %v8303_v2  ;;  %v5350_v56 = vld [vmem:[%s8299_s3 + $0x40] ss:$24 sps:$4 sm:$0xff]   ;;  %v167_v59 = vadd.f32 %v166_v43, %v165_v24  ;;  %v79_v63 = vadd.f32 %v5732_v46, %v31_v35 }
  0x26   :  { %v173_v60 = vrot.slane %v172_v44, 2  ;;  %1082 = vmatprep.subr.bf16.mxu0 %v5352_v18  ;;  %v180_v61 = vrot.slane %v179_v53, 2  ;;  %v80_v0 = vadd.f32 %v5737_v47, %v32_v36  ;;  %v161_v1 = vrot.slane %v160_v58, 1  ;;  %v33_v7 = vld [vmem:[%s8296_s0 + $0x70] sm:$0x7f]  ;;  %v505_v29 = vld [vmem:[#allocation2 + $0x20] sm:$0xff] }
  0x27   :  { %411 = vst.msk [vmem:[#allocation2 + $0x37] sm:$0x1] %vm404_vm2, %v394_v50  ;;  %412 = vst.msk [vmem:[#allocation2 + $0x3f] sm:$0x1] %vm404_vm2, %v395_v51  ;;  %v168_v3 = vrot.slane %v167_v59, 1  ;;  %v184_v10 = vsel %vm99_vm1, %v79_v63, 0.0 }
  0x28   :  { %v174_v4 = vadd.f32 %v173_v60, %v172_v44  ;;  %v5759_v8 = vld [vmem:[%s8297_s1 + $0x70] sm:$0x7f]  ;;  %v181_v9 = vadd.f32 %v180_v61, %v179_v53  ;;  %v191_v11 = vsel %vm99_vm1, %v80_v0, 0.0  ;;  %v368_v14 = vmax.f32 %v79_v63, 0.0  ;;  %v34_v21 = vld [vmem:[%s8296_s0 + $0x78] sm:$0x7f] }
  0x29   :  { %1083 = vmatpush1.bf16.msra.mxu0 %v5350_v56  ;;  %v162_v15 = vadd.f32 %v161_v1, %v160_v58  ;;  %v169_v16 = vadd.f32 %v168_v3, %v167_v59  ;;  %v185_v18 = vrot.slane %v184_v10, 4  ;;  %v5769_v22 = vld [vmem:[%s8297_s1 + $0x78] sm:$0x7f]  ;;  %v192_v24 = vrot.slane %v191_v11, 4  ;;  %v51_v28 = vld [vmem:[%s8298_s2] sm:$0x7f] }
  0x2a   :  { %v175_v17 = vrot.slane %v174_v4, 1  ;;  %v182_v23 = vrot.slane %v181_v9, 1  ;;  %1084 = vmatprep.subr.bf16.mxu0 %v692_v62  ;;  %v369_v25 = vmax.f32 %v80_v0, 0.0  ;;  %384 = vst.msk [vmem:[#allocation2 + $0x60] sm:$0x7f] %vm99_vm1, %v368_v14  ;;  %v81_v27 = vadd.f32 %v5759_v8, %v33_v7  ;;  %v506_v30 = vld [vmem:[#allocation2 + $0x28] sm:$0xff] }
  0x2b   :  { %v220_v34 = vmul.f32 0.14285715, %v162_v15  ;;  %v221_v35 = vmul.f32 0.14285715, %v169_v16  ;;  %v186_v38 = vadd.f32 %v185_v18, %v184_v10  ;;  %v193_v40 = vadd.f32 %v192_v24, %v191_v11  ;;  %v52_v58 = vld [vmem:[%s8298_s2 + $0x8] sm:$0x7f] }
  0x2c   :  { %v176_v36 = vadd.f32 %v175_v17, %v174_v4  ;;  %4926 = vmatmul.mubr.msk.bf16.gmra.mrb[4].mxu0 %vm624_vm3, %v5742_v55  ;;  %v183_v39 = vadd.f32 %v182_v23, %v181_v9  ;;  %385 = vst.msk [vmem:[#allocation2 + $0x68] sm:$0x7f] %vm99_vm1, %v369_v25  ;;  %v82_v41 = vadd.f32 %v5769_v22, %v34_v21  ;;  %v198_v42 = vsel %vm99_vm1, %v81_v27, 0.0  ;;  %v53_v9 = vld [vmem:[%s8298_s2 + $0x10] sm:$0x7f] }
  0x2d   :  { %746 = vmatprep.mubr.bf16.mxu0 %v8303_v2  ;;  %v396_v43 = vmax.f32 %v220_v34, 0.0  ;;  %v397_v44 = vmax.f32 %v221_v35, 0.0  ;;  %1085 = vmatpush1.bf16.msra.mxu0 %v689_v6  ;;  %v83_v50 = vadd.f32 %v51_v28, %v5578_v12  ;;  %v5783_v51 = vpack.c.bf16 %v506_v30, %v505_v29  ;;  %v54_v24 = vld [vmem:[%s8298_s2 + $0x18] sm:$0x7f]  ;;  %v55_v30 = vld [vmem:[%s8298_s2 + $0x20] sm:$0x7f] }
  0x2e   :  { %v222_v45 = vmul.f32 0.14285715, %v176_v36  ;;  %v223_v53 = vmul.f32 0.14285715, %v183_v39  ;;  %v187_v54 = vrot.slane %v186_v38, 2  ;;  %v194_v56 = vrot.slane %v193_v40, 2 }
  0x2f   :  { %413 = vst.msk [vmem:[#allocation2 + $0x47] sm:$0x1] %vm404_vm2, %v396_v43  ;;  %414 = vst.msk [vmem:[#allocation2 + $0x4f] sm:$0x1] %vm404_vm2, %v397_v44  ;;  %v199_v60 = vrot.slane %v198_v42, 4  ;;  %v205_v61 = vsel %vm99_vm1, %v82_v41, 0.0  ;;  %v84_v6 = vadd.f32 %v52_v58, %v5583_v13 }
  0x30   :  { %v398_v59 = vmax.f32 %v222_v45, 0.0  ;;  %v370_v62 = vmax.f32 %v81_v27, 0.0  ;;  %v399_v63 = vmax.f32 %v223_v53, 0.0  ;;  %v188_v12 = vadd.f32 %v187_v54, %v186_v38  ;;  %v507_v10 = vld [vmem:[#allocation2 + $0x30] sm:$0xff]  ;;  %v508_v11 = vld [vmem:[#allocation2 + $0x38] sm:$0xff] }
  0x31   :  { %v195_v0 = vadd.f32 %v194_v56, %v193_v40  ;;  %v206_v1 = vrot.slane %v205_v61, 4  ;;  %v200_v3 = vadd.f32 %v199_v60, %v198_v42  ;;  %v371_v4 = vmax.f32 %v82_v41, 0.0 }
  0x32   :  { %415 = vst.msk [vmem:[#allocation2 + $0x57] sm:$0x1] %vm404_vm2, %v398_v59  ;;  %v228_v7 = vsel %vm99_vm1, %v83_v50, 0.0  ;;  %416 = vst.msk [vmem:[#allocation2 + $0x5f] sm:$0x1] %vm404_vm2, %v399_v63  ;;  %v189_v14 = vrot.slane %v188_v12, 1  ;;  %v5810_v34 = vpack.c.bf16 %v508_v11, %v507_v10  ;;  %v85_v38 = vadd.f32 %v53_v9, %v5600_v19 }
  0x33   :  { %386 = vst.msk [vmem:[#allocation2 + $0x70] sm:$0x7f] %vm99_vm1, %v370_v62  ;;  %v196_v15 = vrot.slane %v195_v0, 1  ;;  %v207_v16 = vadd.f32 %v206_v1, %v205_v61  ;;  %v229_v17 = vrot.slane %v228_v7, 4  ;;  %v201_v18 = vrot.slane %v200_v3, 2 }
  0x34   :  { %387 = vst.msk [vmem:[#allocation2 + $0x78] sm:$0x7f] %vm99_vm1, %v371_v4  ;;  %v235_v21 = vsel %vm99_vm1, %v84_v6, 0.0  ;;  %v421_v13 = vmax.f32 %v83_v50, 0.0  ;;  %v422_v23 = vmax.f32 %v84_v6, 0.0  ;;  %4927 = vmatmul.mubr.msk.bf16.gmra.mrb[8].mxu0 %vm624_vm3, %v5783_v51  ;;  %v190_v25 = vadd.f32 %v189_v14, %v188_v12 }
  0x35   :  { %v197_v27 = vadd.f32 %v196_v15, %v195_v0  ;;  %v208_v28 = vrot.slane %v207_v16, 2  ;;  %v230_v29 = vadd.f32 %v229_v17, %v228_v7  ;;  %756 = vmatprep.mubr.bf16.mxu0 %v8303_v2  ;;  %v202_v35 = vadd.f32 %v201_v18, %v200_v3 }
  0x36   :  { %v236_v36 = vrot.slane %v235_v21, 4  ;;  %438 = vst.msk [vmem:[#allocation2 + $0x80] sm:$0x7f] %vm99_vm1, %v421_v13  ;;  %439 = vst.msk [vmem:[#allocation2 + $0x88] sm:$0x7f] %vm99_vm1, %v422_v23  ;;  %v86_v42 = vadd.f32 %v54_v24, %v5605_v20  ;;  %v509_v43 = vld [vmem:[#allocation2 + $0x40] sm:$0xff]  ;;  %v87_v54 = vadd.f32 %v55_v30, %v5619_v26 }
  0x37   :  { %v224_v39 = vmul.f32 0.14285715, %v190_v25  ;;  %v225_v40 = vmul.f32 0.14285715, %v197_v27  ;;  %v209_v41 = vadd.f32 %v208_v28, %v207_v16  ;;  %v510_v44 = vld [vmem:[#allocation2 + $0x48] sm:$0xff]  ;;  %v203_v45 = vrot.slane %v202_v35, 1 }
  0x38   :  { %v231_v50 = vrot.slane %v230_v29, 2  ;;  %v237_v53 = vadd.f32 %v236_v36, %v235_v21  ;;  %v242_v60 = vsel %vm99_vm1, %v85_v38, 0.0  ;;  %v56_v20 = vld [vmem:[%s8298_s2 + $0x28] sm:$0x7f]  ;;  %v5821_v12 = vpack.c.bf16 %v510_v44, %v509_v43 }
  0x39   :  { %v400_v56 = vmax.f32 %v224_v39, 0.0  ;;  %v401_v58 = vmax.f32 %v225_v40, 0.0  ;;  %v210_v59 = vrot.slane %v209_v41, 1  ;;  %v204_v61 = vadd.f32 %v203_v45, %v202_v35  ;;  %v58_v39 = vld [vmem:[%s8298_s2 + $0x38] sm:$0x7f] }
  0x3a   :  { %v232_v62 = vadd.f32 %v231_v50, %v230_v29  ;;  %v238_v19 = vrot.slane %v237_v53, 2  ;;  %v243_v63 = vrot.slane %v242_v60, 4  ;;  %v249_v0 = vsel %vm99_vm1, %v86_v42, 0.0  ;;  %v57_v29 = vld [vmem:[%s8298_s2 + $0x30] sm:$0x7f] }
  0x3b   :  { %417 = vst.msk [vmem:[#allocation2 + $0x67] sm:$0x1] %vm404_vm2, %v400_v56  ;;  %418 = vst.msk [vmem:[#allocation2 + $0x6f] sm:$0x1] %vm404_vm2, %v401_v58  ;;  %v211_v26 = vadd.f32 %v210_v59, %v209_v41  ;;  %v423_v1 = vmax.f32 %v85_v38, 0.0  ;;  %v250_v10 = vrot.slane %v249_v0, 4  ;;  %v88_v14 = vadd.f32 %v56_v20, %v5626_v31 }
  0x3c   :  { %v226_v3 = vmul.f32 0.14285715, %v204_v61  ;;  %v233_v4 = vrot.slane %v232_v62, 1  ;;  %v239_v6 = vadd.f32 %v238_v19, %v237_v53  ;;  %v244_v7 = vadd.f32 %v243_v63, %v242_v60  ;;  %4928 = vmatmul.mubr.msk.bf16.gmra.mrb[12].mxu0 %vm624_vm3, %v5810_v34  ;;  %v59_v19 = vld [vmem:[%s8298_s2 + $0x40] sm:$0x7f]  ;;  %v512_v63 = vld [vmem:[#allocation2 + $0x58] sm:$0xff] }
  0x3d   :  { %v227_v9 = vmul.f32 0.14285715, %v211_v26  ;;  %v424_v11 = vmax.f32 %v86_v42, 0.0  ;;  %440 = vst.msk [vmem:[#allocation2 + $0x90] sm:$0x7f] %vm99_vm1, %v423_v1  ;;  %766 = vmatprep.mubr.bf16.mxu0 %v8303_v2  ;;  %v251_v13 = vadd.f32 %v250_v10, %v249_v0  ;;  %v256_v23 = vsel %vm99_vm1, %v87_v54, 0.0 }
  0x3e   :  { %v402_v15 = vmax.f32 %v226_v3, 0.0  ;;  %v234_v16 = vadd.f32 %v233_v4, %v232_v62  ;;  %v240_v17 = vrot.slane %v239_v6, 1  ;;  %v245_v18 = vrot.slane %v244_v7, 2 }
  0x3f   :  { %v403_v21 = vmax.f32 %v227_v9, 0.0  ;;  %441 = vst.msk [vmem:[#allocation2 + $0x98] sm:$0x7f] %vm99_vm1, %v424_v11  ;;  %v263_v24 = vsel %vm99_vm1, %v88_v14, 0.0  ;;  %v257_v31 = vrot.slane %v256_v23, 4  ;;  %v252_v30 = vrot.slane %v251_v13, 2 }
  0x40   :  { %419 = vst.msk [vmem:[#allocation2 + $0x77] sm:$0x1] %vm404_vm2, %v402_v15  ;;  %v241_v25 = vadd.f32 %v240_v17, %v239_v6  ;;  %v340_v27 = vmul.f32 0.14285715, %v234_v16  ;;  %v246_v28 = vadd.f32 %v245_v18, %v244_v7  ;;  %v264_v35 = vrot.slane %v263_v24, 4 }
  0x41   :  { %420 = vst.msk [vmem:[#allocation2 + $0x7f] sm:$0x1] %vm404_vm2, %v403_v21  ;;  %v425_v36 = vmax.f32 %v87_v54, 0.0  ;;  %v426_v38 = vmax.f32 %v88_v14, 0.0  ;;  %v258_v43 = vadd.f32 %v257_v31, %v256_v23  ;;  %v253_v44 = vadd.f32 %v252_v30, %v251_v13  ;;  %v60_v7 = vld [vmem:[%s8298_s2 + $0x48] sm:$0x7f] }
  0x42   :  { %v341_v40 = vmul.f32 0.14285715, %v241_v25  ;;  %v454_v41 = vmax.f32 %v340_v27, 0.0  ;;  %v247_v42 = vrot.slane %v246_v28, 1  ;;  %v265_v45 = vadd.f32 %v264_v35, %v263_v24 }
  0x43   :  { %442 = vst.msk [vmem:[#allocation2 + $0xa0] sm:$0x7f] %vm99_vm1, %v425_v36  ;;  %443 = vst.msk [vmem:[#allocation2 + $0xa8] sm:$0x7f] %vm99_vm1, %v426_v38  ;;  %v89_v50 = vadd.f32 %v57_v29, %v5647_v52  ;;  %v259_v56 = vrot.slane %v258_v43, 2  ;;  %v90_v58 = vadd.f32 %v58_v39, %v5652_v57  ;;  %v254_v59 = vrot.slane %v253_v44, 1 }
  0x44   :  { %v455_v53 = vmax.f32 %v341_v40, 0.0  ;;  %470 = vst.msk [vmem:[#allocation2 + $0x87] sm:$0x1] %vm404_vm2, %v454_v41  ;;  %v248_v54 = vadd.f32 %v247_v42, %v246_v28  ;;  %4929 = vmatmul.mubr.msk.bf16.gmra.mrb[16].mxu0 %vm624_vm3, %v5821_v12  ;;  %v266_v60 = vrot.slane %v265_v45, 2  ;;  %v511_v52 = vld [vmem:[#allocation2 + $0x50] sm:$0xff]  ;;  %v91_v14 = vadd.f32 %v59_v19, %v5669_v32  ;;  %v513_v42 = vld [vmem:[#allocation2 + $0x60] sm:$0xff] }
  0x45   :  { %v270_v61 = vsel %vm99_vm1, %v89_v50, 0.0  ;;  %v427_v62 = vmax.f32 %v89_v50, 0.0  ;;  %776 = vmatprep.mubr.bf16.mxu0 %v8303_v2  ;;  %v260_v57 = vadd.f32 %v259_v56, %v258_v43  ;;  %v277_v0 = vsel %vm99_vm1, %v90_v58, 0.0  ;;  %v514_v43 = vld [vmem:[#allocation2 + $0x68] sm:$0xff] }
  0x46   :  { %471 = vst.msk [vmem:[#allocation2 + $0x8f] sm:$0x1] %vm404_vm2, %v455_v53  ;;  %v342_v20 = vmul.f32 0.14285715, %v248_v54  ;;  %v271_v26 = vrot.slane %v270_v61, 4  ;;  %v255_v1 = vadd.f32 %v254_v59, %v253_v44  ;;  %v267_v3 = vadd.f32 %v266_v60, %v265_v45 }
  0x47   :  { %v278_v4 = vrot.slane %v277_v0, 4  ;;  %v428_v6 = vmax.f32 %v90_v58, 0.0  ;;  %444 = vst.msk [vmem:[#allocation2 + $0xb0] sm:$0x7f] %vm99_vm1, %v427_v62  ;;  %v261_v10 = vrot.slane %v260_v57, 1  ;;  %v5861_v15 = vpack.c.bf16 %v512_v63, %v511_v52 }
  0x48   :  { %v456_v9 = vmax.f32 %v342_v20, 0.0  ;;  %v272_v11 = vadd.f32 %v271_v26, %v270_v61  ;;  %v343_v16 = vmul.f32 0.14285715, %v255_v1  ;;  %v268_v17 = vrot.slane %v267_v3, 1 }
  0x49   :  { %v279_v18 = vadd.f32 %v278_v4, %v277_v0  ;;  %445 = vst.msk [vmem:[#allocation2 + $0xb8] sm:$0x7f] %vm99_vm1, %v428_v6  ;;  %v262_v21 = vadd.f32 %v261_v10, %v260_v57  ;;  %v92_v23 = vadd.f32 %v60_v7, %v5674_v33  ;;  %v284_v24 = vsel %vm99_vm1, %v91_v14, 0.0  ;;  %v515_v10 = vld [vmem:[#allocation2 + $0x70] sm:$0xff] }
  0x4a   :  { %472 = vst.msk [vmem:[#allocation2 + $0x97] sm:$0x1] %vm404_vm2, %v456_v9  ;;  %v273_v13 = vrot.slane %v272_v11, 2  ;;  %v457_v27 = vmax.f32 %v343_v16, 0.0  ;;  %v269_v28 = vadd.f32 %v268_v17, %v267_v3  ;;  %v285_v32 = vrot.slane %v284_v24, 4 }
  0x4b   :  { %v517_v25 = vld [vmem:[#allocation2 + $0x80] sm:$0xff]  ;;  %v280_v31 = vrot.slane %v279_v18, 2  ;;  %v344_v29 = vmul.f32 0.14285715, %v262_v21  ;;  %v291_v35 = vsel %vm99_vm1, %v92_v23, 0.0  ;;  %v429_v36 = vmax.f32 %v91_v14, 0.0 }
  0x4c   :  { %v274_v30 = vadd.f32 %v273_v13, %v272_v11  ;;  %4930 = vmatmul.mubr.msk.bf16.gmra.mrb[20].mxu0 %vm624_vm3, %v5861_v15  ;;  %473 = vst.msk [vmem:[#allocation2 + $0x9f] sm:$0x1] %vm404_vm2, %v457_v27  ;;  %v345_v39 = vmul.f32 0.14285715, %v269_v28  ;;  %v286_v40 = vadd.f32 %v285_v32, %v284_v24  ;;  %v292_v41 = vrot.slane %v291_v35, 4  ;;  %v516_v11 = vld [vmem:[#allocation2 + $0x78] sm:$0xff] }
  0x4d   :  { %v518_v38 = vld [vmem:[#allocation2 + $0x88] sm:$0xff]  ;;  %v281_v33 = vadd.f32 %v280_v31, %v279_v18  ;;  %786 = vmatprep.mubr.bf16.mxu0 %v8303_v2  ;;  %v458_v45 = vmax.f32 %v344_v29, 0.0  ;;  %v430_v53 = vmax.f32 %v92_v23, 0.0  ;;  %446 = vst.msk [vmem:[#allocation2 + $0xc0] sm:$0x7f] %vm99_vm1, %v429_v36  ;;  %v5879_v61 = vpack.c.bf16 %v514_v43, %v513_v42 }
  0x4e   :  { %v5872_v44 = vpack.c.bf16 %v518_v38, %v517_v25  ;;  %v275_v50 = vrot.slane %v274_v30, 1  ;;  %v459_v54 = vmax.f32 %v345_v39, 0.0  ;;  %v287_v58 = vrot.slane %v286_v40, 2  ;;  %v61_v31 = vld [vmem:[%s8298_s2 + $0x50] sm:$0x7f] }
  0x4f   :  { %v282_v56 = vrot.slane %v281_v33, 1  ;;  %v293_v59 = vadd.f32 %v292_v41, %v291_v35  ;;  %474 = vst.msk [vmem:[#allocation2 + $0xa7] sm:$0x1] %vm404_vm2, %v458_v45  ;;  %v5892_v17 = vpack.c.bf16 %v516_v11, %v515_v10  ;;  %v62_v32 = vld [vmem:[%s8298_s2 + $0x58] sm:$0x7f]  ;;  %v93_v29 = vadd.f32 %v61_v31, %v5685_v48 }
  0x50   :  { %4933 = vmatmul.mubr.msk.bf16.vlgmr.msra.gmra.mrb[0].mxu1 %vm624_vm3, %v5872_v44  ;;  %v276_v60 = vadd.f32 %v275_v50, %v274_v30  ;;  %447 = vst.msk [vmem:[#allocation2 + $0xc8] sm:$0x7f] %vm99_vm1, %v430_v53  ;;  %v288_v19 = vadd.f32 %v287_v58, %v286_v40  ;;  %v94_v30 = vadd.f32 %v62_v32, %v5690_v49  ;;  %v63_v45 = vld [vmem:[%s8298_s2 + $0x60] sm:$0x7f]  ;;  %v64_v50 = vld [vmem:[%s8298_s2 + $0x68] sm:$0x7f] }
  0x51   :  { %816 = vmatprep.mubr.bf16.mxu1 %v8303_v2  ;;  %475 = vst.msk [vmem:[#allocation2 + $0xaf] sm:$0x1] %vm404_vm2, %v459_v54  ;;  %v283_v62 = vadd.f32 %v282_v56, %v281_v33  ;;  %v294_v52 = vrot.slane %v293_v59, 2  ;;  %v519_v63 = vld [vmem:[#allocation2 + $0x90] sm:$0xff]  ;;  %v298_v36 = vsel %vm99_vm1, %v93_v29, 0.0  ;;  %v95_v53 = vadd.f32 %v63_v45, %v5732_v46 }
  0x52   :  { %v346_v20 = vmul.f32 0.14285715, %v276_v60  ;;  %v289_v26 = vrot.slane %v288_v19, 1  ;;  %v305_v38 = vsel %vm99_vm1, %v94_v30, 0.0  ;;  %v299_v39 = vrot.slane %v298_v36, 4 }
  0x53   :  { %v347_v57 = vmul.f32 0.14285715, %v283_v62  ;;  %v295_v0 = vadd.f32 %v294_v52, %v293_v59  ;;  %v520_v1 = vld [vmem:[#allocation2 + $0x98] sm:$0xff]  ;;  %v306_v33 = vrot.slane %v305_v38, 4  ;;  %v96_v54 = vadd.f32 %v64_v50, %v5737_v47 }
  0x54   :  { %v460_v3 = vmax.f32 %v346_v20, 0.0  ;;  %4931 = vmatmul.mubr.msk.bf16.gmra.mrb[24].mxu0 %vm624_vm3, %v5879_v61  ;;  %v5885_v4 = vpack.c.bf16 %v520_v1, %v519_v63  ;;  %v290_v7 = vadd.f32 %v289_v26, %v288_v19  ;;  %v300_v40 = vadd.f32 %v299_v39, %v298_v36 }
  0x55   :  { %v461_v6 = vmax.f32 %v347_v57, 0.0  ;;  %v296_v9 = vrot.slane %v295_v0, 1  ;;  %796 = vmatprep.mubr.bf16.mxu0 %v8303_v2  ;;  %v307_v41 = vadd.f32 %v306_v33, %v305_v38  ;;  %v312_v60 = vsel %vm99_vm1, %v95_v53, 0.0 }
  0x56   :  { %476 = vst.msk [vmem:[#allocation2 + $0xb7] sm:$0x1] %vm404_vm2, %v460_v3  ;;  %v348_v16 = vmul.f32 0.14285715, %v290_v7  ;;  %v521_v18 = vld [vmem:[#allocation2 + $0xa0] sm:$0xff]  ;;  %v301_v42 = vrot.slane %v300_v40, 2 }
  0x57   :  { %477 = vst.msk [vmem:[#allocation2 + $0xbf] sm:$0x1] %vm404_vm2, %v461_v6  ;;  %v297_v14 = vadd.f32 %v296_v9, %v295_v0  ;;  %v308_v43 = vrot.slane %v307_v41, 2  ;;  %v319_v62 = vsel %vm99_vm1, %v96_v54, 0.0  ;;  %v313_v63 = vrot.slane %v312_v60, 4 }
  0x58   :  { %4934 = vmatmul.mubr.msk.bf16.gmra.mrb[4].mxu1 %vm624_vm3, %v5885_v4  ;;  %v522_v21 = vld [vmem:[#allocation2 + $0xa8] sm:$0xff]  ;;  %v462_v23 = vmax.f32 %v348_v16, 0.0  ;;  %v302_v56 = vadd.f32 %v301_v42, %v300_v40  ;;  %v320_v20 = vrot.slane %v319_v62, 4  ;;  %v65_v7 = vld [vmem:[%s8298_s2 + $0x70] sm:$0x7f]  ;;  %v431_v10 = vmax.f32 %v93_v29, 0.0 }
  0x59   :  { %826 = vmatprep.mubr.bf16.mxu1 %v8303_v2  ;;  %v349_v13 = vmul.f32 0.14285715, %v297_v14  ;;  %v5896_v25 = vpack.c.bf16 %v522_v21, %v521_v18  ;;  %v309_v58 = vadd.f32 %v308_v43, %v307_v41  ;;  %v314_v47 = vadd.f32 %v313_v63, %v312_v60  ;;  %v66_v9 = vld [vmem:[%s8298_s2 + $0x78] sm:$0x7f] }
  0x5a   :  { %478 = vst.msk [vmem:[#allocation2 + $0xc7] sm:$0x1] %vm404_vm2, %v462_v23  ;;  %v303_v19 = vrot.slane %v302_v56, 1  ;;  %v321_v26 = vadd.f32 %v320_v20, %v319_v62  ;;  %v432_v11 = vmax.f32 %v94_v30, 0.0  ;;  %v98_v23 = vadd.f32 %v66_v9, %v5769_v22 }
  0x5b   :  { %v463_v24 = vmax.f32 %v349_v13, 0.0  ;;  %v310_v52 = vrot.slane %v309_v58, 1  ;;  %v315_v3 = vrot.slane %v314_v47, 2  ;;  %v97_v13 = vadd.f32 %v65_v7, %v5759_v8  ;;  %448 = vst.msk [vmem:[#allocation2 + $0xd0] sm:$0x7f] %vm99_vm1, %v431_v10 }
  0x5c   :  { %4932 = vmatmul.mubr.msk.bf16.gmra.mrb[28].mxu0 %vm624_vm3, %v5892_v17  ;;  %v304_v46 = vadd.f32 %v303_v19, %v302_v56  ;;  %v322_v6 = vrot.slane %v321_v26, 2  ;;  %449 = vst.msk [vmem:[#allocation2 + $0xd8] sm:$0x7f] %vm99_vm1, %v432_v11  ;;  %v333_v8 = vsel %vm99_vm1, %v98_v23, 0.0  ;;  %v433_v33 = vmax.f32 %v95_v53, 0.0 }
  0x5d   :  { %479 = vst.msk [vmem:[#allocation2 + $0xcf] sm:$0x1] %vm404_vm2, %v463_v24  ;;  %1112 = vmatprep.mubr.bf16.mxu0 %v8303_v2  ;;  %v523_v27 = vld [vmem:[#allocation2 + $0xb0] sm:$0xff]  ;;  %v311_v57 = vadd.f32 %v310_v52, %v309_v58  ;;  %v316_v18 = vadd.f32 %v315_v3, %v314_v47  ;;  %v334_v31 = vrot.slane %v333_v8, 4  ;;  %v434_v40 = vmax.f32 %v96_v54, 0.0 }
  0x5e   :  { %v524_v28 = vld [vmem:[#allocation2 + $0xb8] sm:$0xff]  ;;  %v350_v0 = vmul.f32 0.14285715, %v304_v46  ;;  %v323_v21 = vadd.f32 %v322_v6, %v321_v26  ;;  %450 = vst.msk [vmem:[#allocation2 + $0xe0] sm:$0x7f] %vm99_vm1, %v433_v33  ;;  %v435_v63 = vmax.f32 %v97_v13, 0.0 }
  0x5f   :  { %v5913_v35 = vpack.c.bf16 %v524_v28, %v523_v27  ;;  %v351_v1 = vmul.f32 0.14285715, %v311_v57  ;;  %v317_v24 = vrot.slane %v316_v18, 1  ;;  %v326_v28 = vsel %vm99_vm1, %v97_v13, 0.0  ;;  %451 = vst.msk [vmem:[#allocation2 + $0xe8] sm:$0x7f] %vm99_vm1, %v434_v40 }
  0x60   :  { %4935 = vmatmul.mubr.msk.bf16.gmra.mrb[8].mxu1 %vm624_vm3, %v5896_v25  ;;  %v464_v14 = vmax.f32 %v350_v0, 0.0  ;;  %v324_v27 = vrot.slane %v323_v21, 1  ;;  %v327_v22 = vrot.slane %v326_v28, 4  ;;  %v335_v36 = vadd.f32 %v334_v31, %v333_v8  ;;  %452 = vst.msk [vmem:[#allocation2 + $0xf0] sm:$0x7f] %vm99_vm1, %v435_v63 }
  0x61   :  { %836 = vmatprep.mubr.bf16.mxu1 %v8303_v2  ;;  %v525_v48 = vld [vmem:[#allocation2 + $0xc0] sm:$0xff]  ;;  %v465_v16 = vmax.f32 %v351_v1, 0.0  ;;  %v318_v32 = vadd.f32 %v317_v24, %v316_v18  ;;  %v436_v20 = vmax.f32 %v98_v23, 0.0  ;;  %v5360_v6 = vld [vmem:[%s8299_s3 + $0x3c] ss:$24 sps:$4 sm:$0xff]   ;;  %vm1273_vm4 = vcmask 39936  }
  0x62   :  { %480 = vst.msk [vmem:[#allocation2 + $0xd7] sm:$0x1] %vm404_vm2, %v464_v14  ;;  %v325_v29 = vadd.f32 %v324_v27, %v323_v21  ;;  %v328_v30 = vadd.f32 %v327_v22, %v326_v28  ;;  %v5357_v1 = vld [vmem:[%s8299_s3 + $0xc] ss:$24 sps:$4 sm:$0xff]   ;;  %v5355_v3 = vld [vmem:[%s8299_s3 + $0x8] ss:$24 sps:$4 sm:$0xff]  }
  0x63   :  { %481 = vst.msk [vmem:[#allocation2 + $0xdf] sm:$0x1] %vm404_vm2, %v465_v16  ;;  %v352_v38 = vmul.f32 0.14285715, %v318_v32  ;;  %887 = vmatprep.subr.bf16.mxu1 %v5357_v1  ;;  %v5358_v10 = vld [vmem:[%s8299_s3 + $0x38] ss:$24 sps:$4 sm:$0xff]  }
  0x64   :  { %4957 = vmatmul.mubr.msk.bf16.vlgmr.msra.gmra.mrb[32].mxu0 %vm624_vm3, %v5725_v37  ;;  %v526_v49 = vld [vmem:[#allocation2 + $0xc8] sm:$0xff]  ;;  %v353_v39 = vmul.f32 0.14285715, %v325_v29  ;;  %v329_v41 = vrot.slane %v328_v30, 2  ;;  %453 = vst.msk [vmem:[#allocation2 + $0xf8] sm:$0x7f] %vm99_vm1, %v436_v20  ;;  %888 = vmatpush1.bf16.msra.mxu1 %v5355_v3 }
  0x65   :  { %1122 = vmatprep.mubr.bf16.mxu0 %v8303_v2  ;;  %v5931_v59 = vpack.c.bf16 %v526_v49, %v525_v48  ;;  %v336_v48 = vrot.slane %v335_v36, 2  ;;  %v466_v43 = vmax.f32 %v352_v38, 0.0  ;;  %889 = vmatprep.subr.bf16.mxu1 %v5360_v6  ;;  %v499_v14 = vld [vmem:[%s8299_s3 + $0x68] sm:$0x11]  ;;  %vm2874_vm5 = vcmask 1041409   ;;  %s5520_s3 = smov [#allocation3]  }
  0x66   :  { %v467_v45 = vmax.f32 %v353_v39, 0.0  ;;  %v330_v56 = vadd.f32 %v329_v41, %v328_v30  ;;  %v4921_v16 = vcombine.low %v499_v14, %v499_v14  ;;  %v4922_v18 = vcombine.high %v499_v14, %v499_v14  ;;  %s4896_s6 = sshll.u32 %s5520_s3, 4  ;;  %s4897_s6 = int_to_ptr.vmem [resolvable:$true] %s4896_s6 }
  0x67   :  { %v337_v58 = vadd.f32 %v336_v48, %v335_v36  ;;  %482 = vst.msk [vmem:[#allocation2 + $0xe7] sm:$0x1] %vm404_vm2, %v466_v43  ;;  %vm2876_vm6 = vcmask 1042434   ;;  %vm2878_vm7 = vcmask 1043459   ;;  %vm2880_vm8 = vcmask 1044484   ;;  %s5491_s7 = scalar_lea.vmem %s4897_s6, 1280  ;;  %p5496_p1 = scmp.lt.s32.totalorder %s4897_s6, %s4897_s6 }
  0x68   :  { %4936 = vmatmul.mubr.msk.bf16.gmra.mrb[12].mxu1 %vm624_vm3, %v5913_v35  ;;  %483 = vst.msk [vmem:[#allocation2 + $0xef] sm:$0x1] %vm404_vm2, %v467_v45  ;;  %v331_v53 = vrot.slane %v330_v56, 1  ;;  %v686_v21 = vand.u32 %v4922_v18, %v5563_v5  ;;  %v683_v13 = vand.u32 %v4921_v16, %v5563_v5  ;;  %v8301_v5 = vmov 2   ;;  %p5492_p0 = scmp.ne.s32.totalorder %s4897_s6, %s5491_s7  ;;  %p5497_p2 = scmp.lt.s32.totalorder %s5491_s7, %s5491_s7 }
  0x69   :  { %846 = vmatprep.mubr.bf16.mxu1 %v8303_v2  ;;  %v527_v49 = vld [vmem:[#allocation2 + $0xd0] sm:$0xff]  ;;  %v338_v54 = vrot.slane %v337_v58, 1  ;;  %890 = vmatpush1.bf16.msra.mxu1 %v5358_v10  ;;  %vm2882_vm9 = vcmask 1045509   ;;  %vm2884_vm10 = vcmask 1046534   ;;  %vm2886_vm11 = vcmask 1047559  }
  0x6a   :  { %v528_v42 = vld [vmem:[#allocation2 + $0xd8] sm:$0xff]  ;;  %v332_v60 = vadd.f32 %v331_v53, %v330_v56  ;;  %891 = vmatprep.subr.bf16.mxu1 %v686_v21  ;;  %5181 = vset.pattern.permute.xlu1 %v8301_v5  ;;  %p5498_p3 = por %p5497_p2, %p5496_p1 }
  0x6b   :  { %v5960_v50 = vpack.c.bf16 %v528_v42, %v527_v49  ;;  %v339_v62 = vadd.f32 %v338_v54, %v337_v58 }
  0x6c   :  { %4958 = vmatmul.mubr.msk.bf16.gmra.mrb[36].mxu0 %vm624_vm3, %v5742_v55  ;;  %v354_v19 = vmul.f32 0.14285715, %v332_v60  ;;  %p5499_p4 = pnand %p5498_p3, %p5492_p0 }
  0x6d   :  { %1132 = vmatprep.mubr.bf16.mxu0 %v8303_v2  ;;  %v355_v52 = vmul.f32 0.14285715, %v339_v62  ;;  %892 = vmatpush1.bf16.msra.mxu1 %v683_v13 }
  0x6e   :  { %v529_v46 = vld [vmem:[#allocation2 + $0xe0] sm:$0xff]  ;;  %v468_v47 = vmax.f32 %v354_v19, 0.0 }
  0x6f   :  { %v530_v57 = vld [vmem:[#allocation2 + $0xe8] sm:$0xff]  ;;  %v469_v26 = vmax.f32 %v355_v52, 0.0 }
  0x70   :  { %4937 = vmatmul.mubr.msk.bf16.gmra.mrb[16].mxu1 %vm624_vm3, %v5931_v59  ;;  %v5975_v0 = vpack.c.bf16 %v530_v57, %v529_v46  ;;  %484 = vst.msk [vmem:[#allocation2 + $0xf7] sm:$0x1] %vm404_vm2, %v468_v47 }
  0x71   :  { %856 = vmatprep.mubr.bf16.mxu1 %v8303_v2  ;;  %485 = vst.msk [vmem:[#allocation2 + $0xff] sm:$0x1] %vm404_vm2, %v469_v26 }
  0x74   :  { %4959 = vmatmul.mubr.msk.bf16.gmra.mrb[40].mxu0 %vm624_vm3, %v5783_v51 }
  0x75   :  { %1142 = vmatprep.mubr.bf16.mxu0 %v8303_v2 }
  0x77   :  { %v531_v7 = vld [vmem:[#allocation2 + $0xf0] sm:$0xff] }
  0x78   :  { %4938 = vmatmul.mubr.msk.bf16.gmra.mrb[20].mxu1 %vm624_vm3, %v5960_v50  ;;  %v532_v9 = vld [vmem:[#allocation2 + $0xf8] sm:$0xff] }
  0x79   :  { %866 = vmatprep.mubr.bf16.mxu1 %v8303_v2  ;;  %v5997_v11 = vpack.c.bf16 %v532_v9, %v531_v7 }
  0x7c   :  { %4960 = vmatmul.mubr.msk.bf16.gmra.mrb[44].mxu0 %vm624_vm3, %v5810_v34 }
  0x7d   :  { %1152 = vmatprep.mubr.bf16.mxu0 %v8303_v2 }
  0x80   :  { %4939 = vmatmul.mubr.msk.bf16.gmra.mrb[24].mxu1 %vm624_vm3, %v5975_v0 }
  0x81   :  { %876 = vmatprep.mubr.bf16.mxu1 %v8303_v2 }
  0x84   :  { %4961 = vmatmul.mubr.msk.bf16.gmra.mrb[48].mxu0 %vm624_vm3, %v5821_v12 }
  0x85   :  { %1162 = vmatprep.mubr.bf16.mxu0 %v8303_v2 }
  0x88   :  { %4940 = vmatmul.mubr.msk.bf16.gmra.mrb[28].mxu1 %vm624_vm3, %v5997_v11 }
  0x89   :  { %919 = vmatprep.mubr.bf16.mxu1 %v8303_v2 }
  0x8c   :  { %4962 = vmatmul.mubr.msk.bf16.gmra.mrb[52].mxu0 %vm624_vm3, %v5861_v15 }
  0x8d   :  { %1172 = vmatprep.mubr.bf16.mxu0 %v8303_v2 }
  0x90   :  { %4941 = vmatmul.mubr.msk.bf16.vlgmr.msra.gmra.mrb[32].mxu1 %vm624_vm3, %v5725_v37 }
  0x91   :  { %929 = vmatprep.mubr.bf16.mxu1 %v8303_v2 }
  0x94   :  { %4963 = vmatmul.mubr.msk.bf16.gmra.mrb[56].mxu0 %vm624_vm3, %v5879_v61 }
  0x95   :  { %1182 = vmatprep.mubr.bf16.mxu0 %v8303_v2 }
  0x98   :  { %4942 = vmatmul.mubr.msk.bf16.gmra.mrb[36].mxu1 %vm624_vm3, %v5742_v55 }
  0x99   :  { %939 = vmatprep.mubr.bf16.mxu1 %v8303_v2 }
  0x9c   :  { %4964 = vmatmul.mubr.msk.bf16.gmra.mrb[60].mxu0 %vm624_vm3, %v5892_v17 }
  0x9d   :  { %1192 = vmatprep.mubr.bf16.mxu0 %v8303_v2 }
  0xa0   :  { %4943 = vmatmul.mubr.msk.bf16.gmra.mrb[40].mxu1 %vm624_vm3, %v5783_v51 }
  0xa1   :  { %949 = vmatprep.mubr.bf16.mxu1 %v8303_v2 }
  0xa4   :  { %4965 = vmatmul.mubr.msk.bf16.gmra.mrb[64].mxu0 %vm624_vm3, %v5872_v44 }
  0xa5   :  { %1202 = vmatprep.mubr.bf16.mxu0 %v8303_v2 }
  0xa8   :  { %4944 = vmatmul.mubr.msk.bf16.gmra.mrb[44].mxu1 %vm624_vm3, %v5810_v34 }
  0xa9   :  { %959 = vmatprep.mubr.bf16.mxu1 %v8303_v2 }
  0xac   :  { %4966 = vmatmul.mubr.msk.bf16.gmra.mrb[68].mxu0 %vm624_vm3, %v5885_v4 }
  0xad   :  { %1212 = vmatprep.mubr.bf16.mxu0 %v8303_v2 }
  0xb0   :  { %4945 = vmatmul.mubr.msk.bf16.gmra.mrb[48].mxu1 %vm624_vm3, %v5821_v12 }
  0xb1   :  { %969 = vmatprep.mubr.bf16.mxu1 %v8303_v2 }
  0xb4   :  { %4967 = vmatmul.mubr.msk.bf16.gmra.mrb[72].mxu0 %vm624_vm3, %v5896_v25 }
  0xb5   :  { %1222 = vmatprep.mubr.bf16.mxu0 %v8303_v2 }
  0xb8   :  { %4946 = vmatmul.mubr.msk.bf16.gmra.mrb[52].mxu1 %vm624_vm3, %v5861_v15 }
  0xb9   :  { %979 = vmatprep.mubr.bf16.mxu1 %v8303_v2 }
  0xbc   :  { %4968 = vmatmul.mubr.msk.bf16.gmra.mrb[76].mxu0 %vm624_vm3, %v5913_v35 }
  0xbd   :  { %1232 = vmatprep.mubr.bf16.mxu0 %v8303_v2 }
  0xc0   :  { %4947 = vmatmul.mubr.msk.bf16.gmra.mrb[56].mxu1 %vm624_vm3, %v5879_v61 }
  0xc1   :  { %989 = vmatprep.mubr.bf16.mxu1 %v8303_v2 }
  0xc4   :  { %4969 = vmatmul.mubr.msk.bf16.gmra.mrb[80].mxu0 %vm624_vm3, %v5931_v59 }
  0xc5   :  { %1242 = vmatprep.mubr.bf16.mxu0 %v8303_v2 }
  0xc8   :  { %4948 = vmatmul.mubr.msk.bf16.gmra.mrb[60].mxu1 %vm624_vm3, %v5892_v17 }
  0xc9   :  { %999 = vmatprep.mubr.bf16.mxu1 %v8303_v2 }
  0xcc   :  { %4970 = vmatmul.mubr.msk.bf16.gmra.mrb[84].mxu0 %vm624_vm3, %v5960_v50 }
  0xcd   :  { %1252 = vmatprep.mubr.bf16.mxu0 %v8303_v2 }
  0xd0   :  { %4949 = vmatmul.mubr.msk.bf16.gmra.mrb[64].mxu1 %vm624_vm3, %v5872_v44 }
  0xd1   :  { %1009 = vmatprep.mubr.bf16.mxu1 %v8303_v2 }
  0xd4   :  { %4971 = vmatmul.mubr.msk.bf16.gmra.mrb[88].mxu0 %vm624_vm3, %v5975_v0 }
  0xd5   :  { %1262 = vmatprep.mubr.bf16.mxu0 %v8303_v2 }
  0xd8   :  { %4950 = vmatmul.mubr.msk.bf16.gmra.mrb[68].mxu1 %vm624_vm3, %v5885_v4 }
  0xd9   :  { %1019 = vmatprep.mubr.bf16.mxu1 %v8303_v2 }
  0xdc   :  { %4972 = vmatmul.mubr.msk.bf16.gmra.mrb[92].mxu0 %vm624_vm3, %v5997_v11 }
  0xe0   :  { %4951 = vmatmul.mubr.msk.bf16.gmra.mrb[72].mxu1 %vm624_vm3, %v5896_v25 }
  0xe1   :  { %1029 = vmatprep.mubr.bf16.mxu1 %v8303_v2 }
  0xe8   :  { %4952 = vmatmul.mubr.msk.bf16.gmra.mrb[76].mxu1 %vm624_vm3, %v5913_v35 }
  0xe9   :  { %1039 = vmatprep.mubr.bf16.mxu1 %v8303_v2 }
  0xf0   :  { %4953 = vmatmul.mubr.msk.bf16.gmra.mrb[80].mxu1 %vm624_vm3, %v5931_v59 }
  0xf1   :  { %1049 = vmatprep.mubr.bf16.mxu1 %v8303_v2 }
  0xf7   :  { %v728_v37 = vpop.f32.mrb[0].mxu0 }
  0xf8   :  { %v730_v55 = vpop.f32.mrb[1].mxu0  ;;  %4954 = vmatmul.mubr.msk.bf16.gmra.mrb[84].mxu1 %vm624_vm3, %v5960_v50 }
  0xf9   :  { %v6075_v51 = vpack.c.bf16 %v730_v55, %v728_v37  ;;  %v732_v34 = vpop.f32.mrb[2].mxu0  ;;  %1059 = vmatprep.mubr.bf16.mxu1 %v8303_v2 }
  0xfa   :  { %v734_v12 = vpop.f32.mrb[3].mxu0 }
  0xfb   :  { %8382 = vst [vmem:[#allocation6_spill] sm:$0xff] %v6075_v51  ;;  %v6078_v15 = vpack.c.bf16 %v734_v12, %v732_v34 }
  0xfd   :  { %8383 = vst [vmem:[#allocation7_spill] sm:$0xff] %v6078_v15 }
  0xff   :  { %v738_v44 = vpop.f32.mrb[4].mxu0 }
 0x100   :  { %v740_v61 = vpop.f32.mrb[5].mxu0  ;;  %4955 = vmatmul.mubr.msk.bf16.gmra.mrb[88].mxu1 %vm624_vm3, %v5975_v0 }
 0x101   :  { %v6082_v4 = vpack.c.bf16 %v740_v61, %v738_v44  ;;  %v742_v17 = vpop.f32.mrb[6].mxu0  ;;  %1069 = vmatprep.mubr.bf16.mxu1 %v8303_v2 }
 0x102   :  { %v744_v25 = vpop.f32.mrb[7].mxu0 }
 0x103   :  { %8384 = vst [vmem:[#allocation8_spill] sm:$0xff] %v6082_v4  ;;  %v6085_v35 = vpack.c.bf16 %v744_v25, %v742_v17 }
 0x105   :  { %8385 = vst [vmem:[#allocation9_spill] sm:$0xff] %v6085_v35 }
 0x107   :  { %v748_v59 = vpop.f32.mrb[8].mxu0 }
 0x108   :  { %v750_v23 = vpop.f32.mrb[9].mxu0  ;;  %4956 = vmatmul.mubr.msk.bf16.gmra.mrb[92].mxu1 %vm624_vm3, %v5997_v11 }
 0x109   :  { %v6089_v24 = vpack.c.bf16 %v750_v23, %v748_v59  ;;  %v752_v27 = vpop.f32.mrb[10].mxu0 }
 0x10a   :  { %v754_v28 = vpop.f32.mrb[11].mxu0 }
 0x10b   :  { %8386 = vst [vmem:[#allocation10_spill] sm:$0xff] %v6089_v24  ;;  %v6092_v8 = vpack.c.bf16 %v754_v28, %v752_v27 }
 0x10d   :  { %8387 = vst [vmem:[#allocation11_spill] sm:$0xff] %v6092_v8 }
 0x10f   :  { %v758_v22 = vpop.f32.mrb[12].mxu0 }
 0x110   :  { %v760_v31 = vpop.f32.mrb[13].mxu0 }
 0x111   :  { %v6096_v32 = vpack.c.bf16 %v760_v31, %v758_v22  ;;  %v762_v29 = vpop.f32.mrb[14].mxu0 }
 0x112   :  { %v764_v30 = vpop.f32.mrb[15].mxu0 }
 0x113   :  { %8388 = vst [vmem:[#allocation12_spill] sm:$0xff] %v6096_v32  ;;  %v6098_v36 = vpack.c.bf16 %v764_v30, %v762_v29 }
 0x115   :  { %8389 = vst [vmem:[#allocation13_spill] sm:$0xff] %v6098_v36 }
 0x117   :  { %v768_v38 = vpop.f32.mrb[16].mxu0 }
 0x118   :  { %v770_v39 = vpop.f32.mrb[17].mxu0 }
 0x119   :  { %v6100_v33 = vpack.c.bf16 %v770_v39, %v768_v38  ;;  %v772_v40 = vpop.f32.mrb[18].mxu0 }
 0x11a   :  { %v774_v41 = vpop.f32.mrb[19].mxu0 }
 0x11b   :  { %8390 = vst [vmem:[#allocation14_spill] sm:$0xff] %v6100_v33  ;;  %v6102_v48 = vpack.c.bf16 %v774_v41, %v772_v40 }
 0x11d   :  { %8391 = vst [vmem:[#allocation15_spill] sm:$0xff] %v6102_v48 }
 0x11f   :  { %v778_v49 = vpop.f32.mrb[20].mxu0 }
 0x120   :  { %v780_v42 = vpop.f32.mrb[21].mxu0 }
 0x121   :  { %v6104_v43 = vpack.c.bf16 %v780_v42, %v778_v49  ;;  %v782_v45 = vpop.f32.mrb[22].mxu0 }
 0x122   :  { %v784_v50 = vpop.f32.mrb[23].mxu0 }
 0x123   :  { %8392 = vst [vmem:[#allocation16_spill] sm:$0xff] %v6104_v43  ;;  %v6106_v56 = vpack.c.bf16 %v784_v50, %v782_v45  ;;  %v808_v45 = vpop.f32.mrb[0].mxu1 }
 0x125   :  { %8393 = vst [vmem:[#allocation17_spill] sm:$0xff] %v6106_v56 }
 0x127   :  { %v788_v58 = vpop.f32.mrb[24].mxu0 }
 0x128   :  { %v790_v53 = vpop.f32.mrb[25].mxu0 }
 0x129   :  { %v6108_v54 = vpack.c.bf16 %v790_v53, %v788_v58  ;;  %v792_v60 = vpop.f32.mrb[26].mxu0  ;;  %v810_v53 = vpop.f32.mrb[1].mxu1 }
 0x12a   :  { %v794_v62 = vpop.f32.mrb[27].mxu0 }
 0x12b   :  { %8394 = vst [vmem:[#allocation18_spill] sm:$0xff] %v6108_v54  ;;  %v6110_v19 = vpack.c.bf16 %v794_v62, %v792_v60 }
 0x12d   :  { %8395 = vst [vmem:[#allocation19_spill] sm:$0xff] %v6110_v19 }
 0x12f   :  { %v798_v52 = vpop.f32.mrb[28].mxu0 }
 0x130   :  { %v800_v63 = vpop.f32.mrb[29].mxu0 }
 0x131   :  { %v6112_v20 = vpack.c.bf16 %v800_v63, %v798_v52  ;;  %v802_v46 = vpop.f32.mrb[30].mxu0 }
 0x132   :  { %v804_v57 = vpop.f32.mrb[31].mxu0 }
 0x133   :  { %8396 = vst [vmem:[#allocation20_spill] sm:$0xff] %v6112_v20  ;;  %v6114_v47 = vpack.c.bf16 %v804_v57, %v802_v46  ;;  %v812_v46 = vpop.f32.mrb[2].mxu1 }
 0x135   :  { %8397 = vst [vmem:[#allocation21_spill] sm:$0xff] %v6114_v47 }
 0x137   :  { %v6116_v26 = vpop.f32.mrb[32].mxu0 }
 0x138   :  { %v1116_v0 = vpop.f32.mrb[33].mxu0 }
 0x139   :  { %v1274_v1 = vsel %vm1273_vm4, %v1116_v0, -inf  ;;  %v6119_v3 = vpop.f32.mrb[34].mxu0 }
 0x13a   :  { %v1275_v6 = vrot.slane %v1274_v1, 4  ;;  %v1120_v7 = vpop.f32.mrb[35].mxu0 }
 0x13b   :  { %v1281_v9 = vsel %vm1273_vm4, %v1120_v7, -inf }
 0x13c   :  { %v1276_v10 = vmax.f32 %v1274_v1, %v1275_v6  ;;  %v1282_v11 = vrot.slane %v1281_v9, 4  ;;  %v814_v1 = vpop.f32.mrb[3].mxu1 }
 0x13e   :  { %v1277_v14 = vrot.slane %v1276_v10, 2  ;;  %v1283_v16 = vmax.f32 %v1281_v9, %v1282_v11 }
 0x13f   :  { %v6122_v18 = vpop.f32.mrb[36].mxu0 }
 0x140   :  { %v1278_v21 = vmax.f32 %v1276_v10, %v1277_v14  ;;  %v1284_v13 = vrot.slane %v1283_v16, 2  ;;  %v1126_v37 = vpop.f32.mrb[37].mxu0  ;;  %v818_v10 = vpop.f32.mrb[4].mxu1  ;;  %v6140_v14 = vpack.c.bf16 %v810_v53, %v808_v45 }
 0x141   :  { %v1288_v55 = vsel %vm1273_vm4, %v1126_v37, -inf  ;;  %v6125_v34 = vpop.f32.mrb[38].mxu0 }
 0x142   :  { %v1279_v12 = vrot.slane %v1278_v21, 1  ;;  %v1285_v44 = vmax.f32 %v1283_v16, %v1284_v13  ;;  %v1289_v61 = vrot.slane %v1288_v55, 4  ;;  %v1130_v17 = vpop.f32.mrb[39].mxu0  ;;  %8398 = vst [vmem:[#allocation22_spill] sm:$0xff] %v6140_v14  ;;  %v6142_v16 = vpack.c.bf16 %v814_v1, %v812_v46 }
 0x143   :  { %v1295_v25 = vsel %vm1273_vm4, %v1130_v17, -inf }
 0x144   :  { %v1280_v59 = vmax.f32 %v1278_v21, %v1279_v12  ;;  %v1286_v23 = vrot.slane %v1285_v44, 1  ;;  %v1290_v27 = vmax.f32 %v1288_v55, %v1289_v61  ;;  %v1296_v28 = vrot.slane %v1295_v25, 4  ;;  %8399 = vst [vmem:[#allocation23_spill] sm:$0xff] %v6142_v16  ;;  %v820_v21 = vpop.f32.mrb[5].mxu1 }
 0x145   :  { %v822_v61 = vpop.f32.mrb[6].mxu1 }
 0x146   :  { %v1498_v22 = vsub.f32 %v1116_v0, %v1280_v59  ;;  %v1287_v31 = vmax.f32 %v1285_v44, %v1286_v23  ;;  %v1291_v29 = vrot.slane %v1290_v27, 2  ;;  %v1297_v30 = vmax.f32 %v1295_v25, %v1296_v28  ;;  %v824_v23 = vpop.f32.mrb[7].mxu1 }
 0x147   :  { %v6128_v38 = vpop.f32.mrb[40].mxu0  ;;  %v6144_v44 = vpack.c.bf16 %v820_v21, %v818_v10 }
 0x148   :  { %v1530_v39 = vmul.f32 1.442695, %v1498_v22  ;;  %v1499_v40 = vsub.f32 %v1120_v7, %v1287_v31  ;;  %v1292_v41 = vmax.f32 %v1290_v27, %v1291_v29  ;;  %v1298_v49 = vrot.slane %v1297_v30, 2  ;;  %v6130_v42 = vpop.f32.mrb[41].mxu0  ;;  %v828_v31 = vpop.f32.mrb[8].mxu1 }
 0x149   :  { %v1302_v50 = vsel %vm1273_vm4, %v6130_v42, -inf  ;;  %v6134_v58 = vpop.f32.mrb[42].mxu0  ;;  %8400 = vst [vmem:[#allocation24_spill] sm:$0xff] %v6144_v44 }
 0x14a   :  { %5363 = vpow2.f32 %v1530_v39  ;;  %v1532_v60 = vmul.f32 1.442695, %v1499_v40  ;;  %v1293_v62 = vrot.slane %v1292_v41, 1  ;;  %v1299_v52 = vmax.f32 %v1297_v30, %v1298_v49  ;;  %v6136_v63 = vpop.f32.mrb[43].mxu0  ;;  %v830_v40 = vpop.f32.mrb[9].mxu1 }
 0x14b   :  { %v1303_v57 = vrot.slane %v1302_v50, 4  ;;  %v1309_v0 = vsel %vm1273_vm4, %v6136_v63, -inf  ;;  %v6170_v21 = vpack.c.bf16 %v830_v40, %v828_v31 }
 0x14c   :  { %5365 = vpow2.f32 %v1532_v60  ;;  %v1294_v6 = vmax.f32 %v1292_v41, %v1293_v62  ;;  %v1300_v7 = vrot.slane %v1299_v52, 1  ;;  %v1310_v9 = vrot.slane %v1309_v0, 4 }
 0x14d   :  { %v1304_v11 = vmax.f32 %v1302_v50, %v1303_v57  ;;  %v832_v50 = vpop.f32.mrb[10].mxu1  ;;  %8404 = vst [vmem:[#allocation28_spill] sm:$0xff] %v6170_v21 }
 0x14e   :  { %v1500_v13 = vsub.f32 %v1126_v37, %v1294_v6  ;;  %v1301_v55 = vmax.f32 %v1299_v52, %v1300_v7  ;;  %v1311_v12 = vmax.f32 %v1309_v0, %v1310_v9  ;;  %v6154_v37 = vpack.c.bf16 %v824_v23, %v822_v61  ;;  %v834_v62 = vpop.f32.mrb[11].mxu1 }
 0x14f   :  { %v1305_v25 = vrot.slane %v1304_v11, 2  ;;  %v6146_v59 = vpop.f32.mrb[44].mxu0  ;;  %v6162_v57 = vpop.f32.mrb[12].mxu1 }
 0x150   :  { %8401 = vst [vmem:[#allocation25_spill] sm:$0xff] %v6146_v59  ;;  %v1534_v27 = vmul.f32 1.442695, %v1500_v13  ;;  %v1501_v28 = vsub.f32 %v1130_v17, %v1301_v55  ;;  %v6148_v22 = vpop.f32.mrb[45].mxu0  ;;  %8403 = vst [vmem:[#allocation27_spill] sm:$0xff] %v6154_v37  ;;  %v1312_v49 = vrot.slane %v1311_v12, 2 }
 0x151   :  { %v1306_v29 = vmax.f32 %v1304_v11, %v1305_v25  ;;  %v1316_v30 = vsel %vm1273_vm4, %v6148_v22, -inf  ;;  %v6152_v39 = vpop.f32.mrb[46].mxu0  ;;  %v6166_v7 = vpop.f32.mrb[13].mxu1 }
 0x152   :  { %8402 = vst [vmem:[#allocation26_spill] sm:$0xff] %v6152_v39  ;;  %5367 = vpow2.f32 %v1534_v27  ;;  %v1536_v41 = vmul.f32 1.442695, %v1501_v28  ;;  %v6156_v45 = vpop.f32.mrb[47].mxu0  ;;  %v1317_v17 = vrot.slane %v1316_v30, 4  ;;  %v1313_v11 = vmax.f32 %v1311_v12, %v1312_v49  ;;  %v6172_v13 = vpop.f32.mrb[14].mxu1 }
 0x153   :  { %v1307_v53 = vrot.slane %v1306_v29, 1  ;;  %v1323_v60 = vsel %vm1273_vm4, %v6156_v45, -inf  ;;  %v6179_v27 = vpack.c.bf16 %v834_v62, %v832_v50  ;;  %v6181_v28 = vpop.f32.mrb[15].mxu1 }
 0x154   :  { %v6160_v52 = vpop.eup %5363  ;;  %v1324_v46 = vrot.slane %v1323_v60, 4  ;;  %5369 = vpow2.f32 %v1536_v41  ;;  %v1318_v6 = vmax.f32 %v1316_v30, %v1317_v17  ;;  %v6185_v31 = vpop.f32.mrb[16].mxu1 }
 0x155   :  { %v1594_v0 = vsel %vm1273_vm4, %v6160_v52, 0.0  ;;  %v1308_v1 = vmax.f32 %v1306_v29, %v1307_v53  ;;  %8406 = vst [vmem:[#allocation30_spill] sm:$0xff] %v6179_v27  ;;  %8407 = vst [vmem:[#allocation31_spill] sm:$0xff] %v6185_v31 }
 0x156   :  { %v6168_v9 = vpop.eup %5365  ;;  %v1595_v10 = vrot.slane %v1594_v0, 4  ;;  %v1325_v25 = vmax.f32 %v1323_v60, %v1324_v46  ;;  %v1319_v41 = vrot.slane %v1318_v6, 2  ;;  %v1314_v46 = vrot.slane %v1313_v11, 1 }
 0x157   :  { %v1601_v55 = vsel %vm1273_vm4, %v6168_v9, 0.0  ;;  %v1502_v61 = vsub.f32 %v6130_v42, %v1308_v1  ;;  %v6177_v23 = vpop.f32.mrb[48].mxu0  ;;  %v6191_v42 = vpop.f32.mrb[17].mxu1 }
 0x158   :  { %8405 = vst [vmem:[#allocation29_spill] sm:$0xff] %v6177_v23  ;;  %v1596_v29 = vadd.f32 %v1595_v10, %v1594_v0  ;;  %v1602_v30 = vrot.slane %v1601_v55, 4  ;;  %v6183_v12 = vpop.f32.mrb[49].mxu0  ;;  %8409 = vst [vmem:[#allocation33_spill] sm:$0xff] %v6191_v42  ;;  %v6195_v60 = vpop.f32.mrb[18].mxu1  ;;  %v1326_v0 = vrot.slane %v1325_v25, 2  ;;  %v1320_v21 = vmax.f32 %v1318_v6, %v1319_v41 }
 0x159   :  { %v1330_v40 = vsel %vm1273_vm4, %v6183_v12, -inf  ;;  %v6189_v49 = vpop.f32.mrb[50].mxu0  ;;  %8410 = vst [vmem:[#allocation34_spill] sm:$0xff] %v6195_v60  ;;  %v1538_v62 = vmul.f32 1.442695, %v1502_v61  ;;  %v6197_v10 = vpop.f32.mrb[19].mxu1 }
 0x15a   :  { %8408 = vst [vmem:[#allocation32_spill] sm:$0xff] %v6189_v49  ;;  %v1597_v53 = vrot.slane %v1596_v29, 2  ;;  %v1603_v17 = vadd.f32 %v1602_v30, %v1601_v55  ;;  %v6193_v50 = vpop.f32.mrb[51].mxu0  ;;  %v1331_v1 = vrot.slane %v1330_v40, 4  ;;  %8411 = vst [vmem:[#allocation35_spill] sm:$0xff] %v6197_v10  ;;  %v6201_v49 = vpop.f32.mrb[20].mxu1  ;;  %v1315_v10 = vmax.f32 %v1313_v11, %v1314_v46 }
 0x15b   :  { %8412 = vst [vmem:[#allocation36_spill] sm:$0xff] %v6201_v49  ;;  %v6205_v30 = vpop.f32.mrb[21].mxu1  ;;  %5371 = vpow2.f32 %v1538_v62  ;;  %v1321_v42 = vrot.slane %v1320_v21, 1 }
 0x15c   :  { %v6199_v5 = vpop.eup %5367  ;;  %v1598_v2 = vadd.f32 %v1597_v53, %v1596_v29  ;;  %v1604_v27 = vrot.slane %v1603_v17, 2  ;;  %8413 = vst [vmem:[#allocation37_spill] sm:$0xff] %v6205_v30  ;;  %v1332_v44 = vmax.f32 %v1330_v40, %v1331_v1  ;;  %v6207_v39 = vpop.f32.mrb[22].mxu1  ;;  %v1327_v29 = vmax.f32 %v1325_v25, %v1326_v0 }
 0x15d   :  { %v1608_v55 = vsel %vm1273_vm4, %v6199_v5, 0.0  ;;  %8414 = vst [vmem:[#allocation38_spill] sm:$0xff] %v6207_v39  ;;  %v6213_v6 = vpop.f32.mrb[23].mxu1  ;;  %v2900_v40 = vrot.slane %v6078_v15, 4  ;;  %v1503_v1 = vsub.f32 %v6136_v63, %v1315_v10 }
 0x15e   :  { %v1599_v37 = vrot.slane %v1598_v2, 1  ;;  %v1605_v23 = vadd.f32 %v1604_v27, %v1603_v17  ;;  %v1609_v61 = vrot.slane %v1608_v55, 4  ;;  %v6209_v60 = vpop.eup %5369  ;;  %8417 = vst [vmem:[#allocation41_spill] sm:$0xff] %v6213_v6  ;;  %v6217_v30 = vpop.f32.mrb[24].mxu1  ;;  %v2899_v27 = vrot.slane %v6075_v51, 4 }
 0x15f   :  { %8415 = vst [vmem:[#allocation39_spill] sm:$0xff] %v6209_v60  ;;  %v6211_v53 = vpop.f32.mrb[52].mxu0  ;;  %8418 = vst [vmem:[#allocation42_spill] sm:$0xff] %v6217_v30  ;;  %v1337_v17 = vsel %vm1273_vm4, %v6193_v50, -inf  ;;  %v6225_v25 = vpop.f32.mrb[25].mxu1  ;;  %v6245_v63 = vunpack.c.l.bf16 %v2900_v40 }
 0x160   :  { %8416 = vst [vmem:[#allocation40_spill] sm:$0xff] %v6211_v53  ;;  %v1600_v41 = vadd.f32 %v1599_v37, %v1598_v2  ;;  %v1610_v49 = vadd.f32 %v1609_v61, %v1608_v55  ;;  %v6215_v31 = vpop.f32.mrb[53].mxu0  ;;  %8420 = vst [vmem:[#allocation44_spill] sm:$0xff] %v6225_v25  ;;  %v1606_v62 = vrot.slane %v1605_v23, 1  ;;  %v1615_v2 = vsel %vm1273_vm4, %v6209_v60, 0.0  ;;  %v6231_v0 = vpop.f32.mrb[26].mxu1 }
 0x161   :  { %v6223_v11 = vpop.f32.mrb[54].mxu0  ;;  %v1333_v37 = vrot.slane %v1332_v44, 2  ;;  %8421 = vst [vmem:[#allocation45_spill] sm:$0xff] %v6231_v0  ;;  %v1328_v55 = vrot.slane %v1327_v29, 1  ;;  %v1338_v61 = vrot.slane %v1337_v17, 4  ;;  %v6234_v53 = vpop.f32.mrb[27].mxu1  ;;  %v1322_v25 = vmax.f32 %v1320_v21, %v1321_v42 }
 0x162   :  { %8419 = vst [vmem:[#allocation43_spill] sm:$0xff] %v6223_v11  ;;  %5373 = vrcp.f32 %v1600_v41  ;;  %v6229_v46 = vpop.f32.mrb[55].mxu0  ;;  %8422 = vst [vmem:[#allocation46_spill] sm:$0xff] %v6234_v53  ;;  %v2901_v11 = vrot.slane %v6082_v4, 4  ;;  %v1611_v30 = vrot.slane %v1610_v49, 2  ;;  %v6237_v41 = vpop.f32.mrb[28].mxu1  ;;  %v6240_v39 = vunpack.c.l.bf16 %v2899_v27 }
 0x163   :  { %8423 = vst [vmem:[#allocation47_spill] sm:$0xff] %v6237_v41  ;;  %v1616_v16 = vrot.slane %v1615_v2, 4  ;;  %v6243_v0 = vpop.f32.mrb[29].mxu1  ;;  %8425 = vst [vmem:[#allocation49_spill] sm:$0xff] %v6245_v63  ;;  %v1607_v10 = vadd.f32 %v1606_v62, %v1605_v23  ;;  %v1334_v59 = vmax.f32 %v1332_v44, %v1333_v37  ;;  %v1339_v53 = vmax.f32 %v1337_v17, %v1338_v61 }
 0x164   :  { %8424 = vst [vmem:[#allocation48_spill] sm:$0xff] %v6240_v39  ;;  %v6247_v14 = vpop.f32.mrb[30].mxu1  ;;  %v2902_v21 = vrot.slane %v6085_v35, 4  ;;  %v1540_v42 = vmul.f32 1.442695, %v1503_v1  ;;  %v1329_v41 = vmax.f32 %v1327_v29, %v1328_v55  ;;  %v1344_v27 = vsel %vm1273_vm4, %v6215_v31, -inf }
 0x165   :  { %v6254_v60 = vpop.f32.mrb[31].mxu1  ;;  %v6257_v40 = vunpack.c.l.bf16 %v2901_v11  ;;  %v1612_v23 = vadd.f32 %v1611_v30, %v1610_v49  ;;  %v1504_v44 = vsub.f32 %v6148_v22, %v1322_v25  ;;  %v6262_v62 = vpop.eup %5371  ;;  %v2903_v37 = vrot.slane %v6089_v24, 4 }
 0x166   :  { %v2904_v1 = vrot.slane %v6092_v8, 4  ;;  %v1617_v55 = vadd.f32 %v1616_v16, %v1615_v2  ;;  %5375 = vrcp.f32 %v1607_v10  ;;  %v1335_v15 = vrot.slane %v1334_v59, 1  ;;  %v6275_v29 = vpop.f32.mrb[32].mxu1 }
 0x167   :  { %v6252_v6 = vpop.f32.mrb[56].mxu0  ;;  %8427 = vst [vmem:[#allocation51_spill] sm:$0xff] %v6257_v40  ;;  %v1340_v11 = vrot.slane %v1339_v53, 2  ;;  %v1345_v40 = vrot.slane %v1344_v27, 4  ;;  %v6271_v22 = vunpack.c.l.bf16 %v2902_v21  ;;  %5377 = vpow2.f32 %v1540_v42  ;;  %v6280_v63 = vpop.f32.mrb[33].mxu1 }
 0x168   :  { %8426 = vst [vmem:[#allocation50_spill] sm:$0xff] %v6252_v6  ;;  %v6260_v17 = vpop.f32.mrb[57].mxu0  ;;  %v1505_v25 = vsub.f32 %v6156_v45, %v1329_v41  ;;  %v2905_v16 = vrot.slane %v6096_v32, 4  ;;  %v1613_v2 = vrot.slane %v1612_v23, 1  ;;  %v1622_v10 = vsel %vm1273_vm4, %v6262_v62, 0.0 }
 0x169   :  { %v6267_v61 = vpop.f32.mrb[58].mxu0  ;;  %8429 = vst [vmem:[#allocation53_spill] sm:$0xff] %v6271_v22  ;;  %v1542_v4 = vmul.f32 1.442695, %v1504_v44  ;;  %v6282_v39 = vunpack.c.l.bf16 %v2903_v37  ;;  %v1618_v30 = vrot.slane %v1617_v55, 2  ;;  %v6288_v45 = vunpack.c.l.bf16 %v2904_v1 }
 0x16a   :  { %8428 = vst [vmem:[#allocation52_spill] sm:$0xff] %v6267_v61  ;;  %v6269_v49 = vpop.f32.mrb[59].mxu0  ;;  %v1336_v41 = vmax.f32 %v1334_v59, %v1335_v15  ;;  %v1341_v24 = vmax.f32 %v1339_v53, %v1340_v11  ;;  %v1346_v22 = vmax.f32 %v1344_v27, %v1345_v40  ;;  %v2906_v61 = vrot.slane %v6098_v36, 4 }
 0x16b   :  { %8430 = vst [vmem:[#allocation54_spill] sm:$0xff] %v6282_v39  ;;  %8431 = vst [vmem:[#allocation55_spill] sm:$0xff] %v6288_v45  ;;  %v1623_v44 = vrot.slane %v1622_v10, 4  ;;  %v1544_v6 = vmul.f32 1.442695, %v1505_v25  ;;  %v6296_v21 = vunpack.c.l.bf16 %v2905_v16  ;;  %5379 = vpow2.f32 %v1542_v4 }
 0x16c   :  { %v5374_v35 = vpop.eup %5373  ;;  %v2908_v53 = vrot.slane %v6102_v48, 4  ;;  %v2909_v27 = vrot.slane %v6104_v43, 4  ;;  %v1619_v40 = vadd.f32 %v1618_v30, %v1617_v55  ;;  %v1506_v11 = vsub.f32 %v6183_v12, %v1336_v41  ;;  %v6329_v48 = vpop.f32.mrb[34].mxu1 }
 0x16d   :  { %v6286_v42 = vmul.f32 %v5374_v35, %v6160_v52  ;;  %8432 = vst [vmem:[#allocation56_spill] sm:$0xff] %v6296_v21  ;;  %v2907_v35 = vrot.slane %v6100_v33, 4  ;;  %v1614_v52 = vadd.f32 %v1613_v2, %v1612_v23  ;;  %v1342_v25 = vrot.slane %v1341_v24, 1 }
 0x16e   :  { %v1347_v16 = vrot.slane %v1346_v22, 2  ;;  %v1351_v51 = vsel %vm1273_vm4, %v6229_v46, -inf  ;;  %v6311_v4 = vunpack.c.l.bf16 %v2906_v61  ;;  %v1624_v59 = vadd.f32 %v1623_v44, %v1622_v10  ;;  %v6339_v10 = vpop.f32.mrb[35].mxu1 }
 0x16f   :  { %3462 = vperm.xlu1 %5181, %v6286_v42   ;;  %2428 = vperm.xlu0 %5179, %v6286_v42   ;;  %v6294_v37 = vpop.f32.mrb[60].mxu0  ;;  %5381 = vpow2.f32 %v1544_v6  ;;  %v8318_v36 = vmov 4   ;;  %v8320_v55 = vmov 1   ;;  %v6316_v30 = vunpack.c.l.bf16 %v2907_v35 }
 0x170   :  { %v6299_v15 = vpop.f32.mrb[61].mxu0  ;;  %8434 = vst [vmem:[#allocation58_spill] sm:$0xff] %v6311_v4  ;;  %v5376_v12 = vpop.eup %5375  ;;  %v2910_v21 = vrot.slane %v6106_v56, 4  ;;  %5383 = vrcp.f32 %v1614_v52  ;;  %v6324_v6 = vunpack.c.l.bf16 %v2908_v53  ;;  %v1620_v44 = vrot.slane %v1619_v40, 1 }
 0x171   :  { %v6304_v1 = vpop.f32.mrb[62].mxu0  ;;  %8435 = vst [vmem:[#allocation59_spill] sm:$0xff] %v6316_v30  ;;  %v6322_v61 = vpop.eup %5377  ;;  %v1352_v2 = vrot.slane %v1351_v51, 4  ;;  %v1546_v35 = vmul.f32 1.442695, %v1506_v11  ;;  %v1348_v41 = vmax.f32 %v1346_v22, %v1347_v16  ;;  %v2911_v52 = vrot.slane %v6108_v54, 4 }
 0x172   :  { %v6309_v23 = vpop.f32.mrb[63].mxu0  ;;  %8436 = vst [vmem:[#allocation60_spill] sm:$0xff] %v6324_v6  ;;  %v1625_v30 = vrot.slane %v1624_v59, 2  ;;  %v6333_v33 = vmul.f32 %v5376_v12, %v6168_v9  ;;  %v1358_v53 = vsel %vm1273_vm4, %v6260_v17, -inf  ;;  %v6342_v11 = vunpack.c.l.bf16 %v2910_v21 }
 0x173   :  { %8433 = vst [vmem:[#allocation57_spill] sm:$0xff] %v6309_v23  ;;  %5183 = vset.pattern.permute.xlu1 %v8318_v36  ;;  %5180 = vset.pattern.permute.xlu0 %v8320_v55  ;;  %v6327_v36 = vunpack.c.l.bf16 %v2909_v27  ;;  %v1343_v55 = vmax.f32 %v1341_v24, %v1342_v25  ;;  %v2912_v24 = vrot.slane %v6110_v19, 4  ;;  %v1629_v22 = vsel %vm1273_vm4, %v6322_v61, 0.0 }
 0x174   :  { %4458 = vperm.xlu1 %5183, %v6286_v42   ;;  %2996 = vperm.xlu0 %5180, %v6286_v42   ;;  %8439 = vst [vmem:[#allocation63_spill] sm:$0xff] %v6342_v11  ;;  %v8440_v25 = vmov 1   ;;  %v8326_v9 = vmov 3   ;;  %v1621_v43 = vadd.f32 %v1620_v44, %v1619_v40  ;;  %v1353_v21 = vmax.f32 %v1351_v51, %v1352_v2 }
 0x175   :  { %8437 = vst [vmem:[#allocation61_spill] sm:$0xff] %v6327_v36  ;;  %v2913_v36 = vrot.slane %v6112_v20, 4  ;;  %v6357_v56 = vpop.eup %5379  ;;  %5385 = vpow2.f32 %v1546_v35  ;;  %v1507_v11 = vsub.f32 %v6193_v50, %v1343_v55  ;;  %v1359_v4 = vrot.slane %v1358_v53, 4 }
 0x176   :  { %v6362_v12 = vunpack.c.l.bf16 %v2911_v52  ;;  %v2914_v40 = vrot.slane %v6114_v47, 4  ;;  %v1626_v44 = vadd.f32 %v1625_v30, %v1624_v59  ;;  %v5071_v51 = vpack.c.bf16 %v6116_v26, %v6116_v26 }
 0x177   :  { %v6337_v6 = vpop.f32.mrb[64].mxu0  ;;  %v6367_v2 = vunpack.c.l.bf16 %v2912_v24  ;;  %v1636_v55 = vsel %vm1273_vm4, %v6357_v56, 0.0  ;;  %v8445_v52 = vmov 0   ;;  %v1354_v59 = vrot.slane %v1353_v21, 2 }
 0x178   :  { %8438 = vst [vmem:[#allocation62_spill] sm:$0xff] %v6337_v6  ;;  %5185 = vset.pattern.permute.xlu1 %v8440_v25  ;;  %5182 = vset.pattern.permute.xlu0 %v8326_v9  ;;  %v6349_v16 = vpop.f32.mrb[65].mxu0  ;;  %v1349_v9 = vrot.slane %v1348_v41, 1  ;;  %8442 = vst [vmem:[#allocation65_spill] sm:$0xff] %v6362_v12  ;;  %v8446_v12 = vmov 3   ;;  %v6377_v30 = vunpack.c.l.bf16 %v2913_v36  ;;  %5387 = vrcp.f32 %v1621_v43  ;;  %v8469_v6 = vld [vmem:[#allocation34_spill] sm:$0xff] }
 0x179   :  { %3992 = vperm.xlu0 %5182, %v6286_v42   ;;  %3000 = vperm.xlu1 %5185, %v6333_v33   ;;  %v6355_v27 = vpop.f32.mrb[66].mxu0  ;;  %v1630_v42 = vrot.slane %v1629_v22, 4  ;;  %8443 = vst [vmem:[#allocation66_spill] sm:$0xff] %v6367_v2  ;;  %v6371_v50 = vpop.eup %5381  ;;  %v1548_v35 = vmul.f32 1.442695, %v1507_v11  ;;  %v1360_v19 = vmax.f32 %v1358_v53, %v1359_v4  ;;  %v5074_v20 = vpack.c.bf16 %v6119_v3, %v6119_v3 }
 0x17a   :  { %8441 = vst [vmem:[#allocation64_spill] sm:$0xff] %v6355_v27  ;;  %v6360_v8 = vpop.f32.mrb[67].mxu0  ;;  %8444 = vst [vmem:[#allocation67_spill] sm:$0xff] %v6371_v50  ;;  %v5384_v24 = vpop.eup %5383  ;;  %v1350_v54 = vmax.f32 %v1348_v41, %v1349_v9  ;;  %v1627_v2 = vrot.slane %v1626_v44, 1  ;;  %v6386_v36 = vunpack.c.l.bf16 %v2914_v40  ;;  %v5077_v43 = vpack.c.bf16 %v6122_v18, %v6122_v18 }
 0x17b   :  { %8447 = vst [vmem:[#allocation68_spill] sm:$0xff] %v6377_v30  ;;  %v1631_v32 = vadd.f32 %v1630_v42, %v1629_v22  ;;  %v6388_v30 = vunpack.c.l.bf16 %v5071_v51  ;;  %v5080_v26 = vpack.c.bf16 %v6125_v34, %v6125_v34  ;;  %v1637_v11 = vrot.slane %v1636_v55, 4 }
 0x17c   :  { %8449 = vst [vmem:[#allocation70_spill] sm:$0xff] %v6386_v36  ;;  %v5083_v3 = vpack.c.bf16 %v6128_v38, %v6128_v38  ;;  %v1643_v4 = vsel %vm1273_vm4, %v6371_v50, 0.0  ;;  %v6401_v53 = vmul.f32 %v5384_v24, %v6199_v5  ;;  %v1355_v22 = vmax.f32 %v1353_v21, %v1354_v59 }
 0x17d   :  { %5184 = vset.pattern.permute.xlu0 %v8445_v52  ;;  %5187 = vset.pattern.permute.xlu1 %v8446_v12  ;;  %8450 = vst [vmem:[#allocation71_spill] sm:$0xff] %v6388_v30  ;;  %5389 = vpow2.f32 %v1548_v35  ;;  %v8452_v18 = vmov 2   ;;  %v1508_v34 = vsub.f32 %v6215_v31, %v1350_v54  ;;  %v1361_v40 = vrot.slane %v1360_v19, 2 }
 0x17e   :  { %3996 = vperm.xlu1 %5187, %v6333_v33   ;;  %2433 = vperm.xlu0 %5184, %v6333_v33   ;;  %v1365_v38 = vsel %vm1273_vm4, %v6269_v49, -inf  ;;  %v6412_v51 = vunpack.c.l.bf16 %v5074_v20  ;;  %v1628_v5 = vadd.f32 %v1627_v2, %v1626_v44  ;;  %v1632_v24 = vrot.slane %v1631_v32, 2 }
 0x17f   :  { %v6384_v39 = vpop.f32.mrb[68].mxu0  ;;  %v1372_v21 = vsel %vm1273_vm4, %v6299_v15, -inf  ;;  %v6418_v35 = vpop.eup %5385  ;;  %v6420_v54 = vunpack.c.l.bf16 %v5077_v43  ;;  %v5086_v31 = vpack.c.bf16 %v6134_v58, %v6134_v58  ;;  %v1638_v59 = vadd.f32 %v1637_v11, %v1636_v55 }
 0x180   :  { %8448 = vst [vmem:[#allocation69_spill] sm:$0xff] %v6384_v39  ;;  %v6394_v41 = vpop.f32.mrb[69].mxu0  ;;  %8453 = vst [vmem:[#allocation73_spill] sm:$0xff] %v6412_v51  ;;  %v1644_v47 = vrot.slane %v1643_v4, 4  ;;  %v6424_v20 = vunpack.c.l.bf16 %v5080_v26  ;;  %v1356_v44 = vrot.slane %v1355_v22, 1  ;;  %v1366_v2 = vrot.slane %v1365_v38, 4 }
 0x181   :  { %v6403_v9 = vpop.f32.mrb[70].mxu0  ;;  %8454 = vst [vmem:[#allocation74_spill] sm:$0xff] %v6418_v35  ;;  %8455 = vst [vmem:[#allocation75_spill] sm:$0xff] %v6420_v54  ;;  %v6428_v36 = vpack.c.bf16 %v6166_v7, %v6162_v57  ;;  %v6430_v45 = vunpack.c.l.bf16 %v5083_v3  ;;  %v1550_v51 = vmul.f32 1.442695, %v1508_v34  ;;  %v1362_v30 = vmax.f32 %v1360_v19, %v1361_v40  ;;  %v6440_v57 = vpop.f32.mrb[36].mxu1 }
 0x182   :  { %8451 = vst [vmem:[#allocation72_spill] sm:$0xff] %v6403_v9  ;;  %5189 = vset.pattern.permute.xlu1 %v8445_v52  ;;  %5186 = vset.pattern.permute.xlu0 %v8452_v18  ;;  %v6410_v42 = vpop.f32.mrb[71].mxu0  ;;  %8456 = vst [vmem:[#allocation76_spill] sm:$0xff] %v6424_v20  ;;  %v1373_v9 = vrot.slane %v1372_v21, 4  ;;  %5391 = vrcp.f32 %v1628_v5  ;;  %v1633_v43 = vadd.f32 %v1632_v24, %v1631_v32  ;;  %v1650_v58 = vsel %vm1273_vm4, %v6418_v35, 0.0  ;;  %v5388_v7 = vpop.eup %5387  ;;  %v8463_v5 = vld [vmem:[#allocation25_spill] sm:$0xff] }
 0x183   :  { %3466 = vperm.xlu0 %5186, %v6333_v33   ;;  %2438 = vperm.xlu1 %5189, %v6401_v53   ;;  %8457 = vst [vmem:[#allocation77_spill] sm:$0xff] %v6428_v36  ;;  %8458 = vst [vmem:[#allocation78_spill] sm:$0xff] %v6430_v45  ;;  %v8459_v55 = vmov 4   ;;  %v6438_v26 = vpack.c.bf16 %v6181_v28, %v6172_v13  ;;  %v6442_v11 = vunpack.c.l.bf16 %v5086_v31  ;;  %v1639_v19 = vrot.slane %v1638_v59, 2  ;;  %v6447_v40 = vpop.f32.mrb[37].mxu1  ;;  %v8466_v34 = vld [vmem:[#allocation31_spill] sm:$0xff] }
 0x184   :  { %v1645_v3 = vadd.f32 %v1644_v47, %v1643_v4  ;;  %v5089_v24 = vpack.c.bf16 %v8463_v5, %v8463_v5  ;;  %v1357_v13 = vmax.f32 %v1355_v22, %v1356_v44  ;;  %v1367_v28 = vmax.f32 %v1365_v38, %v1366_v2  ;;  %v6452_v47 = vpop.f32.mrb[38].mxu1  ;;  %v8465_v4 = vld [vmem:[#allocation39_spill] sm:$0xff]  ;;  %v8467_v32 = vld [vmem:[#allocation33_spill] sm:$0xff]  ;;  %v8472_v2 = vld [vmem:[#allocation36_spill] sm:$0xff] }
 0x185   :  { %8460 = vst [vmem:[#allocation79_spill] sm:$0xff] %v6438_v26  ;;  %8461 = vst [vmem:[#allocation80_spill] sm:$0xff] %v6442_v11  ;;  %v1651_v54 = vrot.slane %v1650_v58, 4  ;;  %5393 = vpow2.f32 %v1550_v51  ;;  %v1363_v31 = vrot.slane %v1362_v30, 1  ;;  %v1374_v11 = vmax.f32 %v1372_v21, %v1373_v9  ;;  %v8470_v5 = vld [vmem:[#allocation35_spill] sm:$0xff]  ;;  %v6465_v38 = vpop.f32.mrb[39].mxu1 }
 0x186   :  { %v6455_v39 = vmul.f32 %v5388_v7, %v8465_v4  ;;  %v6459_v27 = vpack.c.bf16 %v8467_v32, %v8466_v34  ;;  %v6463_v22 = vpack.c.bf16 %v8470_v5, %v8469_v6  ;;  %v1640_v51 = vadd.f32 %v1639_v19, %v1638_v59  ;;  %v8473_v7 = vld [vmem:[#allocation37_spill] sm:$0xff]  ;;  %v8475_v34 = vld [vmem:[#allocation26_spill] sm:$0xff] }
 0x187   :  { %5188 = vset.pattern.permute.xlu0 %v8459_v55  ;;  %5190 = vset.pattern.permute.xlu1 %v8440_v25  ;;  %v6467_v44 = vpop.eup %5389  ;;  %v1646_v9 = vrot.slane %v1645_v3, 2  ;;  %v1379_v21 = vsel %vm1273_vm4, %v6309_v23, -inf  ;;  %v6475_v32 = vpack.c.bf16 %v8473_v7, %v8472_v2  ;;  %v5092_v6 = vpack.c.bf16 %v8475_v34, %v8475_v34  ;;  %v8476_v4 = vld [vmem:[#allocation38_spill] sm:$0xff]  ;;  %v8477_v5 = vld [vmem:[#allocation41_spill] sm:$0xff] }
 0x188   :  { %4462 = vperm.xlu0 %5188, %v6333_v33   ;;  %3004 = vperm.xlu1 %5190, %v6401_v53   ;;  %v1634_v33 = vrot.slane %v1633_v43, 1  ;;  %8468 = vst [vmem:[#allocation25_spill] sm:$0xff] %v6459_v27  ;;  %8471 = vst [vmem:[#allocation39_spill] sm:$0xff] %v6463_v22  ;;  %v1509_v59 = vsub.f32 %v6229_v46, %v1357_v13  ;;  %v1368_v19 = vrot.slane %v1367_v28, 2  ;;  %v1375_v22 = vrot.slane %v1374_v11, 2 }
 0x189   :  { %8474 = vst [vmem:[#allocation31_spill] sm:$0xff] %v6475_v32  ;;  %v6484_v45 = vpack.c.bf16 %v8477_v5, %v8476_v4  ;;  %v1652_v20 = vadd.f32 %v1651_v54, %v1650_v58  ;;  %v1364_v35 = vmax.f32 %v1362_v30, %v1363_v31  ;;  %v6487_v7 = vunpack.c.l.bf16 %v5089_v24  ;;  %v8481_v32 = vld [vmem:[#allocation29_spill] sm:$0xff]  ;;  %v8484_v24 = vld [vmem:[#allocation42_spill] sm:$0xff]  ;;  %v8485_v31 = vld [vmem:[#allocation44_spill] sm:$0xff] }
 0x18a   :  { %v5095_v34 = vpack.c.bf16 %v8481_v32, %v8481_v32  ;;  %v1657_v26 = vsel %vm1273_vm4, %v6467_v44, 0.0  ;;  %v1380_v50 = vrot.slane %v1379_v21, 4  ;;  %v1635_v46 = vadd.f32 %v1634_v33, %v1633_v43 }
 0x18b   :  { %8478 = vst [vmem:[#allocation33_spill] sm:$0xff] %v6484_v45  ;;  %8480 = vst [vmem:[#allocation34_spill] sm:$0xff] %v6487_v7  ;;  %v1641_v13 = vrot.slane %v1640_v51, 1  ;;  %v1647_v36 = vadd.f32 %v1646_v9, %v1645_v3  ;;  %v6494_v54 = vunpack.c.l.bf16 %v5092_v6  ;;  %v1552_v30 = vmul.f32 1.442695, %v1509_v59  ;;  %v8488_v9 = vld [vmem:[#allocation32_spill] sm:$0xff] }
 0x18c   :  { %5195 = vset.pattern.permute.xlu0 %v8440_v25  ;;  %5191 = vset.pattern.permute.xlu1 %v8452_v18  ;;  %v5392_v5 = vpop.eup %5391  ;;  %v1369_v58 = vmax.f32 %v1367_v28, %v1368_v19  ;;  %v6500_v32 = vpack.c.bf16 %v8485_v31, %v8484_v24  ;;  %v1653_v2 = vrot.slane %v1652_v20, 2  ;;  %v1658_v27 = vrot.slane %v1657_v26, 4  ;;  %v8489_v28 = vld [vmem:[#allocation45_spill] sm:$0xff]  ;;  %v8490_v19 = vld [vmem:[#allocation46_spill] sm:$0xff]  ;;  %v6513_v24 = vpop.f32.mrb[72].mxu0 }
 0x18d   :  { %3470 = vperm.xlu1 %5191, %v6401_v53   ;;  %3008 = vperm.xlu0 %5195, %v6455_v39   ;;  %8483 = vst [vmem:[#allocation35_spill] sm:$0xff] %v6494_v54  ;;  %v1510_v43 = vsub.f32 %v6260_v17, %v1364_v35  ;;  %v1376_v3 = vmax.f32 %v1374_v11, %v1375_v22  ;;  %v6505_v33 = vunpack.c.l.bf16 %v5095_v34  ;;  %5395 = vrcp.f32 %v1635_v46  ;;  %v6520_v35 = vpop.f32.mrb[73].mxu0  ;;  %v8492_v22 = vld [vmem:[#allocation47_spill] sm:$0xff] }
 0x18e   :  { %8486 = vst [vmem:[#allocation36_spill] sm:$0xff] %v6500_v32  ;;  %v5098_v6 = vpack.c.bf16 %v8488_v9, %v8488_v9  ;;  %v1381_v59 = vmax.f32 %v1379_v21, %v1380_v50  ;;  %v6511_v4 = vpack.c.bf16 %v8490_v19, %v8489_v28  ;;  %v1642_v23 = vadd.f32 %v1641_v13, %v1640_v51  ;;  %v6528_v34 = vpop.f32.mrb[74].mxu0  ;;  %v6532_v13 = vpop.f32.mrb[40].mxu1  ;;  %v8497_v28 = vld [vmem:[#allocation43_spill] sm:$0xff] }
 0x18f   :  { %8487 = vst [vmem:[#allocation37_spill] sm:$0xff] %v6505_v33  ;;  %v6515_v31 = vpop.eup %5393  ;;  %v1648_v54 = vrot.slane %v1647_v36, 1  ;;  %v6518_v17 = vmul.f32 %v5392_v5, %v6262_v62  ;;  %5397 = vpow2.f32 %v1552_v30  ;;  %v1370_v11 = vrot.slane %v1369_v58, 1  ;;  %8494 = vst [vmem:[#allocation41_spill] sm:$0xff] %v6528_v34  ;;  %v6534_v5 = vpop.f32.mrb[75].mxu0  ;;  %v8498_v33 = vld [vmem:[#allocation50_spill] sm:$0xff] }
 0x190   :  { %8491 = vst [vmem:[#allocation26_spill] sm:$0xff] %v6511_v4  ;;  %v1386_v50 = vsel %vm1273_vm4, %v6349_v16, -inf  ;;  %v6526_v21 = vpack.c.bf16 %v6243_v0, %v8492_v22  ;;  %v1654_v9 = vadd.f32 %v1653_v2, %v1652_v20  ;;  %v1659_v46 = vadd.f32 %v1658_v27, %v1657_v26  ;;  %v6548_v26 = vpop.f32.mrb[41].mxu1 }
 0x191   :  { %5192 = vset.pattern.permute.xlu1 %v8446_v12  ;;  %5197 = vset.pattern.permute.xlu0 %v8446_v12  ;;  %v1554_v62 = vmul.f32 1.442695, %v1510_v43  ;;  %v1377_v51 = vrot.slane %v1376_v3, 1  ;;  %v1664_v0 = vsel %vm1273_vm4, %v6515_v31, 0.0  ;;  %v1382_v30 = vrot.slane %v1381_v59, 2  ;;  %v8496_v43 = vld [vmem:[#allocation40_spill] sm:$0xff] }
 0x192   :  { %4000 = vperm.xlu1 %5192, %v6401_v53   ;;  %4004 = vperm.xlu0 %5197, %v6455_v39   ;;  %8493 = vst [vmem:[#allocation38_spill] sm:$0xff] %v6526_v21  ;;  %v6542_v27 = vpack.c.bf16 %v6254_v60, %v6247_v14  ;;  %v6546_v20 = vpack.c.bf16 %v6280_v63, %v6275_v29  ;;  %v1387_v22 = vrot.slane %v1386_v50, 4  ;;  %5399 = vrcp.f32 %v1642_v23  ;;  %v8499_v29 = vld [vmem:[#allocation52_spill] sm:$0xff] }
 0x193   :  { %v1649_v2 = vadd.f32 %v1648_v54, %v1647_v36  ;;  %v5104_v19 = vpack.c.bf16 %v8497_v28, %v8497_v28  ;;  %v5107_v7 = vpack.c.bf16 %v8498_v33, %v8498_v33  ;;  %v1371_v14 = vmax.f32 %v1369_v58, %v1370_v11 }
 0x194   :  { %8495 = vst [vmem:[#allocation29_spill] sm:$0xff] %v6542_v27  ;;  %v1393_v60 = vsel %vm1273_vm4, %v6360_v8, -inf  ;;  %v1665_v63 = vrot.slane %v1664_v0, 4  ;;  %5401 = vpow2.f32 %v1554_v62  ;;  %v5110_v36 = vpack.c.bf16 %v8499_v29, %v8499_v29 }
 0x195   :  { %v1378_v54 = vmax.f32 %v1376_v3, %v1377_v51  ;;  %v1655_v34 = vrot.slane %v1654_v9, 1  ;;  %v1383_v23 = vmax.f32 %v1381_v59, %v1382_v30  ;;  %v6564_v33 = vpack.c.bf16 %v6339_v10, %v6329_v48 }
 0x196   :  { %5193 = vset.pattern.permute.xlu1 %v8459_v55  ;;  %5199 = vset.pattern.permute.xlu0 %v8445_v52  ;;  %5403 = vrcp.f32 %v1649_v2  ;;  %v5113_v58 = vpack.c.bf16 %v6294_v37, %v6294_v37  ;;  %v1388_v3 = vmax.f32 %v1386_v50, %v1387_v22  ;;  %v1394_v11 = vrot.slane %v1393_v60, 4 }
 0x197   :  { %4466 = vperm.xlu1 %5193, %v6401_v53   ;;  %2448 = vperm.xlu0 %5199, %v6518_v17   ;;  %v5101_v53 = vpack.c.bf16 %v8496_v43, %v8496_v43  ;;  %v1660_v43 = vrot.slane %v1659_v46, 2  ;;  %8500 = vst [vmem:[#allocation42_spill] sm:$0xff] %v6564_v33  ;;  %v6570_v62 = vunpack.c.l.bf16 %v5098_v6  ;;  %v1511_v59 = vsub.f32 %v6269_v49, %v1371_v14  ;;  %v5396_v10 = vpop.eup %5395 }
 0x198   :  { %v5116_v48 = vpack.c.bf16 %v6304_v1, %v6304_v1  ;;  %v1666_v30 = vadd.f32 %v1665_v63, %v1664_v0  ;;  %v6577_v2 = vunpack.c.l.bf16 %v5104_v19  ;;  %v6579_v28 = vunpack.c.l.bf16 %v5107_v7 }
 0x199   :  { %8501 = vst [vmem:[#allocation44_spill] sm:$0xff] %v6570_v62  ;;  %v6572_v51 = vunpack.c.l.bf16 %v5101_v53  ;;  %v1512_v29 = vsub.f32 %v6299_v15, %v1378_v54  ;;  %v6582_v37 = vpop.eup %5397  ;;  %v1656_v50 = vadd.f32 %v1655_v34, %v1654_v9  ;;  %v1661_v6 = vadd.f32 %v1660_v43, %v1659_v46 }
 0x19a   :  { %8503 = vst [vmem:[#allocation45_spill] sm:$0xff] %v6577_v2  ;;  %8504 = vst [vmem:[#allocation46_spill] sm:$0xff] %v6579_v28  ;;  %v6584_v22 = vunpack.c.l.bf16 %v5110_v36  ;;  %v1384_v53 = vrot.slane %v1383_v23, 1  ;;  %v6588_v49 = vunpack.c.l.bf16 %v5113_v58  ;;  %v1389_v1 = vrot.slane %v1388_v3, 2 }
 0x19b   :  { %5194 = vset.pattern.permute.xlu1 %v8445_v52  ;;  %5201 = vset.pattern.permute.xlu0 %v8452_v18  ;;  %8502 = vst [vmem:[#allocation32_spill] sm:$0xff] %v6572_v51  ;;  %v1395_v0 = vmax.f32 %v1393_v60, %v1394_v11  ;;  %v1400_v7 = vsel %vm1273_vm4, %v6394_v41, -inf  ;;  %v6595_v15 = vmul.f32 %v5396_v10, %v6322_v61  ;;  %v1556_v34 = vmul.f32 1.442695, %v1511_v59  ;;  %v6604_v61 = vpop.f32.mrb[42].mxu1 }
 0x19c   :  { %2443 = vperm.xlu1 %5194, %v6455_v39   ;;  %3478 = vperm.xlu0 %5201, %v6518_v17   ;;  %8505 = vst [vmem:[#allocation47_spill] sm:$0xff] %v6584_v22  ;;  %8506 = vst [vmem:[#allocation40_spill] sm:$0xff] %v6588_v49  ;;  %v6597_v9 = vunpack.c.l.bf16 %v5116_v48  ;;  %v1667_v14 = vrot.slane %v1666_v30, 2  ;;  %v1671_v63 = vsel %vm1273_vm4, %v6582_v37, 0.0  ;;  %v1558_v60 = vmul.f32 1.442695, %v1512_v29  ;;  %v5400_v54 = vpop.eup %5399 }
 0x19d   :  { %v1401_v36 = vrot.slane %v1400_v7, 4  ;;  %5405 = vrcp.f32 %v1656_v50  ;;  %v1662_v43 = vrot.slane %v1661_v6, 1  ;;  %v1385_v58 = vmax.f32 %v1383_v23, %v1384_v53  ;;  %v947_v46 = vpop.f32.mrb[43].mxu1 }
 0x19e   :  { %8507 = vst [vmem:[#allocation43_spill] sm:$0xff] %v6597_v9  ;;  %v1407_v11 = vsel %vm1273_vm4, %v6410_v42, -inf  ;;  %v6606_v59 = vpop.eup %5401  ;;  %v1390_v48 = vmax.f32 %v1388_v3, %v1389_v1  ;;  %v1396_v10 = vrot.slane %v1395_v0, 2  ;;  %v1672_v22 = vrot.slane %v1671_v63, 4 }
 0x19f   :  { %v1402_v19 = vmax.f32 %v1400_v7, %v1401_v36  ;;  %v1408_v9 = vrot.slane %v1407_v11, 4  ;;  %5407 = vpow2.f32 %v1556_v34  ;;  %v6612_v23 = vpack.c.bf16 %v6447_v40, %v6440_v57  ;;  %v8510_v40 = vld [vmem:[#allocation57_spill] sm:$0xff] }
 0x1a0   :  { %5196 = vset.pattern.permute.xlu1 %v8452_v18  ;;  %5203 = vset.pattern.permute.xlu0 %v8459_v55  ;;  %v6616_v29 = vpack.c.bf16 %v6465_v38, %v6452_v47  ;;  %v5404_v50 = vpop.eup %5403  ;;  %v1668_v3 = vadd.f32 %v1667_v14, %v1666_v30  ;;  %5409 = vpow2.f32 %v1558_v60  ;;  %v6621_v7 = vmul.f32 %v5400_v54, %v6357_v56  ;;  %v8513_v60 = vld [vmem:[#allocation67_spill] sm:$0xff]  ;;  %v951_v47 = vpop.f32.mrb[44].mxu1 }
 0x1a1   :  { %3474 = vperm.xlu1 %5196, %v6455_v39   ;;  %4474 = vperm.xlu0 %5203, %v6518_v17   ;;  %v1403_v53 = vrot.slane %v1402_v19, 2  ;;  %v1409_v1 = vmax.f32 %v1407_v11, %v1408_v9  ;;  %v1678_v57 = vsel %vm1273_vm4, %v6606_v59, 0.0  ;;  %v1513_v34 = vsub.f32 %v8510_v40, %v1385_v58  ;;  %v953_v36 = vpop.f32.mrb[45].mxu1 }
 0x1a2   :  { %8509 = vst [vmem:[#allocation50_spill] sm:$0xff] %v6616_v29  ;;  %v1391_v30 = vrot.slane %v1390_v48, 1  ;;  %v1397_v14 = vmax.f32 %v1395_v0, %v1396_v10  ;;  %v1663_v2 = vadd.f32 %v1662_v43, %v1661_v6  ;;  %v1673_v28 = vadd.f32 %v1672_v22, %v1671_v63 }
 0x1a3   :  { %v6629_v62 = vmul.f32 %v5404_v50, %v8513_v60  ;;  %v1414_v56 = vsel %vm1273_vm4, %v6520_v35, -inf  ;;  %v1669_v9 = vrot.slane %v1668_v3, 1  ;;  %v1679_v54 = vrot.slane %v1678_v57, 4  ;;  %v6643_v60 = vpop.f32.mrb[76].mxu0 }
 0x1a4   :  { %v1404_v58 = vmax.f32 %v1402_v19, %v1403_v53  ;;  %v1415_v11 = vrot.slane %v1414_v56, 4  ;;  %v1560_v6 = vmul.f32 1.442695, %v1513_v34  ;;  %v1421_v0 = vsel %vm1273_vm4, %v6534_v5, -inf  ;;  %8514 = vst [vmem:[#allocation52_spill] sm:$0xff] %v6643_v60 }
 0x1a5   :  { %5198 = vset.pattern.permute.xlu1 %v8459_v55  ;;  %5205 = vset.pattern.permute.xlu0 %v8440_v25  ;;  %v6641_v63 = vpack.c.bf16 %v6548_v26, %v6532_v13  ;;  %v1392_v43 = vmax.f32 %v1390_v48, %v1391_v30  ;;  %v1398_v10 = vrot.slane %v1397_v14, 1  ;;  %v1422_v40 = vrot.slane %v1421_v0, 4 }
 0x1a6   :  { %4470 = vperm.xlu1 %5198, %v6455_v39   ;;  %3016 = vperm.xlu0 %5205, %v6595_v15   ;;  %v1410_v39 = vrot.slane %v1409_v1, 2  ;;  %v1416_v50 = vmax.f32 %v1414_v56, %v1415_v11  ;;  %5411 = vrcp.f32 %v1663_v2  ;;  %v1674_v53 = vrot.slane %v1673_v28, 2 }
 0x1a7   :  { %v5406_v19 = vpop.eup %5405  ;;  %v1680_v38 = vadd.f32 %v1679_v54, %v1678_v57  ;;  %v1405_v13 = vrot.slane %v1404_v58, 1  ;;  %v1670_v56 = vadd.f32 %v1669_v9, %v1668_v3  ;;  %v1423_v11 = vmax.f32 %v1421_v0, %v1422_v40  ;;  %v8520_v0 = vld [vmem:[#allocation74_spill] sm:$0xff] }
 0x1a8   :  { %v1411_v22 = vmax.f32 %v1409_v1, %v1410_v39  ;;  %v6647_v39 = vpop.f32.mrb[77].mxu0  ;;  %v1417_v26 = vrot.slane %v1416_v50, 2  ;;  %v6657_v1 = vpack.c.bf16 %v947_v46, %v6604_v61  ;;  %5413 = vpow2.f32 %v1560_v6 }
 0x1a9   :  { %v6650_v48 = vpop.f32.mrb[78].mxu0  ;;  %v6652_v30 = vpop.eup %5407  ;;  %v1514_v3 = vsub.f32 %v6349_v16, %v1392_v43  ;;  %v1399_v9 = vmax.f32 %v1397_v14, %v1398_v10  ;;  %v1675_v34 = vadd.f32 %v1674_v53, %v1673_v28  ;;  %v6667_v40 = vmul.f32 %v5406_v19, %v8520_v0 }
 0x1aa   :  { %5200 = vset.pattern.permute.xlu1 %v8440_v25  ;;  %5207 = vset.pattern.permute.xlu0 %v8446_v12  ;;  %8518 = vst [vmem:[#allocation57_spill] sm:$0xff] %v6650_v48  ;;  %v1412_v2 = vrot.slane %v1411_v22, 1  ;;  %8519 = vst [vmem:[#allocation67_spill] sm:$0xff] %v6657_v1  ;;  %v6659_v57 = vpop.f32.mrb[79].mxu0  ;;  %v6661_v54 = vpop.eup %5409  ;;  %v1418_v51 = vmax.f32 %v1416_v50, %v1417_v26  ;;  %v1424_v49 = vrot.slane %v1423_v11, 2  ;;  %v1681_v48 = vrot.slane %v1680_v38, 2 }
 0x1ab   :  { %3012 = vperm.xlu1 %5200, %v6518_v17   ;;  %4012 = vperm.xlu0 %5207, %v6595_v15   ;;  %v1685_v60 = vsel %vm1273_vm4, %v6652_v30, 0.0  ;;  %v1692_v6 = vsel %vm1273_vm4, %v6661_v54, 0.0  ;;  %v1562_v28 = vmul.f32 1.442695, %v1514_v3  ;;  %v1515_v10 = vsub.f32 %v6360_v8, %v1399_v9 }
 0x1ac   :  { %v1419_v1 = vrot.slane %v1418_v51, 1  ;;  %v1413_v14 = vmax.f32 %v1411_v22, %v1412_v2  ;;  %v1425_v43 = vmax.f32 %v1423_v11, %v1424_v49  ;;  %v1428_v50 = vsel %vm1273_vm4, %v6647_v39, -inf }
 0x1ad   :  { %v1676_v19 = vrot.slane %v1675_v34, 1  ;;  %v1686_v53 = vrot.slane %v1685_v60, 4  ;;  %v1429_v2 = vrot.slane %v1428_v50, 4  ;;  %v1693_v3 = vrot.slane %v1692_v6, 4 }
 0x1ae   :  { %v1420_v49 = vmax.f32 %v1418_v51, %v1419_v1  ;;  %v1426_v22 = vrot.slane %v1425_v43, 1  ;;  %v1517_v9 = vsub.f32 %v6410_v42, %v1413_v14  ;;  %v6688_v61 = vpack.c.bf16 %v953_v36, %v951_v47 }
 0x1af   :  { %5202 = vset.pattern.permute.xlu1 %v8446_v12  ;;  %5209 = vset.pattern.permute.xlu0 %v8445_v52  ;;  %5415 = vpow2.f32 %v1562_v28  ;;  %v1564_v16 = vmul.f32 1.442695, %v1515_v10  ;;  %v1430_v45 = vmax.f32 %v1428_v50, %v1429_v2  ;;  %v1677_v51 = vadd.f32 %v1676_v19, %v1675_v34  ;;  %v8522_v34 = vld [vmem:[#allocation62_spill] sm:$0xff]  ;;  %v955_v50 = vpop.f32.mrb[46].mxu1 }
 0x1b0   :  { %4008 = vperm.xlu1 %5202, %v6518_v17   ;;  %2458 = vperm.xlu0 %5209, %v6621_v7   ;;  %v1406_v17 = vmax.f32 %v1404_v58, %v1405_v13  ;;  %v1435_v58 = vsel %vm1273_vm4, %v6659_v57, -inf  ;;  %v1682_v13 = vadd.f32 %v1681_v48, %v1680_v38  ;;  %v6685_v8 = vpop.eup %5411  ;;  %v1427_v0 = vmax.f32 %v1425_v43, %v1426_v22 }
 0x1b1   :  { %v1436_v11 = vrot.slane %v1435_v58, 4  ;;  %5417 = vrcp.f32 %v1670_v56  ;;  %v1687_v1 = vadd.f32 %v1686_v53, %v1685_v60  ;;  %v1431_v47 = vrot.slane %v1430_v45, 2  ;;  %v957_v53 = vpop.f32.mrb[47].mxu1 }
 0x1b2   :  { %v1516_v26 = vsub.f32 %v6394_v41, %v1406_v17  ;;  %v1518_v41 = vsub.f32 %v6520_v35, %v1420_v49  ;;  %v6693_v38 = vpop.eup %5413  ;;  %v1519_v36 = vsub.f32 %v6534_v5, %v1427_v0  ;;  %v1683_v56 = vrot.slane %v1682_v13, 1  ;;  %v8523_v17 = vld [vmem:[#allocation64_spill] sm:$0xff] }
 0x1b3   :  { %v1437_v46 = vmax.f32 %v1435_v58, %v1436_v11  ;;  %v5119_v60 = vpack.c.bf16 %v8522_v34, %v8522_v34  ;;  %v5122_v14 = vpack.c.bf16 %v8523_v17, %v8523_v17  ;;  %v1568_v43 = vmul.f32 1.442695, %v1517_v9  ;;  %v6713_v9 = vpop.f32.mrb[80].mxu0 }
 0x1b4   :  { %5204 = vset.pattern.permute.xlu1 %v8445_v52  ;;  %5211 = vset.pattern.permute.xlu0 %v8452_v18  ;;  %v1566_v42 = vmul.f32 1.442695, %v1516_v26  ;;  %v1694_v35 = vadd.f32 %v1693_v3, %v1692_v6  ;;  %5419 = vpow2.f32 %v1564_v16  ;;  %v1432_v28 = vmax.f32 %v1430_v45, %v1431_v47 }
 0x1b5   :  { %2453 = vperm.xlu1 %5204, %v6595_v15   ;;  %3486 = vperm.xlu0 %5211, %v6621_v7   ;;  %v1438_v48 = vrot.slane %v1437_v46, 2  ;;  %5421 = vrcp.f32 %v1677_v51  ;;  %v1688_v58 = vrot.slane %v1687_v1, 2  ;;  %v1699_v5 = vsel %vm1273_vm4, %v6693_v38, 0.0 }
 0x1b6   :  { %v1570_v19 = vmul.f32 1.442695, %v1518_v41  ;;  %5423 = vpow2.f32 %v1566_v42  ;;  %v1572_v49 = vmul.f32 1.442695, %v1519_v36  ;;  %v1433_v22 = vrot.slane %v1432_v28, 1  ;;  %v6718_v41 = vpop.f32.mrb[81].mxu0 }
 0x1b7   :  { %v1439_v10 = vmax.f32 %v1437_v46, %v1438_v48  ;;  %v6708_v45 = vunpack.c.l.bf16 %v5119_v60  ;;  %5425 = vpow2.f32 %v1568_v43  ;;  %v6711_v6 = vpack.c.bf16 %v957_v53, %v955_v50  ;;  %v6724_v48 = vpop.f32.mrb[82].mxu0 }
 0x1b8   :  { %v1684_v16 = vadd.f32 %v1683_v56, %v1682_v13  ;;  %v1695_v2 = vrot.slane %v1694_v35, 2  ;;  %v1434_v11 = vmax.f32 %v1432_v28, %v1433_v22  ;;  %v1700_v0 = vrot.slane %v1699_v5, 4 }
 0x1b9   :  { %5206 = vset.pattern.permute.xlu1 %v8452_v18  ;;  %5213 = vset.pattern.permute.xlu0 %v8459_v55  ;;  %v1440_v26 = vrot.slane %v1439_v10, 1  ;;  %8524 = vst [vmem:[#allocation74_spill] sm:$0xff] %v6708_v45  ;;  %8525 = vst [vmem:[#allocation62_spill] sm:$0xff] %v6711_v6  ;;  %v6715_v51 = vunpack.c.l.bf16 %v5122_v14  ;;  %5427 = vpow2.f32 %v1570_v19  ;;  %v6720_v42 = vpop.eup %5415  ;;  %v1689_v36 = vadd.f32 %v1688_v58, %v1687_v1 }
 0x1ba   :  { %3482 = vperm.xlu1 %5206, %v6595_v15   ;;  %4482 = vperm.xlu0 %5213, %v6621_v7   ;;  %5429 = vpow2.f32 %v1572_v49  ;;  %v1520_v47 = vsub.f32 %v6647_v39, %v1434_v11  ;;  %v6730_v34 = vmul.f32 %v6685_v8, %v6467_v44  ;;  %v3895_v17 = vrot.slane %v6546_v20, 4  ;;  %v6735_v39 = vpop.f32.mrb[83].mxu0 }
 0x1bb   :  { %v1441_v3 = vmax.f32 %v1439_v10, %v1440_v26  ;;  %8526 = vst [vmem:[#allocation64_spill] sm:$0xff] %v6715_v51  ;;  %v5418_v56 = vpop.eup %5417  ;;  %5431 = vrcp.f32 %v1684_v16  ;;  %v1701_v28 = vadd.f32 %v1700_v0, %v1699_v5  ;;  %v1706_v44 = vsel %vm1273_vm4, %v6720_v42, 0.0 }
 0x1bc   :  { %v1574_v14 = vmul.f32 1.442695, %v1520_v47  ;;  %v1442_v8 = vsel %vm1273_vm4, %v6718_v41, -inf  ;;  %v1449_v10 = vsel %vm1273_vm4, %v6735_v39, -inf  ;;  %v1690_v58 = vrot.slane %v1689_v36, 1 }
 0x1bd   :  { %v1521_v13 = vsub.f32 %v6659_v57, %v1441_v3  ;;  %v1696_v57 = vadd.f32 %v1695_v2, %v1694_v35  ;;  %v6748_v19 = vmul.f32 %v5418_v56, %v6515_v31  ;;  %v3896_v53 = vrot.slane %v6564_v33, 4  ;;  %v961_v3 = vpop.f32.mrb[48].mxu1  ;;  %v8527_v56 = vld [vmem:[#allocation69_spill] sm:$0xff] }
 0x1be   :  { %5208 = vset.pattern.permute.xlu1 %v8459_v55  ;;  %5215 = vset.pattern.permute.xlu0 %v8440_v25  ;;  %v6745_v50 = vpop.eup %5419  ;;  %v6752_v49 = vunpack.c.l.bf16 %v3895_v17  ;;  %5433 = vpow2.f32 %v1574_v14  ;;  %v1443_v22 = vrot.slane %v1442_v8, 4  ;;  %v1450_v26 = vrot.slane %v1449_v10, 4  ;;  %v963_v60 = vpop.f32.mrb[49].mxu1 }
 0x1bf   :  { %4478 = vperm.xlu1 %5208, %v6595_v15   ;;  %3024 = vperm.xlu0 %5215, %v6629_v62   ;;  %v1576_v43 = vmul.f32 1.442695, %v1521_v13  ;;  %v5422_v5 = vpop.eup %5421  ;;  %v1697_v2 = vrot.slane %v1696_v57, 1  ;;  %v1707_v11 = vrot.slane %v1706_v44, 4  ;;  %v1702_v47 = vrot.slane %v1701_v28, 2  ;;  %v8529_v15 = vld [vmem:[#allocation72_spill] sm:$0xff] }
 0x1c0   :  { %v6754_v16 = vpop.eup %5423  ;;  %v1713_v13 = vsel %vm1273_vm4, %v6745_v50, 0.0  ;;  %v5125_v17 = vpack.c.bf16 %v8527_v56, %v8527_v56  ;;  %v1444_v14 = vmax.f32 %v1442_v8, %v1443_v22  ;;  %v1691_v1 = vadd.f32 %v1690_v58, %v1689_v36 }
 0x1c1   :  { %5435 = vpow2.f32 %v1576_v43  ;;  %v6759_v0 = vpop.eup %5425  ;;  %v6768_v46 = vmul.f32 %v5422_v5, %v6582_v37  ;;  %v6770_v43 = vunpack.c.l.bf16 %v3896_v53  ;;  %v1720_v35 = vsel %vm1273_vm4, %v6754_v16, 0.0 }
 0x1c2   :  { %v1445_v27 = vrot.slane %v1444_v14, 2  ;;  %v1451_v21 = vmax.f32 %v1449_v10, %v1450_v26  ;;  %v6778_v4 = vpack.c.bf16 %v963_v60, %v961_v3  ;;  %v1698_v36 = vadd.f32 %v1697_v2, %v1696_v57 }
 0x1c3   :  { %5210 = vset.pattern.permute.xlu1 %v8440_v25  ;;  %5217 = vset.pattern.permute.xlu0 %v8446_v12  ;;  %8528 = vst [vmem:[#allocation69_spill] sm:$0xff] %v6770_v43  ;;  %v6774_v31 = vpop.eup %5427  ;;  %v1708_v58 = vadd.f32 %v1707_v11, %v1706_v44  ;;  %v1714_v37 = vrot.slane %v1713_v13, 4  ;;  %v1727_v53 = vsel %vm1273_vm4, %v6759_v0, 0.0  ;;  %v1703_v5 = vadd.f32 %v1702_v47, %v1701_v28  ;;  %v965_v43 = vpop.f32.mrb[50].mxu1 }
 0x1c4   :  { %3020 = vperm.xlu1 %5210, %v6621_v7   ;;  %4020 = vperm.xlu0 %5217, %v6629_v62   ;;  %8530 = vst [vmem:[#allocation72_spill] sm:$0xff] %v6778_v4  ;;  %v6780_v8 = vpop.eup %5429  ;;  %v1446_v22 = vmax.f32 %v1444_v14, %v1445_v27  ;;  %v1452_v56 = vrot.slane %v1451_v21, 2  ;;  %5437 = vrcp.f32 %v1691_v1  ;;  %v1721_v60 = vrot.slane %v1720_v35, 4 }
 0x1c5   :  { %v5432_v10 = vpop.eup %5431  ;;  %v1734_v28 = vsel %vm1273_vm4, %v6774_v31, 0.0  ;;  %v1728_v44 = vrot.slane %v1727_v53, 4  ;;  %v1741_v26 = vsel %vm1273_vm4, %v6780_v8, 0.0  ;;  %5439 = vrcp.f32 %v1698_v36 }
 0x1c6   :  { %v1447_v2 = vrot.slane %v1446_v22, 1  ;;  %v1453_v11 = vmax.f32 %v1451_v21, %v1452_v56  ;;  %v1709_v27 = vrot.slane %v1708_v58, 2  ;;  %v1715_v3 = vadd.f32 %v1714_v37, %v1713_v13 }
 0x1c7   :  { %v5131_v1 = vpack.c.bf16 %v6513_v24, %v6513_v24  ;;  %v1735_v14 = vrot.slane %v1734_v28, 4  ;;  %v6805_v21 = vmul.f32 %v5432_v10, %v6606_v59  ;;  %v1722_v36 = vadd.f32 %v1721_v60, %v1720_v35 }
 0x1c8   :  { %5212 = vset.pattern.permute.xlu1 %v8446_v12  ;;  %5219 = vset.pattern.permute.xlu0 %v8445_v52  ;;  %v6798_v47 = vpop.eup %5433  ;;  %v1454_v32 = vrot.slane %v1453_v11, 1  ;;  %v1742_v13 = vrot.slane %v1741_v26, 4  ;;  %v1729_v37 = vadd.f32 %v1728_v44, %v1727_v53  ;;  %v1716_v51 = vrot.slane %v1715_v3, 2 }
 0x1c9   :  { %4016 = vperm.xlu1 %5212, %v6621_v7   ;;  %2468 = vperm.xlu0 %5219, %v6667_v40   ;;  %v5128_v7 = vpack.c.bf16 %v8529_v15, %v8529_v15  ;;  %v6786_v15 = vunpack.c.l.bf16 %v5125_v17  ;;  %8533 = vst [vmem:[#allocation83_spill] sm:$0xff] %v6798_v47  ;;  %v1704_v17 = vrot.slane %v1703_v5, 1  ;;  %8535 = vst [vmem:[#allocation85_spill] sm:$0xff] %v6805_v21  ;;  %v1748_v24 = vsel %vm1273_vm4, %v6798_v47, 0.0  ;;  %v967_v47 = vpop.f32.mrb[51].mxu1 }
 0x1ca   :  { %v1749_v35 = vrot.slane %v1748_v24, 4  ;;  %v1736_v10 = vadd.f32 %v1735_v14, %v1734_v28  ;;  %v3897_v53 = vrot.slane %v6612_v23, 4  ;;  %v3898_v44 = vrot.slane %v6616_v29, 4 }
 0x1cb   :  { %8531 = vst [vmem:[#allocation81_spill] sm:$0xff] %v6786_v15  ;;  %v6790_v57 = vunpack.c.l.bf16 %v5128_v7  ;;  %v1448_v7 = vmax.f32 %v1446_v22, %v1447_v2  ;;  %v6800_v15 = vpop.eup %5435  ;;  %v1455_v2 = vmax.f32 %v1453_v11, %v1454_v32  ;;  %v1705_v21 = vadd.f32 %v1704_v17, %v1703_v5 }
 0x1cc   :  { %8534 = vst [vmem:[#allocation84_spill] sm:$0xff] %v6800_v15  ;;  %v1755_v22 = vsel %vm1273_vm4, %v6800_v15, 0.0  ;;  %v1743_v15 = vadd.f32 %v1742_v13, %v1741_v26  ;;  %v1723_v32 = vrot.slane %v1722_v36, 2  ;;  %v1717_v5 = vadd.f32 %v1716_v51, %v1715_v3 }
 0x1cd   :  { %5214 = vset.pattern.permute.xlu1 %v8445_v52  ;;  %5221 = vset.pattern.permute.xlu0 %v8452_v18  ;;  %8532 = vst [vmem:[#allocation82_spill] sm:$0xff] %v6790_v57  ;;  %v1522_v56 = vsub.f32 %v6718_v41, %v1448_v7  ;;  %v1710_v57 = vadd.f32 %v1709_v27, %v1708_v58  ;;  %v1756_v60 = vrot.slane %v1755_v22, 4  ;;  %v1730_v41 = vrot.slane %v1729_v37, 2  ;;  %v6825_v7 = vpop.f32.mrb[84].mxu0 }
 0x1ce   :  { %2463 = vperm.xlu1 %5214, %v6629_v62   ;;  %3494 = vperm.xlu0 %5221, %v6667_v40   ;;  %v1523_v33 = vsub.f32 %v6735_v39, %v1455_v2  ;;  %v5438_v28 = vpop.eup %5437  ;;  %v1750_v11 = vadd.f32 %v1749_v35, %v1748_v24  ;;  %v6822_v27 = vpack.c.bf16 %v967_v47, %v965_v43  ;;  %v1737_v17 = vrot.slane %v1736_v10, 2  ;;  %v6835_v51 = vpop.f32.mrb[85].mxu0  ;;  %v8539_v47 = vld [vmem:[#allocation41_spill] sm:$0xff] }
 0x1cf   :  { %v1578_v45 = vmul.f32 1.442695, %v1522_v56  ;;  %v1711_v39 = vrot.slane %v1710_v57, 1  ;;  %v1757_v14 = vadd.f32 %v1756_v60, %v1755_v22  ;;  %v6827_v13 = vpop.eup %5439  ;;  %v1744_v56 = vrot.slane %v1743_v15, 2  ;;  %v6839_v22 = vpop.f32.mrb[86].mxu0 }
 0x1d0   :  { %v1580_v58 = vmul.f32 1.442695, %v1523_v33  ;;  %8536 = vst [vmem:[#allocation86_spill] sm:$0xff] %v6822_v27  ;;  %v6829_v33 = vunpack.c.l.bf16 %v3897_v53  ;;  %v1724_v43 = vadd.f32 %v1723_v32, %v1722_v36  ;;  %v1731_v3 = vadd.f32 %v1730_v41, %v1729_v37  ;;  %v6844_v53 = vpop.f32.mrb[87].mxu0 }
 0x1d1   :  { %5441 = vpow2.f32 %v1578_v45  ;;  %v6831_v45 = vunpack.c.l.bf16 %v3898_v44  ;;  %v5134_v24 = vpack.c.bf16 %v8539_v47, %v8539_v47  ;;  %v1712_v2 = vadd.f32 %v1711_v39, %v1710_v57 }
 0x1d2   :  { %5216 = vset.pattern.permute.xlu1 %v8452_v18  ;;  %5223 = vset.pattern.permute.xlu0 %v8459_v55  ;;  %5443 = vpow2.f32 %v1580_v58  ;;  %v1718_v35 = vrot.slane %v1717_v5, 1  ;;  %v1751_v60 = vrot.slane %v1750_v11, 2  ;;  %v1758_v36 = vrot.slane %v1757_v14, 2 }
 0x1d3   :  { %3490 = vperm.xlu1 %5216, %v6629_v62   ;;  %4490 = vperm.xlu0 %5223, %v6667_v40   ;;  %8537 = vst [vmem:[#allocation87_spill] sm:$0xff] %v6831_v45  ;;  %5445 = vrcp.f32 %v1705_v21  ;;  %v1738_v21 = vadd.f32 %v1737_v17, %v1736_v10  ;;  %v1456_v37 = vsel %vm1273_vm4, %v6835_v51, -inf  ;;  %v1463_v44 = vsel %vm1273_vm4, %v6844_v53, -inf }
 0x1d4   :  { %v6853_v57 = vmul.f32 %v5438_v28, %v6652_v30  ;;  %v1745_v32 = vadd.f32 %v1744_v56, %v1743_v15  ;;  %v1457_v41 = vrot.slane %v1456_v37, 4  ;;  %v1464_v58 = vrot.slane %v1463_v44, 4  ;;  %v971_v56 = vpop.f32.mrb[52].mxu1 }
 0x1d5   :  { %v1725_v39 = vrot.slane %v1724_v43, 1  ;;  %v1732_v47 = vrot.slane %v1731_v3, 1  ;;  %v6855_v26 = vunpack.c.l.bf16 %v5134_v24  ;;  %v1752_v17 = vadd.f32 %v1751_v60, %v1750_v11 }
 0x1d6   :  { %v1465_v29 = vmax.f32 %v1463_v44, %v1464_v58  ;;  %5447 = vrcp.f32 %v1712_v2  ;;  %v1719_v30 = vadd.f32 %v1718_v35, %v1717_v5  ;;  %v1739_v15 = vrot.slane %v1738_v21, 1 }
 0x1d7   :  { %5218 = vset.pattern.permute.xlu1 %v8459_v55  ;;  %5225 = vset.pattern.permute.xlu0 %v8440_v25  ;;  %8540 = vst [vmem:[#allocation41_spill] sm:$0xff] %v6855_v26  ;;  %v1759_v28 = vadd.f32 %v1758_v36, %v1757_v14  ;;  %v1746_v24 = vrot.slane %v1745_v32, 1  ;;  %v1733_v58 = vadd.f32 %v1732_v47, %v1731_v3  ;;  %v1753_v14 = vrot.slane %v1752_v17, 1 }
 0x1d8   :  { %4486 = vperm.xlu1 %5218, %v6629_v62   ;;  %3032 = vperm.xlu0 %5225, %v6730_v34   ;;  %v6833_v62 = vunpack.c.l.bf16 %v5131_v1  ;;  %v3899_v1 = vrot.slane %v6641_v63, 4  ;;  %v1466_v60 = vrot.slane %v1465_v29, 2  ;;  %5449 = vrcp.f32 %v1719_v30 }
 0x1d9   :  { %v1740_v26 = vadd.f32 %v1739_v15, %v1738_v21  ;;  %v1747_v3 = vadd.f32 %v1746_v24, %v1745_v32  ;;  %v1754_v15 = vadd.f32 %v1753_v14, %v1752_v17 }
 0x1da   :  { %8538 = vst [vmem:[#allocation88_spill] sm:$0xff] %v6833_v62  ;;  %v6858_v10 = vunpack.c.l.bf16 %v3899_v1  ;;  %v1458_v62 = vmax.f32 %v1456_v37, %v1457_v41  ;;  %v973_v37 = vpop.f32.mrb[53].mxu1  ;;  %v1726_v41 = vadd.f32 %v1725_v39, %v1724_v43  ;;  %v1467_v36 = vmax.f32 %v1465_v29, %v1466_v60  ;;  %v8545_v29 = vld [vmem:[#allocation67_spill] sm:$0xff]  ;;  %v8546_v60 = vld [vmem:[#allocation52_spill] sm:$0xff] }
 0x1db   :  { %v6860_v45 = vpop.eup %5441  ;;  %v6870_v5 = vpack.c.bf16 %v973_v37, %v971_v56  ;;  %v6878_v43 = vmul.f32 %v6827_v13, %v6661_v54  ;;  %v5137_v54 = vpack.c.bf16 %v8546_v60, %v8546_v60  ;;  %v8547_v13 = vld [vmem:[#allocation57_spill] sm:$0xff]  ;;  %v3901_v37 = vrot.slane %v6688_v61, 4  ;;  %v975_v60 = vpop.f32.mrb[54].mxu1 }
 0x1dc   :  { %5220 = vset.pattern.permute.xlu1 %v8440_v25  ;;  %5227 = vset.pattern.permute.xlu0 %v8446_v12  ;;  %8541 = vst [vmem:[#allocation89_spill] sm:$0xff] %v6858_v10  ;;  %8542 = vst [vmem:[#allocation90_spill] sm:$0xff] %v6860_v45  ;;  %v1762_v11 = vsel %vm1273_vm4, %v6860_v45, 0.0  ;;  %v1459_v1 = vrot.slane %v1458_v62, 2  ;;  %v6868_v44 = vpop.eup %5443  ;;  %v1760_v45 = vrot.slane %v1759_v28, 1  ;;  %v1468_v47 = vrot.slane %v1467_v36, 1 }
 0x1dd   :  { %3028 = vperm.xlu1 %5220, %v6667_v40   ;;  %4028 = vperm.xlu0 %5227, %v6730_v34   ;;  %8543 = vst [vmem:[#allocation91_spill] sm:$0xff] %v6868_v44  ;;  %v1763_v2 = vrot.slane %v1762_v11, 4  ;;  %8544 = vst [vmem:[#allocation92_spill] sm:$0xff] %v6870_v5  ;;  %v5446_v59 = vpop.eup %5445  ;;  %5451 = vrcp.f32 %v1726_v41  ;;  %v5140_v32 = vpack.c.bf16 %v8547_v13, %v8547_v13  ;;  %v6901_v14 = vunpack.c.l.bf16 %v5137_v54  ;;  %v8552_v54 = vld [vmem:[#allocation6_spill] sm:$0xff] }
 0x1de   :  { %v1460_v35 = vmax.f32 %v1458_v62, %v1459_v1  ;;  %v3900_v62 = vrot.slane %v8545_v29, 4  ;;  %5453 = vrcp.f32 %v1733_v58  ;;  %v1469_v1 = vmax.f32 %v1467_v36, %v1468_v47 }
 0x1df   :  { %v1764_v21 = vadd.f32 %v1763_v2, %v1762_v11  ;;  %5455 = vrcp.f32 %v1740_v26  ;;  %v1761_v24 = vadd.f32 %v1760_v45, %v1759_v28  ;;  %v3902_v45 = vrot.slane %v6711_v6, 4  ;;  %8548 = vst [vmem:[#allocation52_spill] sm:$0xff] %v6901_v14 }
 0x1e0   :  { %v1461_v39 = vrot.slane %v1460_v35, 1  ;;  %5457 = vrcp.f32 %v1747_v3  ;;  %v1525_v11 = vsub.f32 %v6844_v53, %v1469_v1  ;;  %v6893_v17 = vunpack.c.l.bf16 %v3900_v62 }
 0x1e1   :  { %5222 = vset.pattern.permute.xlu1 %v8446_v12  ;;  %5229 = vset.pattern.permute.xlu0 %v8445_v52  ;;  %v1765_v58 = vrot.slane %v1764_v21, 2  ;;  %5459 = vrcp.f32 %v1754_v15  ;;  %v6899_v28 = vmul.f32 %v5446_v59, %v6693_v38  ;;  %v5143_v47 = vpack.c.bf16 %v6713_v9, %v6713_v9 }
 0x1e2   :  { %4024 = vperm.xlu1 %5222, %v6667_v40   ;;  %2478 = vperm.xlu0 %5229, %v6748_v19   ;;  %v1769_v40 = vsel %vm1273_vm4, %v6868_v44, 0.0  ;;  %v1462_v56 = vmax.f32 %v1460_v35, %v1461_v39  ;;  %v1584_v53 = vmul.f32 1.442695, %v1525_v11  ;;  %5461 = vrcp.f32 %v1761_v24 }
 0x1e3   :  { %v1770_v10 = vrot.slane %v1769_v40, 4  ;;  %v6906_v39 = vunpack.c.l.bf16 %v3901_v37  ;;  %v8551_v15 = vunpack.c.l.bf16 %v6546_v20  ;;  %v1766_v59 = vadd.f32 %v1765_v58, %v1764_v21  ;;  %v977_v20 = vpop.f32.mrb[55].mxu1 }
 0x1e4   :  { %v1524_v41 = vsub.f32 %v6835_v51, %v1462_v56  ;;  %v5146_v56 = vpack.c.bf16 %v6724_v48, %v6724_v48  ;;  %v8553_v13 = vunpack.c.l.bf16 %v8552_v54  ;;  %v6921_v24 = vunpack.c.l.bf16 %v3902_v45  ;;  %v6936_v45 = vpop.f32.mrb[88].mxu0 }
 0x1e5   :  { %v1771_v30 = vadd.f32 %v1770_v10, %v1769_v40  ;;  %v5448_v10 = vpop.eup %5447  ;;  %v6903_v40 = vunpack.c.l.bf16 %v5140_v32  ;;  %8550 = vst [vmem:[#allocation93_spill] sm:$0xff] %v6906_v39  ;;  %v3903_v48 = vrot.slane %v6778_v4, 4  ;;  %v6933_v58 = vunpack.c.l.bf16 %v5143_v47 }
 0x1e6   :  { %5224 = vset.pattern.permute.xlu1 %v8445_v52  ;;  %5231 = vset.pattern.permute.xlu0 %v8452_v18  ;;  %v1582_v51 = vmul.f32 1.442695, %v1524_v41  ;;  %v5450_v62 = vpop.eup %5449  ;;  %v6919_v9 = vmul.f32 %v5448_v10, %v6720_v42  ;;  %8554 = vst [vmem:[#allocation6_spill] sm:$0xff] %v6921_v24  ;;  %v6927_v41 = vpack.c.bf16 %v977_v20, %v975_v60  ;;  %v8559_v20 = vld [vmem:[#allocation48_spill] sm:$0xff] }
 0x1e7   :  { %2473 = vperm.xlu1 %5224, %v6730_v34   ;;  %3502 = vperm.xlu0 %5231, %v6748_v19   ;;  %v1772_v2 = vrot.slane %v1771_v30, 2  ;;  %8549 = vst [vmem:[#allocation57_spill] sm:$0xff] %v6903_v40  ;;  %v5452_v21 = vpop.eup %5451  ;;  %v6930_v42 = vmul.f32 %v5450_v62, %v6745_v50  ;;  %8556 = vst [vmem:[#allocation95_spill] sm:$0xff] %v6933_v58  ;;  %v5149_v60 = vpack.c.bf16 %v6825_v7, %v6825_v7 }
 0x1e8   :  { %5463 = vpow2.f32 %v1582_v51  ;;  %v5454_v11 = vpop.eup %5453  ;;  %v6951_v26 = vunpack.c.l.bf16 %v3903_v48 }
 0x1e9   :  { %v1773_v1 = vadd.f32 %v1772_v2, %v1771_v30  ;;  %5465 = vpow2.f32 %v1584_v53  ;;  %v3904_v30 = vrot.slane %v6822_v27, 4  ;;  %8555 = vst [vmem:[#allocation94_spill] sm:$0xff] %v6930_v42  ;;  %v6944_v2 = vpop.f32.mrb[89].mxu0  ;;  %v6954_v7 = vmul.f32 %v5454_v11, %v6759_v0 }
 0x1ea   :  { %8561 = vst [vmem:[#allocation48_spill] sm:$0xff] %v6951_v26 }
 0x1eb   :  { %5226 = vset.pattern.permute.xlu1 %v8452_v18  ;;  %5233 = vset.pattern.permute.xlu0 %v8459_v55  ;;  %8562 = vst [vmem:[#allocation97_spill] sm:$0xff] %v6954_v7 }
 0x1ec   :  { %3498 = vperm.xlu1 %5226, %v6730_v34   ;;  %4498 = vperm.xlu0 %5233, %v6748_v19  }
 0x1ee   :  { %v3463_v35 = vpop.permute.xlu1 %3462  ;;  %v2429_v36 = vpop.permute.xlu0 %2428 }
 0x1ef   :  { %v3589_v38 = vmul.f32 %v3463_v35, %v8551_v15  ;;  %v2586_v32 = vmul.f32 %v2429_v36, %v8553_v13  ;;  %v1767_v35 = vrot.slane %v1766_v59, 1  ;;  %v6938_v36 = vunpack.c.l.bf16 %v5146_v56  ;;  %v8558_v13 = vld [vmem:[#allocation71_spill] sm:$0xff] }
 0x1f0   :  { %5228 = vset.pattern.permute.xlu1 %v8459_v55  ;;  %5235 = vset.pattern.permute.xlu0 %v8440_v25  ;;  %v1774_v15 = vrot.slane %v1773_v1, 1  ;;  %v6949_v56 = vmul.f32 %v5452_v21, %v6754_v16  ;;  %v5152_v16 = vpack.c.bf16 %v6839_v22, %v6839_v22 }
 0x1f1   :  { %v3621_v37 = vrot.slane %v3589_v38, 4  ;;  %4494 = vperm.xlu1 %5228, %v6730_v34   ;;  %3040 = vperm.xlu0 %5235, %v6768_v46   ;;  %v5456_v34 = vpop.eup %5455  ;;  %8557 = vst [vmem:[#allocation96_spill] sm:$0xff] %v6938_v36  ;;  %v2618_v54 = vrot.slane %v2586_v32, 4 }
 0x1f2   :  { %v5458_v50 = vpop.eup %5457  ;;  %8560 = vst [vmem:[#allocation71_spill] sm:$0xff] %v6949_v56  ;;  %v6965_v21 = vmul.f32 %v5456_v34, %v6774_v31  ;;  %v1775_v44 = vadd.f32 %v1774_v15, %v1773_v1  ;;  %v6976_v31 = vunpack.c.l.bf16 %v5149_v60  ;;  %v3905_v1 = vrot.slane %v6870_v5, 4  ;;  %v8571_v15 = vld [vmem:[#allocation83_spill] sm:$0xff]  ;;  %v8587_v56 = vld [vmem:[#allocation73_spill] sm:$0xff] }
 0x1f3   :  { %v4459_v51 = vpop.permute.xlu1 %4458  ;;  %v2997_v53 = vpop.permute.xlu0 %2996  ;;  %v3622_v62 = vadd.f32 %v3621_v37, %v3589_v38  ;;  %v6956_v38 = vunpack.c.l.bf16 %v3904_v30  ;;  %v1768_v30 = vadd.f32 %v1767_v35, %v1766_v59  ;;  %v6972_v3 = vmul.f32 %v5458_v50, %v6780_v8  ;;  %v8568_v35 = vld [vmem:[#allocation49_spill] sm:$0xff] }
 0x1f4   :  { %v4585_v47 = vmul.f32 %v4459_v51, %v8558_v13  ;;  %v3123_v10 = vmul.f32 %v2997_v53, %v8559_v20  ;;  %v6958_v37 = vpop.f32.mrb[90].mxu0  ;;  %v5460_v51 = vpop.eup %5459  ;;  %8564 = vst [vmem:[#allocation99_spill] sm:$0xff] %v6965_v21  ;;  %v2619_v58 = vadd.f32 %v2618_v54, %v2586_v32  ;;  %8567 = vst [vmem:[#allocation102_spill] sm:$0xff] %v6976_v31  ;;  %v6986_v32 = vunpack.c.l.bf16 %v5152_v16  ;;  %v8573_v50 = vld [vmem:[#allocation85_spill] sm:$0xff]  ;;  %v8582_v21 = vld [vmem:[#allocation8_spill] sm:$0xff] }
 0x1f5   :  { %5230 = vset.pattern.permute.xlu1 %v8440_v25  ;;  %5237 = vset.pattern.permute.xlu0 %v8446_v12  ;;  %8563 = vst [vmem:[#allocation98_spill] sm:$0xff] %v6956_v38  ;;  %v6967_v48 = vpop.f32.mrb[91].mxu0  ;;  %v5462_v0 = vpop.eup %5461  ;;  %8565 = vst [vmem:[#allocation100_spill] sm:$0xff] %v6972_v3  ;;  %v3623_v36 = vrot.slane %v3622_v62, 2  ;;  %v6990_v60 = vmul.f32 %v5460_v51, %v8571_v15  ;;  %5467 = vrcp.f32 %v1768_v30  ;;  %v8583_v38 = vunpack.c.l.bf16 %v8582_v21 }
 0x1f6   :  { %v4617_v53 = vrot.slane %v4585_v47, 4  ;;  %v3155_v13 = vrot.slane %v3123_v10, 4  ;;  %3036 = vperm.xlu1 %5230, %v6748_v19   ;;  %4036 = vperm.xlu0 %5237, %v6768_v46   ;;  %v6974_v40 = vpop.eup %5463  ;;  %8570 = vst [vmem:[#allocation103_spill] sm:$0xff] %v6986_v32  ;;  %5469 = vrcp.f32 %v1775_v44 }
 0x1f7   :  { %8566 = vst [vmem:[#allocation101_spill] sm:$0xff] %v6974_v40  ;;  %v6980_v27 = vpop.eup %5465  ;;  %v1776_v8 = vsel %vm1273_vm4, %v6974_v40, 0.0  ;;  %8572 = vst [vmem:[#allocation83_spill] sm:$0xff] %v6990_v60  ;;  %v8576_v40 = vld [vmem:[#allocation69_spill] sm:$0xff]  ;;  %v8577_v60 = vld [vmem:[#allocation7_spill] sm:$0xff] }
 0x1f8   :  { %v3993_v14 = vpop.permute.xlu0 %3992  ;;  %v3001_v22 = vpop.permute.xlu1 %3000  ;;  %v4618_v34 = vadd.f32 %v4617_v53, %v4585_v47  ;;  %v3156_v26 = vadd.f32 %v3155_v13, %v3123_v10  ;;  %8569 = vst [vmem:[#allocation49_spill] sm:$0xff] %v6980_v27  ;;  %v8574_v47 = vld [vmem:[#allocation84_spill] sm:$0xff]  ;;  %v2620_v13 = vrot.slane %v2619_v58, 2  ;;  %v1777_v16 = vrot.slane %v1776_v8, 4 }
 0x1f9   :  { %v4119_v59 = vmul.f32 %v3993_v14, %v6752_v49  ;;  %v3124_v11 = vmul.f32 %v3001_v22, %v8568_v35  ;;  %v6992_v10 = vpop.f32.mrb[56].mxu1  ;;  %v6999_v53 = vmul.f32 %v5462_v0, %v8574_v47  ;;  %v1783_v51 = vsel %vm1273_vm4, %v6980_v27, 0.0 }
 0x1fa   :  { %5232 = vset.pattern.permute.xlu1 %v8446_v12  ;;  %5239 = vset.pattern.permute.xlu0 %v8445_v52  ;;  %v6996_v54 = vpop.f32.mrb[57].mxu1  ;;  %v3624_v22 = vadd.f32 %v3623_v36, %v3622_v62  ;;  %v4619_v35 = vrot.slane %v4618_v34, 2  ;;  %v3157_v15 = vrot.slane %v3156_v26, 2  ;;  %v8578_v3 = vunpack.c.l.bf16 %v8577_v60 }
 0x1fb   :  { %v4151_v49 = vrot.slane %v4119_v59, 4  ;;  %v3161_v14 = vrot.slane %v3124_v11, 4  ;;  %4032 = vperm.xlu1 %5232, %v6748_v19   ;;  %2488 = vperm.xlu0 %5239, %v8573_v50   ;;  %8575 = vst [vmem:[#allocation85_spill] sm:$0xff] %v6999_v53  ;;  %v7006_v0 = vunpack.c.l.bf16 %v3905_v1  ;;  %v1778_v44 = vadd.f32 %v1777_v16, %v1776_v8  ;;  %v7039_v29 = vpop.f32.mrb[58].mxu1 }
 0x1fc   :  { %v1784_v36 = vrot.slane %v1783_v51, 4  ;;  %v3906_v62 = vrot.slane %v6927_v41, 4  ;;  %v7019_v8 = vsel %vm1273_vm4, %v6967_v48, -inf }
 0x1fd   :  { %v4152_v20 = vadd.f32 %v4151_v49, %v4119_v59  ;;  %v3997_v32 = vpop.permute.xlu1 %3996  ;;  %v2434_v19 = vpop.permute.xlu0 %2433  ;;  %v3162_v31 = vadd.f32 %v3161_v14, %v3124_v11  ;;  %8579 = vst [vmem:[#allocation84_spill] sm:$0xff] %v7006_v0  ;;  %v2621_v59 = vadd.f32 %v2620_v13, %v2619_v58  ;;  %v4620_v11 = vadd.f32 %v4619_v35, %v4618_v34 }
 0x1fe   :  { %v4120_v30 = vmul.f32 %v3997_v32, %v8576_v40  ;;  %v2587_v5 = vmul.f32 %v2434_v19, %v8578_v3  ;;  %v7015_v40 = vsel %vm1273_vm4, %v6944_v2, -inf  ;;  %v3625_v3 = vrot.slane %v3624_v22, 1  ;;  %v8580_v19 = vld [vmem:[#allocation42_spill] sm:$0xff] }
 0x1ff   :  { %v4153_v47 = vrot.slane %v4152_v20, 2  ;;  %5234 = vset.pattern.permute.xlu1 %v8445_v52  ;;  %5241 = vset.pattern.permute.xlu0 %v8452_v18  ;;  %v3158_v32 = vadd.f32 %v3157_v15, %v3156_v26  ;;  %v3163_v60 = vrot.slane %v3162_v31, 2  ;;  %v8581_v53 = vunpack.c.l.bf16 %v8580_v19 }
 0x200   :  { %v4157_v49 = vrot.slane %v4120_v30, 4  ;;  %v2624_v27 = vrot.slane %v2587_v5, 4  ;;  %2483 = vperm.xlu1 %5234, %v6768_v46   ;;  %3510 = vperm.xlu0 %5241, %v8573_v50   ;;  %v1779_v7 = vrot.slane %v1778_v44, 2  ;;  %v1785_v4 = vadd.f32 %v1784_v36, %v1783_v51 }
 0x201   :  { %v4154_v1 = vadd.f32 %v4153_v47, %v4152_v20  ;;  %v7027_v20 = vunpack.c.l.bf16 %v3906_v62  ;;  %v2622_v35 = vrot.slane %v2621_v59, 1  ;;  %v3626_v51 = vadd.f32 %v3625_v3, %v3624_v22 }
 0x202   :  { %v4158_v58 = vadd.f32 %v4157_v49, %v4120_v30  ;;  %v2625_v14 = vadd.f32 %v2624_v27, %v2587_v5  ;;  %v3467_v13 = vpop.permute.xlu0 %3466  ;;  %v2439_v16 = vpop.permute.xlu1 %2438  ;;  %v4621_v30 = vrot.slane %v4620_v11, 1  ;;  %v3159_v47 = vrot.slane %v3158_v32, 1 }
 0x203   :  { %v3590_v0 = vmul.f32 %v3467_v13, %v8581_v53  ;;  %v2588_v6 = vmul.f32 %v2439_v16, %v8583_v38  ;;  %8584 = vst [vmem:[#allocation69_spill] sm:$0xff] %v7027_v20  ;;  %v7030_v5 = vpop.eup %5467  ;;  %v3164_v36 = vadd.f32 %v3163_v60, %v3162_v31  ;;  %v4155_v62 = vrot.slane %v4154_v1, 1 }
 0x204   :  { %v4159_v34 = vrot.slane %v4158_v58, 2  ;;  %v2626_v26 = vrot.slane %v2625_v14, 2  ;;  %5236 = vset.pattern.permute.xlu1 %v8452_v18  ;;  %5243 = vset.pattern.permute.xlu0 %v8459_v55  ;;  %8585 = vst [vmem:[#allocation7_spill] sm:$0xff] %v7030_v5  ;;  %v7035_v21 = vpop.eup %5469  ;;  %v1780_v19 = vadd.f32 %v1779_v7, %v1778_v44  ;;  %v1786_v27 = vrot.slane %v1785_v4, 2  ;;  %v8588_v5 = vld [vmem:[#allocation51_spill] sm:$0xff] }
 0x205   :  { %v3627_v15 = vrot.slane %v3590_v0, 4  ;;  %v2630_v53 = vrot.slane %v2588_v6, 4  ;;  %3506 = vperm.xlu1 %5236, %v6768_v46   ;;  %4506 = vperm.xlu0 %5243, %v8573_v50   ;;  %8586 = vst [vmem:[#allocation42_spill] sm:$0xff] %v7035_v21  ;;  %v2623_v38 = vadd.f32 %v2622_v35, %v2621_v59  ;;  %v7046_v7 = vmul.f32 0.4, %v3626_v51 }
 0x206   :  { %v4160_v20 = vadd.f32 %v4159_v34, %v4158_v58  ;;  %v2627_v39 = vadd.f32 %v2626_v26, %v2625_v14  ;;  %v4622_v44 = vadd.f32 %v4621_v30, %v4620_v11  ;;  %v3160_v59 = vadd.f32 %v3159_v47, %v3158_v32  ;;  %v7050_v14 = vpop.f32.mrb[92].mxu0 }
 0x207   :  { %v3628_v49 = vadd.f32 %v3627_v15, %v3590_v0  ;;  %v4463_v13 = vpop.permute.xlu0 %4462  ;;  %v3005_v16 = vpop.permute.xlu1 %3004  ;;  %v2631_v22 = vadd.f32 %v2630_v53, %v2588_v6  ;;  %8589 = vst [vmem:[#allocation8_spill] sm:$0xff] %v7046_v7  ;;  %v4156_v60 = vadd.f32 %v4155_v62, %v4154_v1  ;;  %v3165_v6 = vrot.slane %v3164_v36, 1  ;;  %v8593_v62 = vld [vmem:[#allocation53_spill] sm:$0xff] }
 0x208   :  { %v4586_v24 = vmul.f32 %v4463_v13, %v8587_v56  ;;  %v3125_v42 = vmul.f32 %v3005_v16, %v8588_v5  ;;  %v7044_v0 = vpop.f32.mrb[59].mxu1  ;;  %v1781_v58 = vrot.slane %v1780_v19, 1  ;;  %v4161_v34 = vrot.slane %v4160_v20, 1  ;;  %v7054_v16 = vpop.f32.mrb[93].mxu0 }
 0x209   :  { %v3629_v21 = vrot.slane %v3628_v49, 2  ;;  %5238 = vset.pattern.permute.xlu1 %v8459_v55  ;;  %5245 = vset.pattern.permute.xlu0 %v8440_v25  ;;  %v2628_v26 = vrot.slane %v2627_v39, 1  ;;  %v1787_v53 = vadd.f32 %v1786_v27, %v1785_v4  ;;  %v2632_v11 = vrot.slane %v2631_v22, 2  ;;  %v7063_v4 = vpop.f32.mrb[94].mxu0 }
 0x20a   :  { %v4623_v3 = vrot.slane %v4586_v24, 4  ;;  %v3167_v56 = vrot.slane %v3125_v42, 4  ;;  %4502 = vperm.xlu1 %5238, %v6768_v46   ;;  %3048 = vperm.xlu0 %5245, %v6853_v57   ;;  %v8590_v13 = vunpack.c.l.bf16 %v6612_v23  ;;  %v7056_v32 = vmul.f32 0.4, %v2623_v38  ;;  %v7069_v38 = vpop.f32.mrb[95].mxu0 }
 0x20b   :  { %v3630_v51 = vadd.f32 %v3629_v21, %v3628_v49  ;;  %v7058_v1 = vmul.f32 0.4, %v4622_v44  ;;  %v1782_v27 = vadd.f32 %v1781_v58, %v1780_v19  ;;  %v7071_v21 = vmul.f32 0.4, %v4156_v60  ;;  %v8597_v58 = vld [vmem:[#allocation87_spill] sm:$0xff] }
 0x20c   :  { %v4624_v5 = vadd.f32 %v4623_v3, %v4586_v24  ;;  %v3471_v35 = vpop.permute.xlu1 %3470  ;;  %v3009_v15 = vpop.permute.xlu0 %3008  ;;  %v3168_v30 = vadd.f32 %v3167_v56, %v3125_v42  ;;  %8591 = vst [vmem:[#allocation73_spill] sm:$0xff] %v7056_v32  ;;  %v7065_v24 = vmul.f32 0.4, %v3160_v59  ;;  %v3166_v42 = vadd.f32 %v3165_v6, %v3164_v36 }
 0x20d   :  { %v3591_v46 = vmul.f32 %v3471_v35, %v8590_v13  ;;  %8592 = vst [vmem:[#allocation51_spill] sm:$0xff] %v7058_v1  ;;  %v3126_v31 = vmul.f32 %v3009_v15, %v8593_v62  ;;  %8595 = vst [vmem:[#allocation104_spill] sm:$0xff] %v7071_v21  ;;  %v4162_v49 = vadd.f32 %v4161_v34, %v4160_v20  ;;  %v1788_v44 = vrot.slane %v1787_v53, 1  ;;  %v8601_v21 = vld [vmem:[#allocation75_spill] sm:$0xff] }
 0x20e   :  { %v4625_v47 = vrot.slane %v4624_v5, 2  ;;  %5240 = vset.pattern.permute.xlu1 %v8440_v25  ;;  %5247 = vset.pattern.permute.xlu0 %v8446_v12  ;;  %8594 = vst [vmem:[#allocation53_spill] sm:$0xff] %v7065_v24  ;;  %v8596_v3 = vrot.slane %v7015_v40, 4  ;;  %v2629_v35 = vadd.f32 %v2628_v26, %v2627_v39  ;;  %v3631_v59 = vrot.slane %v3630_v51, 1 }
 0x20f   :  { %v3633_v23 = vrot.slane %v3591_v46, 4  ;;  %3044 = vperm.xlu1 %5240, %v8573_v50   ;;  %4044 = vperm.xlu0 %5247, %v6853_v57   ;;  %v2633_v15 = vadd.f32 %v2632_v11, %v2631_v22  ;;  %v3169_v36 = vrot.slane %v3168_v30, 2  ;;  %v3173_v24 = vrot.slane %v3126_v31, 4 }
 0x210   :  { %v1472_v56 = vmax.f32 %v7015_v40, %v8596_v3  ;;  %v4626_v62 = vadd.f32 %v4625_v47, %v4624_v5  ;;  %v7078_v60 = vmul.f32 0.4, %v3166_v42  ;;  %5471 = vrcp.f32 %v1782_v27  ;;  %v7082_v40 = vpop.f32.mrb[60].mxu1 }
 0x211   :  { %v4001_v6 = vpop.permute.xlu1 %4000  ;;  %v4005_v13 = vpop.permute.xlu0 %4004  ;;  %v3634_v20 = vadd.f32 %v3633_v23, %v3591_v46  ;;  %v7084_v22 = vmul.f32 0.4, %v4162_v49  ;;  %v7090_v11 = vmul.f32 0.4, %v2629_v35  ;;  %v2634_v46 = vrot.slane %v2633_v15, 1 }
 0x212   :  { %v4121_v19 = vmul.f32 %v4001_v6, %v6829_v33  ;;  %v4122_v1 = vmul.f32 %v4005_v13, %v8597_v58  ;;  %8598 = vst [vmem:[#allocation87_spill] sm:$0xff] %v7078_v60  ;;  %v1473_v39 = vrot.slane %v1472_v56, 2  ;;  %v1789_v33 = vadd.f32 %v1788_v44, %v1787_v53  ;;  %v7088_v5 = vpop.f32.mrb[61].mxu1  ;;  %v8602_v53 = vld [vmem:[#allocation10_spill] sm:$0xff] }
 0x213   :  { %5242 = vset.pattern.permute.xlu1 %v8446_v12  ;;  %5249 = vset.pattern.permute.xlu0 %v8445_v52  ;;  %8599 = vst [vmem:[#allocation105_spill] sm:$0xff] %v7084_v22  ;;  %8600 = vst [vmem:[#allocation106_spill] sm:$0xff] %v7090_v11  ;;  %v5155_v47 = vpack.c.bf16 %v6936_v45, %v6936_v45  ;;  %v3632_v23 = vadd.f32 %v3631_v59, %v3630_v51  ;;  %v4627_v27 = vrot.slane %v4626_v62, 1 }
 0x214   :  { %v4163_v34 = vrot.slane %v4121_v19, 4  ;;  %v4169_v26 = vrot.slane %v4122_v1, 4  ;;  %4040 = vperm.xlu1 %5242, %v8573_v50   ;;  %2498 = vperm.xlu0 %5249, %v6878_v43   ;;  %v1474_v42 = vmax.f32 %v1472_v56, %v1473_v39  ;;  %v3170_v49 = vadd.f32 %v3169_v36, %v3168_v30 }
 0x215   :  { %v3174_v3 = vadd.f32 %v3173_v24, %v3126_v31  ;;  %v3635_v58 = vrot.slane %v3634_v20, 2  ;;  %v8603_v44 = vunpack.c.l.bf16 %v8602_v53  ;;  %5473 = vrcp.f32 %v1789_v33 }
 0x216   :  { %v4467_v6 = vpop.permute.xlu1 %4466  ;;  %v2449_v13 = vpop.permute.xlu0 %2448  ;;  %v4164_v50 = vadd.f32 %v4163_v34, %v4121_v19  ;;  %v4170_v35 = vadd.f32 %v4169_v26, %v4122_v1  ;;  %v1475_v45 = vrot.slane %v1474_v42, 1  ;;  %v8604_v51 = vrot.slane %v7019_v8, 4 }
 0x217   :  { %v4587_v22 = vmul.f32 %v4467_v6, %v8601_v21  ;;  %v2590_v60 = vmul.f32 %v2449_v13, %v8603_v44  ;;  %v2635_v30 = vadd.f32 %v2634_v46, %v2633_v15  ;;  %v7104_v21 = vunpack.c.l.bf16 %v5155_v47  ;;  %v8607_v13 = vld [vmem:[#allocation9_spill] sm:$0xff] }
 0x218   :  { %5244 = vset.pattern.permute.xlu1 %v8445_v52  ;;  %5251 = vset.pattern.permute.xlu0 %v8452_v18  ;;  %v1479_v31 = vmax.f32 %v7019_v8, %v8604_v51  ;;  %v3171_v1 = vrot.slane %v3170_v49, 1  ;;  %v3175_v59 = vrot.slane %v3174_v3, 2  ;;  %v1476_v36 = vmax.f32 %v1474_v42, %v1475_v45 }
 0x219   :  { %v4629_v24 = vrot.slane %v4587_v22, 4  ;;  %v2642_v56 = vrot.slane %v2590_v60, 4  ;;  %2493 = vperm.xlu1 %5244, %v6853_v57   ;;  %3518 = vperm.xlu0 %5251, %v6878_v43   ;;  %8605 = vst [vmem:[#allocation75_spill] sm:$0xff] %v7104_v21  ;;  %v7106_v39 = vmul.f32 0.4, %v3632_v23  ;;  %v4628_v34 = vadd.f32 %v4627_v27, %v4626_v62 }
 0x21a   :  { %v1480_v19 = vrot.slane %v1479_v31, 2  ;;  %v3636_v26 = vadd.f32 %v3635_v58, %v3634_v20  ;;  %v4165_v33 = vrot.slane %v4164_v50, 2  ;;  %v4171_v15 = vrot.slane %v4170_v35, 2  ;;  %v7112_v21 = vpop.eup %5471 }
 0x21b   :  { %8606 = vst [vmem:[#allocation10_spill] sm:$0xff] %v7106_v39  ;;  %v2444_v6 = vpop.permute.xlu1 %2443  ;;  %v3479_v8 = vpop.permute.xlu0 %3478  ;;  %v4630_v46 = vadd.f32 %v4629_v24, %v4587_v22  ;;  %v8608_v53 = vunpack.c.l.bf16 %v8607_v13  ;;  %v8609_v51 = vunpack.c.l.bf16 %v6641_v63  ;;  %v7114_v11 = vmul.f32 0.4, %v2635_v30  ;;  %v8616_v39 = vld [vmem:[#allocation55_spill] sm:$0xff] }
 0x21c   :  { %v2643_v42 = vadd.f32 %v2642_v56, %v2590_v60  ;;  %v1526_v62 = vsub.f32 %v6944_v2, %v1476_v36  ;;  %v1481_v20 = vmax.f32 %v1479_v31, %v1480_v19  ;;  %v3172_v23 = vadd.f32 %v3171_v1, %v3170_v49  ;;  %v8614_v36 = vld [vmem:[#allocation78_spill] sm:$0xff] }
 0x21d   :  { %v2589_v44 = vmul.f32 %v2444_v6, %v8608_v53  ;;  %v3593_v47 = vmul.f32 %v3479_v8, %v8609_v51  ;;  %8610 = vst [vmem:[#allocation9_spill] sm:$0xff] %v7114_v11  ;;  %5246 = vset.pattern.permute.xlu1 %v8452_v18  ;;  %5253 = vset.pattern.permute.xlu0 %v8459_v55  ;;  %v7121_v63 = vmul.f32 0.4, %v4628_v34  ;;  %v3637_v45 = vrot.slane %v3636_v26, 1  ;;  %v7126_v53 = vpop.f32.mrb[62].mxu1 }
 0x21e   :  { %v3176_v22 = vadd.f32 %v3175_v59, %v3174_v3  ;;  %3514 = vperm.xlu1 %5246, %v6853_v57   ;;  %4514 = vperm.xlu0 %5253, %v6878_v43   ;;  %v1586_v30 = vmul.f32 1.442695, %v1526_v62  ;;  %v1482_v60 = vrot.slane %v1481_v20, 1  ;;  %v4166_v24 = vadd.f32 %v4165_v33, %v4164_v50  ;;  %v8612_v3 = vld [vmem:[#allocation50_spill] sm:$0xff] }
 0x21f   :  { %v2636_v27 = vrot.slane %v2589_v44, 4  ;;  %v3645_v58 = vrot.slane %v3593_v47, 4  ;;  %8611 = vst [vmem:[#allocation107_spill] sm:$0xff] %v7121_v63  ;;  %v4172_v56 = vadd.f32 %v4171_v15, %v4170_v35  ;;  %v4631_v31 = vrot.slane %v4630_v46, 2  ;;  %v7128_v34 = vpop.eup %5473  ;;  %v7132_v35 = vpop.f32.mrb[63].mxu1  ;;  %v8615_v63 = vld [vmem:[#allocation76_spill] sm:$0xff] }
 0x220   :  { %v3475_v13 = vpop.permute.xlu1 %3474  ;;  %v4475_v2 = vpop.permute.xlu0 %4474  ;;  %v2644_v49 = vrot.slane %v2643_v42, 2  ;;  %v8613_v1 = vunpack.c.l.bf16 %v8612_v3  ;;  %5475 = vpow2.f32 %v1586_v30  ;;  %v1483_v50 = vmax.f32 %v1481_v20, %v1482_v60 }
 0x221   :  { %v2637_v6 = vadd.f32 %v2636_v27, %v2589_v44  ;;  %v3646_v8 = vadd.f32 %v3645_v58, %v3593_v47  ;;  %v4589_v19 = vmul.f32 %v4475_v2, %v8614_v36  ;;  %v3638_v33 = vadd.f32 %v3637_v45, %v3636_v26 }
 0x222   :  { %v3592_v59 = vmul.f32 %v3475_v13, %v8613_v1  ;;  %5248 = vset.pattern.permute.xlu1 %v8459_v55  ;;  %5255 = vset.pattern.permute.xlu0 %v8440_v25  ;;  %v3177_v15 = vrot.slane %v3176_v22, 1  ;;  %v4167_v27 = vrot.slane %v4166_v24, 1  ;;  %v4173_v58 = vrot.slane %v4172_v56, 1 }
 0x223   :  { %v2638_v51 = vrot.slane %v2637_v6, 2  ;;  %v3647_v62 = vrot.slane %v3646_v8, 2  ;;  %v4641_v47 = vrot.slane %v4589_v19, 4  ;;  %4510 = vperm.xlu1 %5248, %v6853_v57   ;;  %3056 = vperm.xlu0 %5255, %v6899_v28   ;;  %v1527_v13 = vsub.f32 %v6967_v48, %v1483_v50  ;;  %v8619_v50 = vld [vmem:[#allocation54_spill] sm:$0xff] }
 0x224   :  { %v3639_v44 = vrot.slane %v3592_v59, 4  ;;  %v7139_v2 = vpack.c.bf16 %v6996_v54, %v6992_v10  ;;  %v4632_v30 = vadd.f32 %v4631_v31, %v4630_v46  ;;  %v2645_v20 = vadd.f32 %v2644_v49, %v2643_v42 }
 0x225   :  { %v2639_v60 = vadd.f32 %v2638_v51, %v2637_v6  ;;  %v4471_v26 = vpop.permute.xlu1 %4470  ;;  %v3017_v45 = vpop.permute.xlu0 %3016  ;;  %v3648_v1 = vadd.f32 %v3647_v62, %v3646_v8  ;;  %v4642_v36 = vadd.f32 %v4641_v47, %v4589_v19  ;;  %v7143_v7 = vmul.f32 0.4, %v3172_v23 }
 0x226   :  { %v3640_v3 = vadd.f32 %v3639_v44, %v3592_v59  ;;  %v4588_v57 = vmul.f32 %v4471_v26, %v8615_v63  ;;  %v3128_v11 = vmul.f32 %v3017_v45, %v8616_v39  ;;  %v3178_v32 = vadd.f32 %v3177_v15, %v3176_v22 }
 0x227   :  { %8617 = vst [vmem:[#allocation50_spill] sm:$0xff] %v7143_v7  ;;  %5250 = vset.pattern.permute.xlu1 %v8440_v25  ;;  %5257 = vset.pattern.permute.xlu0 %v8446_v12  ;;  %v1588_v10 = vmul.f32 1.442695, %v1527_v13  ;;  %v7147_v54 = vmul.f32 0.4, %v3638_v33  ;;  %v4168_v46 = vadd.f32 %v4167_v27, %v4166_v24  ;;  %v4174_v63 = vadd.f32 %v4173_v58, %v4172_v56  ;;  %v7167_v27 = vpop.f32.mrb[64].mxu1 }
 0x228   :  { %v3641_v48 = vrot.slane %v3640_v3, 2  ;;  %v4635_v42 = vrot.slane %v4588_v57, 4  ;;  %v3185_v6 = vrot.slane %v3128_v11, 4  ;;  %3052 = vperm.xlu1 %5250, %v6878_v43   ;;  %4052 = vperm.xlu0 %5257, %v6899_v28   ;;  %v4633_v39 = vrot.slane %v4632_v30, 1 }
 0x229   :  { %8618 = vst [vmem:[#allocation78_spill] sm:$0xff] %v7147_v54  ;;  %v2646_v23 = vrot.slane %v2645_v20, 1  ;;  %5477 = vpow2.f32 %v1588_v10  ;;  %v2640_v22 = vrot.slane %v2639_v60, 1  ;;  %v3649_v8 = vrot.slane %v3648_v1, 1 }
 0x22a   :  { %v3642_v31 = vadd.f32 %v3641_v48, %v3640_v3  ;;  %v4643_v49 = vrot.slane %v4642_v36, 2  ;;  %v3013_v59 = vpop.permute.xlu1 %3012  ;;  %v4013_v19 = vpop.permute.xlu0 %4012  ;;  %v4636_v51 = vadd.f32 %v4635_v42, %v4588_v57  ;;  %v3186_v62 = vadd.f32 %v3185_v6, %v3128_v11 }
 0x22b   :  { %v3127_v24 = vmul.f32 %v3013_v59, %v8619_v50  ;;  %v4124_v33 = vmul.f32 %v4013_v19, %v6893_v17  ;;  %v7153_v15 = vpop.eup %5475  ;;  %v7155_v44 = vmul.f32 0.4, %v3178_v32  ;;  %v7157_v56 = vmul.f32 0.4, %v4168_v46  ;;  %v7171_v3 = vpop.f32.mrb[65].mxu1 }
 0x22c   :  { %8620 = vst [vmem:[#allocation76_spill] sm:$0xff] %v7153_v15  ;;  %5252 = vset.pattern.permute.xlu1 %v8446_v12  ;;  %5259 = vset.pattern.permute.xlu0 %v8445_v52  ;;  %v5158_v47 = vpack.c.bf16 %v6958_v37, %v6958_v37  ;;  %v7165_v11 = vpack.c.bf16 %v7044_v0, %v7039_v29  ;;  %v7173_v26 = vmul.f32 0.4, %v4174_v63  ;;  %v3643_v48 = vrot.slane %v3642_v31, 1 }
 0x22d   :  { %8621 = vst [vmem:[#allocation55_spill] sm:$0xff] %v7155_v44  ;;  %8622 = vst [vmem:[#allocation54_spill] sm:$0xff] %v7157_v56  ;;  %v4634_v17 = vadd.f32 %v4633_v39, %v4632_v30  ;;  %v2647_v58 = vadd.f32 %v2646_v23, %v2645_v20  ;;  %v3179_v13 = vrot.slane %v3127_v24, 4  ;;  %v4181_v32 = vrot.slane %v4124_v33, 4  ;;  %4048 = vperm.xlu1 %5252, %v6878_v43   ;;  %v8624_v43 = vld [vmem:[#allocation89_spill] sm:$0xff]  ;;  %v8625_v39 = vld [vmem:[#allocation12_spill] sm:$0xff] }
 0x22e   :  { %2508 = vperm.xlu0 %5259, %v6919_v9   ;;  %8623 = vst [vmem:[#allocation108_spill] sm:$0xff] %v7173_v26  ;;  %v2641_v45 = vadd.f32 %v2640_v22, %v2639_v60  ;;  %v3650_v37 = vadd.f32 %v3649_v8, %v3648_v1  ;;  %v4644_v57 = vadd.f32 %v4643_v49, %v4642_v36  ;;  %v4637_v29 = vrot.slane %v4636_v51, 2  ;;  %v8633_v36 = vld [vmem:[#allocation11_spill] sm:$0xff]  ;;  %v8643_v56 = vld [vmem:[#allocation80_spill] sm:$0xff] }
 0x22f   :  { %v3187_v0 = vrot.slane %v3186_v62, 2  ;;  %v4009_v10 = vpop.permute.xlu1 %4008  ;;  %v2459_v46 = vpop.permute.xlu0 %2458  ;;  %v1790_v30 = vsel %vm1273_vm4, %v7153_v15, 0.0  ;;  %v3180_v20 = vadd.f32 %v3179_v13, %v3127_v24  ;;  %v4182_v42 = vadd.f32 %v4181_v32, %v4124_v33 }
 0x230   :  { %v4123_v6 = vmul.f32 %v4009_v10, %v8624_v43  ;;  %v8626_v23 = vunpack.c.l.bf16 %v8625_v39  ;;  %v7180_v63 = vmul.f32 0.4, %v4634_v17  ;;  %v7182_v60 = vmul.f32 0.4, %v2647_v58 }
 0x231   :  { %5254 = vset.pattern.permute.xlu1 %v8445_v52  ;;  %v7186_v1 = vunpack.c.l.bf16 %v5158_v47  ;;  %v4645_v22 = vrot.slane %v4644_v57, 1  ;;  %v1791_v19 = vrot.slane %v1790_v30, 4  ;;  %v7193_v24 = vmul.f32 0.4, %v2641_v45 }
 0x232   :  { %v2592_v59 = vmul.f32 %v2459_v46, %v8626_v23  ;;  %8627 = vst [vmem:[#allocation89_spill] sm:$0xff] %v7180_v63  ;;  %8628 = vst [vmem:[#allocation12_spill] sm:$0xff] %v7182_v60  ;;  %5261 = vset.pattern.permute.xlu0 %v8452_v18  ;;  %v4175_v8 = vrot.slane %v4123_v6, 4  ;;  %2503 = vperm.xlu1 %5254, %v6899_v28   ;;  %v7195_v33 = vmul.f32 0.4, %v3650_v37  ;;  %v3181_v32 = vrot.slane %v3180_v20, 2 }
 0x233   :  { %8629 = vst [vmem:[#allocation109_spill] sm:$0xff] %v7186_v1  ;;  %3526 = vperm.xlu0 %5261, %v6919_v9   ;;  %v7191_v50 = vpop.eup %5477  ;;  %8631 = vst [vmem:[#allocation111_spill] sm:$0xff] %v7193_v24  ;;  %v3644_v17 = vadd.f32 %v3643_v48, %v3642_v31  ;;  %v4638_v58 = vadd.f32 %v4637_v29, %v4636_v51  ;;  %v3188_v13 = vadd.f32 %v3187_v0, %v3186_v62 }
 0x234   :  { %v2654_v49 = vrot.slane %v2592_v59, 4  ;;  %8630 = vst [vmem:[#allocation110_spill] sm:$0xff] %v7191_v50  ;;  %8632 = vst [vmem:[#allocation112_spill] sm:$0xff] %v7195_v33  ;;  %v4183_v10 = vrot.slane %v4182_v42, 2  ;;  %v2454_v46 = vpop.permute.xlu1 %2453  ;;  %v3487_v43 = vpop.permute.xlu0 %3486  ;;  %v4176_v39 = vadd.f32 %v4175_v8, %v4123_v6  ;;  %v8634_v1 = vunpack.c.l.bf16 %v8633_v36 }
 0x235   :  { %v8635_v60 = vunpack.c.l.bf16 %v6688_v61  ;;  %v4646_v24 = vadd.f32 %v4645_v22, %v4644_v57  ;;  %v1792_v31 = vadd.f32 %v1791_v19, %v1790_v30  ;;  %v1797_v51 = vsel %vm1273_vm4, %v7191_v50, 0.0 }
 0x236   :  { %v2655_v23 = vadd.f32 %v2654_v49, %v2592_v59  ;;  %v2591_v63 = vmul.f32 %v2454_v46, %v8634_v1  ;;  %5256 = vset.pattern.permute.xlu1 %v8452_v18  ;;  %v5161_v62 = vpack.c.bf16 %v7050_v14, %v7050_v14  ;;  %v7208_v37 = vmul.f32 0.4, %v3644_v17  ;;  %v8637_v49 = vld [vmem:[#allocation67_spill] sm:$0xff]  ;;  %v8639_v46 = vld [vmem:[#allocation34_spill] sm:$0xff] }
 0x237   :  { %v3595_v45 = vmul.f32 %v3487_v43, %v8635_v60  ;;  %5263 = vset.pattern.permute.xlu0 %v8459_v55  ;;  %3522 = vperm.xlu1 %5256, %v6899_v28   ;;  %v4639_v57 = vrot.slane %v4638_v58, 1  ;;  %v3189_v0 = vrot.slane %v3188_v13, 1  ;;  %v3182_v6 = vadd.f32 %v3181_v32, %v3180_v20 }
 0x238   :  { %8636 = vst [vmem:[#allocation11_spill] sm:$0xff] %v7208_v37  ;;  %v2648_v48 = vrot.slane %v2591_v63, 4  ;;  %4522 = vperm.xlu0 %5263, %v6919_v9   ;;  %v1798_v30 = vrot.slane %v1797_v51, 4  ;;  %v4184_v59 = vadd.f32 %v4183_v10, %v4182_v42  ;;  %v4177_v60 = vrot.slane %v4176_v39, 2  ;;  %v7216_v37 = vpop.f32.mrb[66].mxu1 }
 0x239   :  { %v3657_v29 = vrot.slane %v3595_v45, 4  ;;  %v2656_v1 = vrot.slane %v2655_v23, 2  ;;  %v3483_v22 = vpop.permute.xlu1 %3482  ;;  %v4483_v14 = vpop.permute.xlu0 %4482  ;;  %v8638_v19 = vunpack.c.l.bf16 %v8637_v49  ;;  %v1793_v47 = vrot.slane %v1792_v31, 2 }
 0x23a   :  { %v2649_v36 = vadd.f32 %v2648_v48, %v2591_v63  ;;  %v4591_v43 = vmul.f32 %v4483_v14, %v8639_v46  ;;  %v7218_v61 = vmul.f32 0.4, %v4646_v24  ;;  %v1799_v20 = vadd.f32 %v1798_v30, %v1797_v51  ;;  %v7224_v63 = vpop.f32.mrb[67].mxu1 }
 0x23b   :  { %v3658_v8 = vadd.f32 %v3657_v29, %v3595_v45  ;;  %v3594_v17 = vmul.f32 %v3483_v22, %v8638_v19  ;;  %5258 = vset.pattern.permute.xlu1 %v8459_v55  ;;  %v7222_v42 = vunpack.c.l.bf16 %v5161_v62  ;;  %v4640_v32 = vadd.f32 %v4639_v57, %v4638_v58  ;;  %v8642_v29 = vld [vmem:[#allocation94_spill] sm:$0xff] }
 0x23c   :  { %8640 = vst [vmem:[#allocation67_spill] sm:$0xff] %v7218_v61  ;;  %v2650_v33 = vrot.slane %v2649_v36, 2  ;;  %5265 = vset.pattern.permute.xlu0 %v8440_v25  ;;  %v3190_v10 = vadd.f32 %v3189_v0, %v3188_v13  ;;  %v4653_v48 = vrot.slane %v4591_v43, 4  ;;  %4518 = vperm.xlu1 %5258, %v6899_v28   ;;  %v3183_v24 = vrot.slane %v3182_v6, 1  ;;  %v8644_v13 = vld [vmem:[#allocation58_spill] sm:$0xff] }
 0x23d   :  { %8641 = vst [vmem:[#allocation34_spill] sm:$0xff] %v7222_v42  ;;  %v3651_v45 = vrot.slane %v3594_v17, 4  ;;  %3064 = vperm.xlu0 %5265, %v8642_v29   ;;  %v4185_v22 = vrot.slane %v4184_v59, 1  ;;  %v4178_v14 = vadd.f32 %v4177_v60, %v4176_v39  ;;  %v2657_v49 = vadd.f32 %v2656_v1, %v2655_v23  ;;  %v8648_v39 = vld [vmem:[#allocation7_spill] sm:$0xff] }
 0x23e   :  { %v2651_v19 = vadd.f32 %v2650_v33, %v2649_v36  ;;  %v3659_v46 = vrot.slane %v3658_v8, 2  ;;  %v4479_v51 = vpop.permute.xlu1 %4478  ;;  %v3025_v62 = vpop.permute.xlu0 %3024  ;;  %v1794_v30 = vadd.f32 %v1793_v47, %v1792_v31  ;;  %v4654_v42 = vadd.f32 %v4653_v48, %v4591_v43  ;;  %v8647_v33 = vld [vmem:[#allocation90_spill] sm:$0xff] }
 0x23f   :  { %v3652_v61 = vadd.f32 %v3651_v45, %v3594_v17  ;;  %v4590_v58 = vmul.f32 %v4479_v51, %v8643_v56  ;;  %v3130_v57 = vmul.f32 %v3025_v62, %v8644_v13  ;;  %v1800_v0 = vrot.slane %v1799_v20, 2  ;;  %v8650_v13 = vld [vmem:[#allocation6_spill] sm:$0xff] }
 0x240   :  { %v7230_v7 = vmul.f32 0.4, %v4640_v32  ;;  %v7232_v28 = vmul.f32 0.4, %v3190_v10  ;;  %5260 = vset.pattern.permute.xlu1 %v8440_v25  ;;  %v7238_v23 = vmul.f32 %v8648_v39, %v8647_v33  ;;  %v3184_v47 = vadd.f32 %v3183_v24, %v3182_v6  ;;  %v8649_v24 = vld [vmem:[#allocation56_spill] sm:$0xff] }
 0x241   :  { %v3653_v26 = vrot.slane %v3652_v61, 2  ;;  %5267 = vset.pattern.permute.xlu0 %v8446_v12  ;;  %v4186_v31 = vadd.f32 %v4185_v22, %v4184_v59  ;;  %v4647_v60 = vrot.slane %v4590_v58, 4  ;;  %v3197_v56 = vrot.slane %v3130_v57, 4  ;;  %3060 = vperm.xlu1 %5260, %v6919_v9  }
 0x242   :  { %8645 = vst [vmem:[#allocation94_spill] sm:$0xff] %v7230_v7  ;;  %8646 = vst [vmem:[#allocation80_spill] sm:$0xff] %v7232_v28  ;;  %4060 = vperm.xlu0 %5267, %v8642_v29   ;;  %v4179_v1 = vrot.slane %v4178_v14, 1  ;;  %v2658_v36 = vrot.slane %v2657_v49, 1  ;;  %v1795_v17 = vrot.slane %v1794_v30, 1  ;;  %v1484_v43 = vsel %vm1273_vm4, %v7054_v16, -inf }
 0x243   :  { %v2652_v32 = vrot.slane %v2651_v19, 1  ;;  %v3660_v10 = vadd.f32 %v3659_v46, %v3658_v8  ;;  %v4655_v45 = vrot.slane %v4654_v42, 2  ;;  %v3021_v48 = vpop.permute.xlu1 %3020  ;;  %v4021_v51 = vpop.permute.xlu0 %4020  ;;  %v1801_v62 = vadd.f32 %v1800_v0, %v1799_v20 }
 0x244   :  { %v3654_v6 = vadd.f32 %v3653_v26, %v3652_v61  ;;  %v4648_v59 = vadd.f32 %v4647_v60, %v4590_v58  ;;  %v3129_v22 = vmul.f32 %v3021_v48, %v8649_v24  ;;  %v4126_v33 = vmul.f32 %v4021_v51, %v8650_v13  ;;  %v7252_v46 = vpop.f32.mrb[68].mxu1  ;;  %v8653_v58 = vld [vmem:[#allocation71_spill] sm:$0xff] }
 0x245   :  { %v7246_v39 = vmul.f32 0.4, %v3184_v47  ;;  %v7248_v28 = vmul.f32 0.4, %v4186_v31  ;;  %v3198_v7 = vadd.f32 %v3197_v56, %v3130_v57  ;;  %5262 = vset.pattern.permute.xlu1 %v8446_v12  ;;  %v1485_v8 = vrot.slane %v1484_v43, 4  ;;  %v7256_v0 = vpop.f32.mrb[69].mxu1 }
 0x246   :  { %5269 = vset.pattern.permute.xlu0 %v8445_v52  ;;  %v4180_v44 = vadd.f32 %v4179_v1, %v4178_v14  ;;  %v2659_v20 = vadd.f32 %v2658_v36, %v2657_v49  ;;  %v3191_v26 = vrot.slane %v3129_v22, 4  ;;  %v4193_v61 = vrot.slane %v4126_v33, 4  ;;  %4056 = vperm.xlu1 %5262, %v6919_v9   ;;  %v8654_v1 = vld [vmem:[#allocation93_spill] sm:$0xff] }
 0x247   :  { %8651 = vst [vmem:[#allocation58_spill] sm:$0xff] %v7246_v39  ;;  %8652 = vst [vmem:[#allocation90_spill] sm:$0xff] %v7248_v28  ;;  %2518 = vperm.xlu0 %5269, %v8653_v58   ;;  %v2653_v47 = vadd.f32 %v2652_v32, %v2651_v19  ;;  %v3661_v31 = vrot.slane %v3660_v10, 1  ;;  %v1796_v57 = vadd.f32 %v1795_v17, %v1794_v30  ;;  %v3655_v56 = vrot.slane %v3654_v6, 1  ;;  %v8655_v28 = vld [vmem:[#allocation14_spill] sm:$0xff] }
 0x248   :  { %v1486_v60 = vmax.f32 %v1484_v43, %v1485_v8  ;;  %v4656_v48 = vadd.f32 %v4655_v45, %v4654_v42  ;;  %v4649_v51 = vrot.slane %v4648_v59, 2  ;;  %v4017_v24 = vpop.permute.xlu1 %4016  ;;  %v2469_v13 = vpop.permute.xlu0 %2468  ;;  %v1802_v39 = vrot.slane %v1801_v62, 1 }
 0x249   :  { %v3199_v14 = vrot.slane %v3198_v7, 2  ;;  %v3192_v49 = vadd.f32 %v3191_v26, %v3129_v22  ;;  %v4125_v36 = vmul.f32 %v4017_v24, %v8654_v1  ;;  %v8656_v9 = vunpack.c.l.bf16 %v8655_v28  ;;  %v8660_v1 = vld [vmem:[#allocation13_spill] sm:$0xff] }
 0x24a   :  { %v7261_v50 = vmul.f32 0.4, %v4180_v44  ;;  %v7263_v15 = vmul.f32 0.4, %v2659_v20  ;;  %v4194_v19 = vadd.f32 %v4193_v61, %v4126_v33  ;;  %5264 = vset.pattern.permute.xlu1 %v8445_v52  ;;  %v1487_v42 = vrot.slane %v1486_v60, 2 }
 0x24b   :  { %v2594_v54 = vmul.f32 %v2469_v13, %v8656_v9  ;;  %5271 = vset.pattern.permute.xlu0 %v8452_v18  ;;  %v7267_v30 = vmul.f32 0.4, %v2653_v47  ;;  %v3662_v17 = vadd.f32 %v3661_v31, %v3660_v10  ;;  %v4187_v43 = vrot.slane %v4125_v36, 4  ;;  %2513 = vperm.xlu1 %5264, %v8642_v29   ;;  %v8662_v9 = vld [vmem:[#allocation72_spill] sm:$0xff] }
 0x24c   :  { %8657 = vst [vmem:[#allocation7_spill] sm:$0xff] %v7261_v50  ;;  %8658 = vst [vmem:[#allocation56_spill] sm:$0xff] %v7263_v15  ;;  %3534 = vperm.xlu0 %5271, %v8653_v58   ;;  %v3656_v28 = vadd.f32 %v3655_v56, %v3654_v6  ;;  %v4657_v44 = vrot.slane %v4656_v48, 1  ;;  %v1803_v45 = vadd.f32 %v1802_v39, %v1801_v62  ;;  %v3193_v20 = vrot.slane %v3192_v49, 2  ;;  %v7275_v50 = vpop.f32.mrb[70].mxu1  ;;  %v8667_v56 = vld [vmem:[#allocation97_spill] sm:$0xff] }
 0x24d   :  { %8659 = vst [vmem:[#allocation6_spill] sm:$0xff] %v7267_v30  ;;  %v2666_v32 = vrot.slane %v2594_v54, 4  ;;  %v1488_v22 = vmax.f32 %v1486_v60, %v1487_v42  ;;  %v4650_v8 = vadd.f32 %v4649_v51, %v4648_v59  ;;  %v3200_v33 = vadd.f32 %v3199_v14, %v3198_v7  ;;  %v2464_v61 = vpop.permute.xlu1 %2463  ;;  %v3495_v24 = vpop.permute.xlu0 %3494  ;;  %8664 = vst [vmem:[#allocation71_spill] sm:$0xff] %v7275_v50 }
 0x24e   :  { %v4188_v26 = vadd.f32 %v4187_v43, %v4125_v36  ;;  %v4195_v13 = vrot.slane %v4194_v19, 2  ;;  %v8661_v10 = vunpack.c.l.bf16 %v8660_v1  ;;  %v8663_v30 = vunpack.c.l.bf16 %v8662_v9  ;;  %v7281_v59 = vpop.f32.mrb[71].mxu1  ;;  %v8671_v9 = vld [vmem:[#allocation37_spill] sm:$0xff] }
 0x24f   :  { %v2667_v47 = vadd.f32 %v2666_v32, %v2594_v54  ;;  %v7277_v6 = vmul.f32 0.4, %v3662_v17  ;;  %5266 = vset.pattern.permute.xlu1 %v8452_v18  ;;  %5479 = vrcp.f32 %v1796_v57  ;;  %v1489_v7 = vrot.slane %v1488_v22, 1  ;;  %8666 = vst [vmem:[#allocation14_spill] sm:$0xff] %v7281_v59 }
 0x250   :  { %v2593_v31 = vmul.f32 %v2464_v61, %v8661_v10  ;;  %v3597_v15 = vmul.f32 %v3495_v24, %v8663_v30  ;;  %v4189_v62 = vrot.slane %v4188_v26, 2  ;;  %5275 = vset.pattern.permute.xlu0 %v8440_v25  ;;  %v4658_v54 = vadd.f32 %v4657_v44, %v4656_v48  ;;  %3530 = vperm.xlu1 %5266, %v8642_v29   ;;  %v8669_v24 = vld [vmem:[#allocation62_spill] sm:$0xff] }
 0x251   :  { %8665 = vst [vmem:[#allocation93_spill] sm:$0xff] %v7277_v6  ;;  %3072 = vperm.xlu0 %5275, %v8667_v56   ;;  %5481 = vrcp.f32 %v1803_v45  ;;  %v7285_v51 = vmul.f32 0.4, %v3656_v28  ;;  %v4651_v14 = vrot.slane %v4650_v8, 1  ;;  %v1490_v36 = vmax.f32 %v1488_v22, %v1489_v7 }
 0x252   :  { %v2660_v39 = vrot.slane %v2593_v31, 4  ;;  %v3669_v60 = vrot.slane %v3597_v15, 4  ;;  %v1491_v42 = vsel %vm1273_vm4, %v7069_v38, -inf  ;;  %v3201_v30 = vrot.slane %v3200_v33, 1  ;;  %v3491_v32 = vpop.permute.xlu1 %3490  ;;  %v4491_v48 = vpop.permute.xlu0 %4490 }
 0x253   :  { %8668 = vst [vmem:[#allocation13_spill] sm:$0xff] %v7285_v51  ;;  %v3194_v57 = vadd.f32 %v3193_v20, %v3192_v49  ;;  %v4196_v17 = vadd.f32 %v4195_v13, %v4194_v19  ;;  %v2668_v43 = vrot.slane %v2667_v47, 2  ;;  %v4190_v44 = vadd.f32 %v4189_v62, %v4188_v26 }
 0x254   :  { %v2661_v61 = vadd.f32 %v2660_v39, %v2593_v31  ;;  %v8670_v1 = vunpack.c.l.bf16 %v8669_v24  ;;  %v4593_v45 = vmul.f32 %v4491_v48, %v8671_v9  ;;  %v7292_v28 = vmul.f32 0.4, %v4658_v54  ;;  %5268 = vset.pattern.permute.xlu1 %v8459_v55  ;;  %v8673_v48 = vld [vmem:[#allocation35_spill] sm:$0xff] }
 0x255   :  { %v3670_v51 = vadd.f32 %v3669_v60, %v3597_v15  ;;  %5277 = vset.pattern.permute.xlu0 %v8446_v12  ;;  %v1528_v49 = vsub.f32 %v7054_v16, %v1490_v36  ;;  %v1492_v19 = vrot.slane %v1491_v42, 4  ;;  %v4652_v22 = vadd.f32 %v4651_v14, %v4650_v8  ;;  %4526 = vperm.xlu1 %5268, %v8642_v29   ;;  %v8674_v29 = vld [vmem:[#allocation60_spill] sm:$0xff] }
 0x256   :  { %v3596_v10 = vmul.f32 %v3491_v32, %v8670_v1  ;;  %8672 = vst [vmem:[#allocation72_spill] sm:$0xff] %v7292_v28  ;;  %v4665_v13 = vrot.slane %v4593_v45, 4  ;;  %4068 = vperm.xlu0 %5277, %v8667_v56   ;;  %v5164_v26 = vpack.c.bf16 %v7063_v4, %v7063_v4  ;;  %v3202_v31 = vadd.f32 %v3201_v30, %v3200_v33 }
 0x257   :  { %v3195_v62 = vrot.slane %v3194_v57, 1  ;;  %v1590_v15 = vmul.f32 1.442695, %v1528_v49  ;;  %v1493_v7 = vmax.f32 %v1491_v42, %v1492_v19  ;;  %v4197_v54 = vrot.slane %v4196_v17, 1  ;;  %v4487_v16 = vpop.permute.xlu1 %4486  ;;  %v3033_v36 = vpop.permute.xlu0 %3032 }
 0x258   :  { %v3663_v20 = vrot.slane %v3596_v10, 4  ;;  %v4191_v39 = vrot.slane %v4190_v44, 1  ;;  %v2669_v60 = vadd.f32 %v2668_v43, %v2667_v47  ;;  %v2662_v32 = vrot.slane %v2661_v61, 2 }
 0x259   :  { %v3671_v8 = vrot.slane %v3670_v51, 2  ;;  %v4592_v24 = vmul.f32 %v4487_v16, %v8673_v48  ;;  %v3132_v1 = vmul.f32 %v3033_v36, %v8674_v29  ;;  %v7303_v9 = vpop.eup %5479  ;;  %v4666_v28 = vadd.f32 %v4665_v13, %v4593_v45  ;;  %5270 = vset.pattern.permute.xlu1 %v8440_v25 }
 0x25a   :  { %v3664_v14 = vadd.f32 %v3663_v20, %v3596_v10  ;;  %5278 = vset.pattern.permute.xlu0 %v8459_v55  ;;  %5483 = vpow2.f32 %v1590_v15  ;;  %v7307_v4 = vunpack.c.l.bf16 %v5164_v26  ;;  %v1494_v33 = vrot.slane %v1493_v7, 2  ;;  %3068 = vperm.xlu1 %5270, %v8653_v58  }
 0x25b   :  { %v7309_v47 = vpop.eup %5481  ;;  %v7311_v42 = vmul.f32 0.4, %v4652_v22  ;;  %v7313_v30 = vmul.f32 0.4, %v3202_v31  ;;  %v4659_v43 = vrot.slane %v4592_v24, 4  ;;  %v3209_v10 = vrot.slane %v3132_v1, 4  ;;  %4534 = vperm.xlu0 %5278, %v8667_v56  }
 0x25c   :  { %8675 = vst [vmem:[#allocation97_spill] sm:$0xff] %v7307_v4  ;;  %8676 = vst [vmem:[#allocation62_spill] sm:$0xff] %v7309_v47  ;;  %v3196_v45 = vadd.f32 %v3195_v62, %v3194_v57  ;;  %v2670_v49 = vrot.slane %v2669_v60, 1  ;;  %v2663_v19 = vadd.f32 %v2662_v32, %v2661_v61  ;;  %v1495_v20 = vmax.f32 %v1493_v7, %v1494_v33  ;;  %v3029_v36 = vpop.permute.xlu1 %3028  ;;  %v4029_v48 = vpop.permute.xlu0 %4028  ;;  %v8679_v31 = vld [vmem:[#allocation59_spill] sm:$0xff] }
 0x25d   :  { %8677 = vst [vmem:[#allocation37_spill] sm:$0xff] %v7311_v42  ;;  %8678 = vst [vmem:[#allocation35_spill] sm:$0xff] %v7313_v30  ;;  %v4198_v13 = vadd.f32 %v4197_v54, %v4196_v17  ;;  %v4192_v26 = vadd.f32 %v4191_v39, %v4190_v44  ;;  %v3672_v15 = vadd.f32 %v3671_v8, %v3670_v51  ;;  %v3665_v16 = vrot.slane %v3664_v14, 2  ;;  %v8680_v30 = vld [vmem:[#allocation98_spill] sm:$0xff]  ;;  %v7329_v44 = vpop.f32.mrb[72].mxu1  ;;  %v8683_v32 = vld [vmem:[#allocation99_spill] sm:$0xff] }
 0x25e   :  { %v4667_v22 = vrot.slane %v4666_v28, 2  ;;  %v4660_v29 = vadd.f32 %v4659_v43, %v4592_v24  ;;  %v3131_v4 = vmul.f32 %v3029_v36, %v8679_v31  ;;  %v4128_v6 = vmul.f32 %v4029_v48, %v8680_v30  ;;  %5272 = vset.pattern.permute.xlu1 %v8446_v12  ;;  %8682 = vst [vmem:[#allocation60_spill] sm:$0xff] %v7329_v44  ;;  %v7333_v8 = vpop.f32.mrb[73].mxu1  ;;  %v8688_v31 = vld [vmem:[#allocation48_spill] sm:$0xff] }
 0x25f   :  { %v3210_v42 = vadd.f32 %v3209_v10, %v3132_v1  ;;  %5279 = vset.pattern.permute.xlu0 %v8445_v52  ;;  %v8681_v57 = vrot.slane %v7165_v11, 4  ;;  %v1496_v17 = vrot.slane %v1495_v20, 1  ;;  %v7327_v51 = vpack.c.bf16 %v7088_v5, %v7082_v40  ;;  %4064 = vperm.xlu1 %5272, %v8653_v58   ;;  %8684 = vst [vmem:[#allocation59_spill] sm:$0xff] %v7333_v8  ;;  %v8689_v44 = vld [vmem:[#allocation16_spill] sm:$0xff] }
 0x260   :  { %v2671_v62 = vadd.f32 %v2670_v49, %v2669_v60  ;;  %v2664_v7 = vrot.slane %v2663_v19, 1  ;;  %v3203_v54 = vrot.slane %v3131_v4, 4  ;;  %v4205_v39 = vrot.slane %v4128_v6, 4  ;;  %2528 = vperm.xlu0 %5279, %v8683_v32  }
 0x261   :  { %v7323_v61 = vunpack.c.l.bf16 %v8681_v57  ;;  %v7335_v24 = vmul.f32 0.4, %v3196_v45  ;;  %v7337_v1 = vmul.f32 0.4, %v4198_v13  ;;  %v3673_v33 = vrot.slane %v3672_v15, 1  ;;  %v4025_v10 = vpop.permute.xlu1 %4024  ;;  %v2479_v49 = vpop.permute.xlu0 %2478 }
 0x262   :  { %v1497_v30 = vmax.f32 %v1495_v20, %v1496_v17  ;;  %v7339_v40 = vmul.f32 0.4, %v4192_v26  ;;  %v3666_v5 = vadd.f32 %v3665_v16, %v3664_v14  ;;  %v4668_v43 = vadd.f32 %v4667_v22, %v4666_v28 }
 0x263   :  { %8685 = vst [vmem:[#allocation98_spill] sm:$0xff] %v7335_v24  ;;  %8686 = vst [vmem:[#allocation99_spill] sm:$0xff] %v7337_v1  ;;  %v4661_v60 = vrot.slane %v4660_v29, 2  ;;  %v3211_v36 = vrot.slane %v3210_v42, 2  ;;  %v3204_v48 = vadd.f32 %v3203_v54, %v3131_v4  ;;  %v4127_v57 = vmul.f32 %v4025_v10, %v8688_v31  ;;  %5273 = vset.pattern.permute.xlu1 %v8459_v55 }
 0x264   :  { %8687 = vst [vmem:[#allocation113_spill] sm:$0xff] %v7339_v40  ;;  %v8690_v47 = vunpack.c.l.bf16 %v8689_v44  ;;  %v7344_v45 = vpop.eup %5483  ;;  %v7346_v13 = vmul.f32 0.4, %v2671_v62  ;;  %v2665_v24 = vadd.f32 %v2664_v7, %v2663_v19  ;;  %v4206_v20 = vadd.f32 %v4205_v39, %v4128_v6  ;;  %5281 = vset.pattern.permute.xlu0 %v8452_v18  ;;  %4530 = vperm.xlu1 %5273, %v8653_v58   ;;  %v7363_v40 = vpop.f32.mrb[74].mxu1 }
 0x265   :  { %8691 = vst [vmem:[#allocation48_spill] sm:$0xff] %v7344_v45  ;;  %v1529_v28 = vsub.f32 %v7069_v38, %v1497_v30  ;;  %v3674_v14 = vadd.f32 %v3673_v33, %v3672_v15  ;;  %v4199_v26 = vrot.slane %v4127_v57, 4  ;;  %3542 = vperm.xlu0 %5281, %v8683_v32   ;;  %v3667_v22 = vrot.slane %v3666_v5, 1  ;;  %v8694_v33 = vld [vmem:[#allocation15_spill] sm:$0xff] }
 0x266   :  { %v2596_v8 = vmul.f32 %v2479_v49, %v8690_v47  ;;  %8692 = vst [vmem:[#allocation16_spill] sm:$0xff] %v7346_v13  ;;  %v8693_v47 = vrot.slane %v7139_v2, 4  ;;  %v4662_v19 = vadd.f32 %v4661_v60, %v4660_v29  ;;  %v1804_v6 = vsel %vm1273_vm4, %v7344_v45, 0.0  ;;  %v2474_v7 = vpop.permute.xlu1 %2473  ;;  %v3503_v54 = vpop.permute.xlu0 %3502  ;;  %v8696_v49 = vld [vmem:[#allocation92_spill] sm:$0xff]  ;;  %8698 = vst [vmem:[#allocation15_spill] sm:$0xff] %v7363_v40 }
 0x267   :  { %v1592_v17 = vmul.f32 1.442695, %v1529_v28  ;;  %v4669_v44 = vrot.slane %v4668_v43, 1  ;;  %v3212_v62 = vadd.f32 %v3211_v36, %v3210_v42  ;;  %v3205_v38 = vrot.slane %v3204_v48, 2  ;;  %v7369_v36 = vpop.f32.mrb[75].mxu1 }
 0x268   :  { %v2678_v4 = vrot.slane %v2596_v8, 4  ;;  %v7355_v16 = vunpack.c.l.bf16 %v8693_v47  ;;  %v4200_v15 = vadd.f32 %v4199_v26, %v4127_v57  ;;  %v4207_v39 = vrot.slane %v4206_v20, 2  ;;  %5274 = vset.pattern.permute.xlu1 %v8445_v52  ;;  %8700 = vst [vmem:[#allocation114_spill] sm:$0xff] %v7369_v36  ;;  %v8705_v36 = vld [vmem:[#allocation32_spill] sm:$0xff] }
 0x269   :  { %v8695_v30 = vunpack.c.l.bf16 %v8694_v33  ;;  %v8697_v31 = vunpack.c.l.bf16 %v8696_v49  ;;  %v7365_v29 = vmul.f32 0.4, %v2665_v24  ;;  %5285 = vset.pattern.permute.xlu0 %v8440_v25  ;;  %v1805_v42 = vrot.slane %v1804_v6, 4  ;;  %2523 = vperm.xlu1 %5274, %v8667_v56  }
 0x26a   :  { %v2679_v58 = vadd.f32 %v2678_v4, %v2596_v8  ;;  %v4201_v60 = vrot.slane %v4200_v15, 2  ;;  %5485 = vpow2.f32 %v1592_v17  ;;  %v3668_v8 = vadd.f32 %v3667_v22, %v3666_v5  ;;  %v8701_v4 = vld [vmem:[#allocation100_spill] sm:$0xff]  ;;  %v8703_v5 = vld [vmem:[#allocation86_spill] sm:$0xff] }
 0x26b   :  { %v2595_v10 = vmul.f32 %v2474_v7, %v8695_v30  ;;  %v3599_v47 = vmul.f32 %v3503_v54, %v8697_v31  ;;  %8699 = vst [vmem:[#allocation92_spill] sm:$0xff] %v7365_v29  ;;  %v4663_v57 = vrot.slane %v4662_v19, 1  ;;  %3080 = vperm.xlu0 %5285, %v8701_v4   ;;  %v7373_v7 = vmul.f32 0.4, %v3674_v14  ;;  %v3499_v17 = vpop.permute.xlu1 %3498  ;;  %v4499_v13 = vpop.permute.xlu0 %4498 }
 0x26c   :  { %v4670_v24 = vadd.f32 %v4669_v44, %v4668_v43  ;;  %v3213_v54 = vrot.slane %v3212_v62, 1  ;;  %v3206_v33 = vadd.f32 %v3205_v38, %v3204_v48  ;;  %v4208_v30 = vadd.f32 %v4207_v39, %v4206_v20 }
 0x26d   :  { %v2672_v28 = vrot.slane %v2595_v10, 4  ;;  %v3681_v26 = vrot.slane %v3599_v47, 4  ;;  %8702 = vst [vmem:[#allocation100_spill] sm:$0xff] %v7373_v7  ;;  %v4202_v49 = vadd.f32 %v4201_v60, %v4200_v15  ;;  %v2680_v31 = vrot.slane %v2679_v58, 2  ;;  %5276 = vset.pattern.permute.xlu1 %v8452_v18 }
 0x26e   :  { %v8704_v22 = vunpack.c.l.bf16 %v8703_v5  ;;  %v4595_v40 = vmul.f32 %v4499_v13, %v8705_v36  ;;  %v1806_v59 = vadd.f32 %v1805_v42, %v1804_v6  ;;  %v7378_v50 = vmul.f32 0.4, %v3668_v8  ;;  %3538 = vperm.xlu1 %5276, %v8667_v56   ;;  %v8708_v56 = vld [vmem:[#allocation44_spill] sm:$0xff] }
 0x26f   :  { %v2673_v29 = vadd.f32 %v2672_v28, %v2595_v10  ;;  %v3682_v1 = vadd.f32 %v3681_v26, %v3599_v47  ;;  %v4664_v14 = vadd.f32 %v4663_v57, %v4662_v19  ;;  %5287 = vset.pattern.permute.xlu0 %v8446_v12  ;;  %v3214_v48 = vadd.f32 %v3213_v54, %v3212_v62  ;;  %v8709_v28 = vld [vmem:[#allocation63_spill] sm:$0xff]  ;;  %v8715_v19 = vld [vmem:[#allocation69_spill] sm:$0xff] }
 0x270   :  { %v3598_v45 = vmul.f32 %v3499_v17, %v8704_v22  ;;  %8706 = vst [vmem:[#allocation86_spill] sm:$0xff] %v7378_v50  ;;  %v3207_v20 = vrot.slane %v3206_v33, 1  ;;  %v4677_v38 = vrot.slane %v4595_v40, 4  ;;  %4076 = vperm.xlu0 %5287, %v8701_v4   ;;  %v7385_v13 = vmul.f32 0.4, %v4670_v24  ;;  %v4495_v62 = vpop.permute.xlu1 %4494  ;;  %v3041_v60 = vpop.permute.xlu0 %3040 }
 0x271   :  { %v2674_v7 = vrot.slane %v2673_v29, 2  ;;  %v4209_v6 = vrot.slane %v4208_v30, 1  ;;  %v7390_v15 = vpack.c.bf16 %v7132_v35, %v7126_v53  ;;  %v4203_v39 = vrot.slane %v4202_v49, 1 }
 0x272   :  { %v3675_v44 = vrot.slane %v3598_v45, 4  ;;  %8707 = vst [vmem:[#allocation32_spill] sm:$0xff] %v7385_v13  ;;  %v2681_v10 = vadd.f32 %v2680_v31, %v2679_v58  ;;  %v3683_v47 = vrot.slane %v3682_v1, 2  ;;  %v1807_v42 = vrot.slane %v1806_v59, 2  ;;  %5280 = vset.pattern.permute.xlu1 %v8440_v25 }
 0x273   :  { %v2675_v36 = vadd.f32 %v2674_v7, %v2673_v29  ;;  %v4594_v57 = vmul.f32 %v4495_v62, %v8708_v56  ;;  %v3134_v26 = vmul.f32 %v3041_v60, %v8709_v28  ;;  %v7396_v54 = vmul.f32 0.4, %v4664_v14  ;;  %3076 = vperm.xlu1 %5280, %v8683_v32   ;;  %v8713_v7 = vld [vmem:[#allocation42_spill] sm:$0xff]  ;;  %v8714_v56 = vld [vmem:[#allocation61_spill] sm:$0xff] }
 0x274   :  { %v3676_v8 = vadd.f32 %v3675_v44, %v3598_v45  ;;  %v7394_v24 = vpop.eup %5485  ;;  %v7398_v17 = vmul.f32 0.4, %v3214_v48  ;;  %v3208_v53 = vadd.f32 %v3207_v20, %v3206_v33  ;;  %v4678_v35 = vadd.f32 %v4677_v38, %v4595_v40  ;;  %5288 = vset.pattern.permute.xlu0 %v8459_v55  ;;  %v8712_v45 = vld [vmem:[#allocation91_spill] sm:$0xff] }
 0x275   :  { %8710 = vst [vmem:[#allocation44_spill] sm:$0xff] %v7396_v54  ;;  %v4210_v58 = vadd.f32 %v4209_v6, %v4208_v30  ;;  %v4671_v31 = vrot.slane %v4594_v57, 4  ;;  %v3221_v29 = vrot.slane %v3134_v26, 4  ;;  %4542 = vperm.xlu0 %5288, %v8701_v4   ;;  %v7406_v5 = vmul.f32 %v8713_v7, %v8712_v45  ;;  %v3037_v30 = vpop.permute.xlu1 %3036  ;;  %v4037_v38 = vpop.permute.xlu0 %4036 }
 0x276   :  { %8711 = vst [vmem:[#allocation63_spill] sm:$0xff] %v7398_v17  ;;  %v4204_v22 = vadd.f32 %v4203_v39, %v4202_v49  ;;  %v2682_v14 = vrot.slane %v2681_v10, 1  ;;  %v3684_v48 = vadd.f32 %v3683_v47, %v3682_v1  ;;  %v1811_v40 = vsel %vm1273_vm4, %v7394_v24, 0.0  ;;  %v7425_v17 = vpop.f32.mrb[76].mxu1 }
 0x277   :  { %v2676_v33 = vrot.slane %v2675_v36, 1  ;;  %v3677_v20 = vrot.slane %v3676_v8, 2  ;;  %v4672_v44 = vadd.f32 %v4671_v31, %v4594_v57  ;;  %v1808_v6 = vadd.f32 %v1807_v42, %v1806_v59  ;;  %5282 = vset.pattern.permute.xlu1 %v8446_v12 }
 0x278   :  { %v4679_v62 = vrot.slane %v4678_v35, 2  ;;  %v3222_v60 = vadd.f32 %v3221_v29, %v3134_v26  ;;  %v3133_v28 = vmul.f32 %v3037_v30, %v8714_v56  ;;  %v4130_v43 = vmul.f32 %v4037_v38, %v8715_v19  ;;  %4072 = vperm.xlu1 %5282, %v8683_v32   ;;  %v8719_v26 = vld [vmem:[#allocation83_spill] sm:$0xff] }
 0x279   :  { %v7412_v45 = vmul.f32 0.4, %v3208_v53  ;;  %v7414_v49 = vmul.f32 0.4, %v4210_v58  ;;  %v4673_v1 = vrot.slane %v4672_v44, 2  ;;  %5289 = vset.pattern.permute.xlu0 %v8445_v52  ;;  %v1812_v39 = vrot.slane %v1811_v40, 4 }
 0x27a   :  { %v7418_v47 = vmul.f32 0.4, %v4204_v22  ;;  %v2683_v57 = vadd.f32 %v2682_v14, %v2681_v10  ;;  %v3215_v59 = vrot.slane %v3133_v28, 4  ;;  %v4217_v42 = vrot.slane %v4130_v43, 4  ;;  %2538 = vperm.xlu0 %5289, %v8719_v26   ;;  %v4033_v56 = vpop.permute.xlu1 %4032  ;;  %v2489_v54 = vpop.permute.xlu0 %2488  ;;  %v8720_v22 = vld [vmem:[#allocation84_spill] sm:$0xff]  ;;  %v8721_v10 = vld [vmem:[#allocation18_spill] sm:$0xff] }
 0x27b   :  { %8716 = vst [vmem:[#allocation91_spill] sm:$0xff] %v7412_v45  ;;  %8717 = vst [vmem:[#allocation42_spill] sm:$0xff] %v7414_v49  ;;  %v2677_v19 = vadd.f32 %v2676_v33, %v2675_v36  ;;  %v3685_v53 = vrot.slane %v3684_v48, 1  ;;  %v3678_v31 = vadd.f32 %v3677_v20, %v3676_v8  ;;  %v1809_v58 = vrot.slane %v1808_v6, 1 }
 0x27c   :  { %8718 = vst [vmem:[#allocation61_spill] sm:$0xff] %v7418_v47  ;;  %v4680_v29 = vadd.f32 %v4679_v62, %v4678_v35  ;;  %v3223_v7 = vrot.slane %v3222_v60, 2  ;;  %v3216_v30 = vadd.f32 %v3215_v59, %v3133_v28  ;;  %v4218_v38 = vadd.f32 %v4217_v42, %v4130_v43  ;;  %5283 = vset.pattern.permute.xlu1 %v8459_v55  ;;  %v7432_v35 = vpop.f32.mrb[77].mxu1 }
 0x27d   :  { %v4674_v45 = vadd.f32 %v4673_v1, %v4672_v44  ;;  %v4129_v47 = vmul.f32 %v4033_v56, %v8720_v22  ;;  %v8722_v14 = vunpack.c.l.bf16 %v8721_v10  ;;  %v1813_v50 = vadd.f32 %v1812_v39, %v1811_v40  ;;  %4538 = vperm.xlu1 %5283, %v8683_v32   ;;  %v8725_v10 = vld [vmem:[#allocation17_spill] sm:$0xff] }
 0x27e   :  { %v7427_v13 = vmul.f32 0.4, %v2683_v57  ;;  %v3217_v36 = vrot.slane %v3216_v30, 2  ;;  %v4219_v8 = vrot.slane %v4218_v38, 2  ;;  %5291 = vset.pattern.permute.xlu0 %v8452_v18  ;;  %v3686_v33 = vadd.f32 %v3685_v53, %v3684_v48 }
 0x27f   :  { %v2598_v49 = vmul.f32 %v2489_v54, %v8722_v14  ;;  %v4211_v20 = vrot.slane %v4129_v47, 4  ;;  %3550 = vperm.xlu0 %5291, %v8719_v26   ;;  %v1810_v54 = vadd.f32 %v1809_v58, %v1808_v6  ;;  %v7436_v40 = vmul.f32 0.4, %v2677_v19  ;;  %v2484_v42 = vpop.permute.xlu1 %2483  ;;  %v3511_v56 = vpop.permute.xlu0 %3510 }
 0x280   :  { %8723 = vst [vmem:[#allocation69_spill] sm:$0xff] %v7427_v13  ;;  %v3679_v62 = vrot.slane %v3678_v31, 1  ;;  %v4681_v28 = vrot.slane %v4680_v29, 1  ;;  %v3910_v1 = vrot.slane %v7390_v15, 4  ;;  %v4675_v39 = vrot.slane %v4674_v45, 1 }
 0x281   :  { %v2690_v44 = vrot.slane %v2598_v49, 4  ;;  %8724 = vst [vmem:[#allocation83_spill] sm:$0xff] %v7436_v40  ;;  %v3224_v57 = vadd.f32 %v3223_v7, %v3222_v60  ;;  %v4212_v59 = vadd.f32 %v4211_v20, %v4129_v47  ;;  %v1814_v22 = vrot.slane %v1813_v50, 2  ;;  %5284 = vset.pattern.permute.xlu1 %v8445_v52 }
 0x282   :  { %v3218_v48 = vadd.f32 %v3217_v36, %v3216_v30  ;;  %v4220_v53 = vadd.f32 %v4219_v8, %v4218_v38  ;;  %v8726_v14 = vunpack.c.l.bf16 %v8725_v10  ;;  %v8727_v43 = vunpack.c.l.bf16 %v7139_v2  ;;  %2533 = vperm.xlu1 %5284, %v8701_v4   ;;  %v8729_v38 = vld [vmem:[#allocation85_spill] sm:$0xff] }
 0x283   :  { %v7443_v19 = vmul.f32 0.4, %v3686_v33  ;;  %v4213_v58 = vrot.slane %v4212_v59, 2  ;;  %v2691_v40 = vadd.f32 %v2690_v44, %v2598_v49  ;;  %5295 = vset.pattern.permute.xlu0 %v8440_v25  ;;  %5487 = vrcp.f32 %v1810_v54  ;;  %v8730_v8 = vld [vmem:[#allocation101_spill] sm:$0xff]  ;;  %v7457_v33 = vpop.f32.mrb[78].mxu1 }
 0x284   :  { %v2597_v32 = vmul.f32 %v2484_v42, %v8726_v14  ;;  %v3601_v6 = vmul.f32 %v3511_v56, %v8727_v43  ;;  %v3680_v60 = vadd.f32 %v3679_v62, %v3678_v31  ;;  %v4682_v47 = vadd.f32 %v4681_v28, %v4680_v29  ;;  %3088 = vperm.xlu0 %5295, %v8729_v38   ;;  %v3507_v44 = vpop.permute.xlu1 %3506  ;;  %v4507_v54 = vpop.permute.xlu0 %4506  ;;  %v8732_v56 = vld [vmem:[#allocation46_spill] sm:$0xff] }
 0x285   :  { %8728 = vst [vmem:[#allocation84_spill] sm:$0xff] %v7443_v19  ;;  %v4676_v36 = vadd.f32 %v4675_v39, %v4674_v45  ;;  %v3225_v2 = vrot.slane %v3224_v57, 1  ;;  %v7451_v43 = vmul.f32 %v7112_v21, %v8730_v8  ;;  %v7455_v49 = vpack.c.bf16 %v7171_v3, %v7167_v27  ;;  %v7462_v10 = vpop.f32.mrb[79].mxu1 }
 0x286   :  { %v2684_v7 = vrot.slane %v2597_v32, 4  ;;  %v3693_v30 = vrot.slane %v3601_v6, 4  ;;  %v3219_v31 = vrot.slane %v3218_v48, 1  ;;  %v4221_v29 = vrot.slane %v4220_v53, 1  ;;  %5286 = vset.pattern.permute.xlu1 %v8452_v18 }
 0x287   :  { %v1815_v62 = vadd.f32 %v1814_v22, %v1813_v50  ;;  %v4214_v28 = vadd.f32 %v4213_v58, %v4212_v59  ;;  %v2692_v42 = vrot.slane %v2691_v40, 2  ;;  %v8731_v45 = vunpack.c.l.bf16 %v6927_v41  ;;  %3546 = vperm.xlu1 %5286, %v8701_v4  }
 0x288   :  { %v2685_v20 = vadd.f32 %v2684_v7, %v2597_v32  ;;  %v4597_v21 = vmul.f32 %v4507_v54, %v8732_v56  ;;  %v7464_v14 = vmul.f32 0.4, %v3680_v60  ;;  %v7466_v27 = vmul.f32 0.4, %v4682_v47  ;;  %5297 = vset.pattern.permute.xlu0 %v8446_v12  ;;  %v8737_v56 = vld [vmem:[#allocation45_spill] sm:$0xff] }
 0x289   :  { %v3600_v39 = vmul.f32 %v3507_v44, %v8731_v45  ;;  %v3694_v8 = vadd.f32 %v3693_v30, %v3601_v6  ;;  %v3226_v50 = vadd.f32 %v3225_v2, %v3224_v57  ;;  %4084 = vperm.xlu0 %5297, %v8729_v38   ;;  %v7472_v41 = vunpack.c.l.bf16 %v3910_v1  ;;  %v4503_v2 = vpop.permute.xlu1 %4502  ;;  %v3049_v54 = vpop.permute.xlu0 %3048  ;;  %v8738_v1 = vld [vmem:[#allocation66_spill] sm:$0xff] }
 0x28a   :  { %8733 = vst [vmem:[#allocation18_spill] sm:$0xff] %v7464_v14  ;;  %8734 = vst [vmem:[#allocation17_spill] sm:$0xff] %v7466_v27  ;;  %v2686_v3 = vrot.slane %v2685_v20, 2  ;;  %v4689_v22 = vrot.slane %v4597_v21, 4  ;;  %v7474_v32 = vmul.f32 0.4, %v4676_v36  ;;  %v3220_v58 = vadd.f32 %v3219_v31, %v3218_v48 }
 0x28b   :  { %v3687_v59 = vrot.slane %v3600_v39, 4  ;;  %v1816_v60 = vrot.slane %v1815_v62, 1  ;;  %v8736_v47 = vrot.slane %v7327_v51, 4  ;;  %v4222_v7 = vadd.f32 %v4221_v29, %v4220_v53  ;;  %5290 = vset.pattern.permute.xlu1 %v8440_v25 }
 0x28c   :  { %8735 = vst [vmem:[#allocation101_spill] sm:$0xff] %v7474_v32  ;;  %v4215_v30 = vrot.slane %v4214_v28, 1  ;;  %v2693_v44 = vadd.f32 %v2692_v42, %v2691_v40  ;;  %v2687_v45 = vadd.f32 %v2686_v3, %v2685_v20  ;;  %v3695_v4 = vrot.slane %v3694_v8, 2  ;;  %3084 = vperm.xlu1 %5290, %v8719_v26   ;;  %v8740_v42 = vld [vmem:[#allocation22_spill] sm:$0xff] }
 0x28d   :  { %v7478_v6 = vunpack.c.l.bf16 %v8736_v47  ;;  %v3688_v57 = vadd.f32 %v3687_v59, %v3600_v39  ;;  %v4596_v14 = vmul.f32 %v4503_v2, %v8737_v56  ;;  %v3136_v27 = vmul.f32 %v3049_v54, %v8738_v1  ;;  %v7482_v36 = vpop.eup %5487  ;;  %5298 = vset.pattern.permute.xlu0 %v8445_v52 }
 0x28e   :  { %v7484_v48 = vmul.f32 0.4, %v3226_v50  ;;  %v4690_v32 = vadd.f32 %v4689_v22, %v4597_v21  ;;  %v7490_v40 = vpack.c.bf16 %v7224_v63, %v7216_v37  ;;  %2548 = vperm.xlu0 %5298, %v7238_v23   ;;  %v1817_v20 = vadd.f32 %v1816_v60, %v1815_v62  ;;  %v3045_v63 = vpop.permute.xlu1 %3044  ;;  %v4045_v54 = vpop.permute.xlu0 %4044 }
 0x28f   :  { %v3689_v31 = vrot.slane %v3688_v57, 2  ;;  %v4683_v53 = vrot.slane %v4596_v14, 4  ;;  %v3233_v29 = vrot.slane %v3136_v27, 4  ;;  %v7495_v3 = vmul.f32 0.4, %v3220_v58  ;;  %v7501_v60 = vpop.f32.mrb[80].mxu1 }
 0x290   :  { %8739 = vst [vmem:[#allocation46_spill] sm:$0xff] %v7484_v48  ;;  %v7497_v21 = vmul.f32 0.4, %v4222_v7  ;;  %v4216_v50 = vadd.f32 %v4215_v30, %v4214_v28  ;;  %v2694_v59 = vrot.slane %v2693_v44, 1  ;;  %v2688_v22 = vrot.slane %v2687_v45, 1  ;;  %v8743_v48 = vld [vmem:[#allocation65_spill] sm:$0xff]  ;;  %5292 = vset.pattern.permute.xlu1 %v8446_v12 }
 0x291   :  { %8741 = vst [vmem:[#allocation45_spill] sm:$0xff] %v7495_v3  ;;  %v3696_v47 = vadd.f32 %v3695_v4, %v3694_v8  ;;  %v4684_v2 = vadd.f32 %v4683_v53, %v4596_v14  ;;  %v3234_v37 = vadd.f32 %v3233_v29, %v3136_v27  ;;  %v3690_v56 = vadd.f32 %v3689_v31, %v3688_v57  ;;  %v7506_v14 = vpop.f32.mrb[81].mxu1 }
 0x292   :  { %8742 = vst [vmem:[#allocation66_spill] sm:$0xff] %v7497_v21  ;;  %v4691_v1 = vrot.slane %v4690_v32, 2  ;;  %v3135_v19 = vmul.f32 %v3045_v63, %v8743_v48  ;;  %v4132_v62 = vmul.f32 %v4045_v54, %v7323_v61  ;;  %8744 = vst [vmem:[#allocation22_spill] sm:$0xff] %v7501_v60  ;;  %5489 = vrcp.f32 %v1817_v20  ;;  %5300 = vset.pattern.permute.xlu0 %v8452_v18  ;;  %v8747_v48 = vld [vmem:[#allocation49_spill] sm:$0xff]  ;;  %v8748_v21 = vld [vmem:[#allocation20_spill] sm:$0xff] }
 0x293   :  { %v4685_v58 = vrot.slane %v4684_v2, 2  ;;  %v3235_v39 = vrot.slane %v3234_v37, 2  ;;  %8745 = vst [vmem:[#allocation65_spill] sm:$0xff] %v7506_v14  ;;  %v2695_v27 = vadd.f32 %v2694_v59, %v2693_v44  ;;  %4080 = vperm.xlu1 %5292, %v8719_v26   ;;  %3558 = vperm.xlu0 %5300, %v7238_v23   ;;  %v7511_v30 = vmul.f32 0.4, %v4216_v50  ;;  %v4041_v59 = vpop.permute.xlu1 %4040  ;;  %v2499_v63 = vpop.permute.xlu0 %2498  ;;  %v8774_v60 = vld [vmem:[#allocation70_spill] sm:$0xff] }
 0x294   :  { %v3227_v8 = vrot.slane %v3135_v19, 4  ;;  %v4229_v7 = vrot.slane %v4132_v62, 4  ;;  %v2689_v57 = vadd.f32 %v2688_v22, %v2687_v45  ;;  %v3697_v4 = vrot.slane %v3696_v47, 1 }
 0x295   :  { %8746 = vst [vmem:[#allocation115_spill] sm:$0xff] %v7511_v30  ;;  %v7515_v31 = vmul.f32 %v7128_v34, %v8747_v48  ;;  %v3691_v53 = vrot.slane %v3690_v56, 1  ;;  %v4692_v29 = vadd.f32 %v4691_v1, %v4690_v32  ;;  %v4686_v54 = vadd.f32 %v4685_v58, %v4684_v2  ;;  %v8752_v2 = vld [vmem:[#allocation23_spill] sm:$0xff] }
 0x296   :  { %v3228_v20 = vadd.f32 %v3227_v8, %v3135_v19  ;;  %v4230_v44 = vadd.f32 %v4229_v7, %v4132_v62  ;;  %v3236_v28 = vadd.f32 %v3235_v39, %v3234_v37  ;;  %v4131_v3 = vmul.f32 %v4041_v59, %v7355_v16  ;;  %v8754_v59 = vld [vmem:[#allocation19_spill] sm:$0xff] }
 0x297   :  { %v8749_v61 = vunpack.c.l.bf16 %v8748_v21  ;;  %v7520_v30 = vmul.f32 0.4, %v2695_v27  ;;  %5293 = vset.pattern.permute.xlu1 %v8459_v55  ;;  %5302 = vset.pattern.permute.xlu0 %v8459_v55  ;;  %v3698_v19 = vadd.f32 %v3697_v4, %v3696_v47  ;;  %v3912_v16 = vrot.slane %v7490_v40, 4 }
 0x298   :  { %v3229_v45 = vrot.slane %v3228_v20, 2  ;;  %v4231_v22 = vrot.slane %v4230_v44, 2  ;;  %v4223_v32 = vrot.slane %v4131_v3, 4  ;;  %4546 = vperm.xlu1 %5293, %v8719_v26   ;;  %4554 = vperm.xlu0 %5302, %v7238_v23   ;;  %v7528_v39 = vmul.f32 0.4, %v2689_v57  ;;  %v2494_v26 = vpop.permute.xlu1 %2493 }
 0x299   :  { %v2600_v50 = vmul.f32 %v2499_v63, %v8749_v61  ;;  %8750 = vst [vmem:[#allocation49_spill] sm:$0xff] %v7520_v30  ;;  %v4693_v21 = vrot.slane %v4692_v29, 1  ;;  %v8753_v37 = vrot.slane %v8752_v2, 4  ;;  %v7536_v58 = vpack.c.bf16 %v7256_v0, %v7252_v46  ;;  %v3519_v61 = vpop.permute.xlu0 %3518 }
 0x29a   :  { %8751 = vst [vmem:[#allocation20_spill] sm:$0xff] %v7528_v39  ;;  %v3692_v47 = vadd.f32 %v3691_v53, %v3690_v56  ;;  %v4687_v27 = vrot.slane %v4686_v54, 1  ;;  %v3237_v8 = vrot.slane %v3236_v28, 1  ;;  %v4224_v7 = vadd.f32 %v4223_v32, %v4131_v3  ;;  %v8758_v3 = vld [vmem:[#allocation76_spill] sm:$0xff]  ;;  %v8762_v32 = vld [vmem:[#allocation14_spill] sm:$0xff] }
 0x29b   :  { %v2702_v1 = vrot.slane %v2600_v50, 4  ;;  %v7532_v62 = vunpack.c.l.bf16 %v8753_v37  ;;  %v3230_v4 = vadd.f32 %v3229_v45, %v3228_v20  ;;  %v4232_v48 = vadd.f32 %v4231_v22, %v4230_v44 }
 0x29c   :  { %v8755_v57 = vunpack.c.l.bf16 %v8754_v59  ;;  %v8756_v34 = vunpack.c.l.bf16 %v7327_v51  ;;  %v7542_v37 = vpop.eup %5489  ;;  %v7544_v30 = vmul.f32 0.4, %v3698_v19  ;;  %v4225_v46 = vrot.slane %v4224_v7, 2  ;;  %5294 = vset.pattern.permute.xlu1 %v8445_v52  ;;  %5304 = vset.pattern.permute.xlu0 %v8440_v25  ;;  %v8761_v19 = vld [vmem:[#allocation71_spill] sm:$0xff] }
 0x29d   :  { %v2703_v0 = vadd.f32 %v2702_v1, %v2600_v50  ;;  %v7550_v56 = vmul.f32 %v7303_v9, %v8758_v3  ;;  %v4694_v53 = vadd.f32 %v4693_v21, %v4692_v29  ;;  %2543 = vperm.xlu1 %5294, %v8729_v38   ;;  %3096 = vperm.xlu0 %5304, %v7406_v5   ;;  %v8759_v51 = vrot.slane %v8740_v42, 4  ;;  %v4515_v59 = vpop.permute.xlu0 %4514 }
 0x29e   :  { %v2599_v63 = vmul.f32 %v2494_v26, %v8755_v57  ;;  %v3603_v39 = vmul.f32 %v3519_v61, %v8756_v34  ;;  %8757 = vst [vmem:[#allocation23_spill] sm:$0xff] %v7544_v30  ;;  %v7558_v50 = vmul.f32 0.4, %v3692_v47  ;;  %v4688_v22 = vadd.f32 %v4687_v27, %v4686_v54  ;;  %v3515_v61 = vpop.permute.xlu1 %3514  ;;  %v8764_v47 = vld [vmem:[#allocation40_spill] sm:$0xff]  ;;  %v7569_v54 = vpop.f32.mrb[82].mxu1 }
 0x29f   :  { %v7556_v45 = vunpack.c.l.bf16 %v8759_v51  ;;  %v7560_v34 = vunpack.c.l.bf16 %v3912_v16  ;;  %v7564_v9 = vpack.c.bf16 %v8762_v32, %v8761_v19  ;;  %v3238_v29 = vadd.f32 %v3237_v8, %v3236_v28  ;;  %8765 = vst [vmem:[#allocation76_spill] sm:$0xff] %v7569_v54 }
 0x2a0   :  { %v2696_v20 = vrot.slane %v2599_v63, 4  ;;  %v3705_v44 = vrot.slane %v3603_v39, 4  ;;  %8760 = vst [vmem:[#allocation19_spill] sm:$0xff] %v7558_v50  ;;  %v3231_v1 = vrot.slane %v3230_v4, 1  ;;  %v4233_v21 = vrot.slane %v4232_v48, 1 }
 0x2a1   :  { %v4226_v57 = vadd.f32 %v4225_v46, %v4224_v7  ;;  %v2704_v3 = vrot.slane %v2703_v0, 2  ;;  %v8763_v51 = vunpack.c.l.bf16 %v7165_v11  ;;  %v4599_v50 = vmul.f32 %v4515_v59, %v8764_v47  ;;  %5296 = vset.pattern.permute.xlu1 %v8452_v18  ;;  %5306 = vset.pattern.permute.xlu0 %v8446_v12  ;;  %v7579_v7 = vpop.f32.mrb[83].mxu1  ;;  %v8770_v46 = vld [vmem:[#allocation24_spill] sm:$0xff] }
 0x2a2   :  { %v2697_v26 = vadd.f32 %v2696_v20, %v2599_v63  ;;  %v7571_v16 = vmul.f32 0.4, %v4694_v53  ;;  %v3706_v19 = vadd.f32 %v3705_v44, %v3603_v39  ;;  %v8767_v28 = vrot.slane %v7455_v49, 4  ;;  %8769 = vst [vmem:[#allocation40_spill] sm:$0xff] %v7579_v7  ;;  %3554 = vperm.xlu1 %5296, %v8729_v38   ;;  %4092 = vperm.xlu0 %5306, %v7406_v5   ;;  %v3057_v13 = vpop.permute.xlu0 %3056  ;;  %v8773_v38 = vld [vmem:[#allocation47_spill] sm:$0xff] }
 0x2a3   :  { %v3602_v30 = vmul.f32 %v3515_v61, %v8763_v51  ;;  %v4701_v63 = vrot.slane %v4599_v50, 4  ;;  %v7585_v20 = vmul.f32 0.4, %v4688_v22  ;;  %v7587_v44 = vmul.f32 0.4, %v3238_v29 }
 0x2a4   :  { %8766 = vst [vmem:[#allocation71_spill] sm:$0xff] %v7571_v16  ;;  %v2698_v27 = vrot.slane %v2697_v26, 2  ;;  %v7577_v8 = vunpack.c.l.bf16 %v8767_v28  ;;  %v3232_v32 = vadd.f32 %v3231_v1, %v3230_v4  ;;  %v4234_v61 = vadd.f32 %v4233_v21, %v4232_v48  ;;  %v4511_v16 = vpop.permute.xlu1 %4510 }
 0x2a5   :  { %v3699_v11 = vrot.slane %v3602_v30, 4  ;;  %8771 = vst [vmem:[#allocation24_spill] sm:$0xff] %v7585_v20  ;;  %8772 = vst [vmem:[#allocation116_spill] sm:$0xff] %v7587_v44  ;;  %v4227_v59 = vrot.slane %v4226_v57, 1  ;;  %v2705_v51 = vadd.f32 %v2704_v3, %v2703_v0  ;;  %v4702_v28 = vadd.f32 %v4701_v63, %v4599_v50 }
 0x2a6   :  { %8768 = vst [vmem:[#allocation14_spill] sm:$0xff] %v7577_v8  ;;  %v2699_v7 = vadd.f32 %v2698_v27, %v2697_v26  ;;  %v3707_v54 = vrot.slane %v3706_v19, 2  ;;  %v4598_v14 = vmul.f32 %v4511_v16, %v8773_v38  ;;  %v3138_v53 = vmul.f32 %v3057_v13, %v8774_v60  ;;  %5299 = vset.pattern.permute.xlu1 %v8440_v25  ;;  %v8776_v38 = vld [vmem:[#allocation110_spill] sm:$0xff] }
 0x2a7   :  { %v3700_v47 = vadd.f32 %v3699_v11, %v3602_v30  ;;  %v4703_v39 = vrot.slane %v4702_v28, 2  ;;  %5308 = vset.pattern.permute.xlu0 %v8445_v52  ;;  %v3913_v4 = vrot.slane %v7536_v58, 4  ;;  %v7595_v30 = vmul.f32 0.4, %v3232_v32  ;;  %3092 = vperm.xlu1 %5299, %v7238_v23   ;;  %v8777_v13 = vld [vmem:[#allocation62_spill] sm:$0xff]  ;;  %v4053_v63 = vpop.permute.xlu0 %4052 }
 0x2a8   :  { %v4695_v0 = vrot.slane %v4598_v14, 4  ;;  %v3245_v50 = vrot.slane %v3138_v53, 4  ;;  %2558 = vperm.xlu0 %5308, %v7451_v43   ;;  %v7601_v60 = vmul.f32 %v8777_v13, %v8776_v38  ;;  %v7603_v22 = vmul.f32 0.4, %v4234_v61  ;;  %v3053_v11 = vpop.permute.xlu1 %3052  ;;  %v8780_v61 = vld [vmem:[#allocation60_spill] sm:$0xff] }
 0x2a9   :  { %v3701_v8 = vrot.slane %v3700_v47, 2  ;;  %8775 = vst [vmem:[#allocation47_spill] sm:$0xff] %v7595_v30  ;;  %v4228_v29 = vadd.f32 %v4227_v59, %v4226_v57  ;;  %v2706_v1 = vrot.slane %v2705_v51, 1  ;;  %v3914_v21 = vrot.slane %v7564_v9, 4  ;;  %v8779_v30 = vld [vmem:[#allocation68_spill] sm:$0xff] }
 0x2aa   :  { %8778 = vst [vmem:[#allocation70_spill] sm:$0xff] %v7603_v22  ;;  %v2700_v26 = vrot.slane %v2699_v7, 1  ;;  %v3708_v3 = vadd.f32 %v3707_v54, %v3706_v19  ;;  %v4696_v16 = vadd.f32 %v4695_v0, %v4598_v14  ;;  %v3246_v27 = vadd.f32 %v3245_v50, %v3138_v53  ;;  %v8781_v54 = vld [vmem:[#allocation59_spill] sm:$0xff] }
 0x2ab   :  { %v3702_v32 = vadd.f32 %v3701_v8, %v3700_v47  ;;  %v4704_v48 = vadd.f32 %v4703_v39, %v4702_v28  ;;  %v3137_v20 = vmul.f32 %v3053_v11, %v8779_v30  ;;  %v4134_v44 = vmul.f32 %v4053_v63, %v7472_v41  ;;  %5301 = vset.pattern.permute.xlu1 %v8446_v12  ;;  %v8782_v41 = vld [vmem:[#allocation27_spill] sm:$0xff] }
 0x2ac   :  { %v4697_v38 = vrot.slane %v4696_v16, 2  ;;  %v3247_v13 = vrot.slane %v3246_v27, 2  ;;  %5310 = vset.pattern.permute.xlu0 %v8452_v18  ;;  %v7613_v14 = vpack.c.bf16 %v8781_v54, %v8780_v61  ;;  %v2707_v19 = vadd.f32 %v2706_v1, %v2705_v51  ;;  %4088 = vperm.xlu1 %5301, %v7238_v23   ;;  %v4049_v1 = vpop.permute.xlu1 %4048 }
 0x2ad   :  { %v3239_v53 = vrot.slane %v3137_v20, 4  ;;  %v4241_v8 = vrot.slane %v4134_v44, 4  ;;  %3566 = vperm.xlu0 %5310, %v7451_v43   ;;  %v8783_v39 = vrot.slane %v8782_v41, 4  ;;  %v7621_v47 = vmul.f32 0.4, %v4228_v29  ;;  %v2509_v61 = vpop.permute.xlu0 %2508 }
 0x2ae   :  { %v2701_v28 = vadd.f32 %v2700_v26, %v2699_v7  ;;  %v3709_v30 = vrot.slane %v3708_v3, 1  ;;  %v7623_v0 = vunpack.c.l.bf16 %v3914_v21  ;;  %v3703_v50 = vrot.slane %v3702_v32, 1  ;;  %v8788_v21 = vld [vmem:[#allocation15_spill] sm:$0xff] }
 0x2af   :  { %v7619_v59 = vunpack.c.l.bf16 %v8783_v39  ;;  %8785 = vst [vmem:[#allocation62_spill] sm:$0xff] %v7621_v47  ;;  %v4705_v11 = vrot.slane %v4704_v48, 1  ;;  %v3240_v63 = vadd.f32 %v3239_v53, %v3137_v20  ;;  %v4242_v51 = vadd.f32 %v4241_v8, %v4134_v44  ;;  %v8789_v20 = vld [vmem:[#allocation114_spill] sm:$0xff] }
 0x2b0   :  { %v4698_v54 = vadd.f32 %v4697_v38, %v4696_v16  ;;  %v3248_v23 = vadd.f32 %v3247_v13, %v3246_v27  ;;  %v4133_v57 = vmul.f32 %v4049_v1, %v7478_v6  ;;  %v8786_v22 = vunpack.c.l.bf16 %v8740_v42  ;;  %5303 = vset.pattern.permute.xlu1 %v8445_v52  ;;  %v8790_v6 = vld [vmem:[#allocation48_spill] sm:$0xff] }
 0x2b1   :  { %8784 = vst [vmem:[#allocation110_spill] sm:$0xff] %v7619_v59  ;;  %v7628_v59 = vmul.f32 0.4, %v2707_v19  ;;  %v3241_v29 = vrot.slane %v3240_v63, 2  ;;  %v4243_v7 = vrot.slane %v4242_v51, 2  ;;  %5312 = vset.pattern.permute.xlu0 %v8459_v55  ;;  %v7634_v44 = vpack.c.bf16 %v8789_v20, %v8788_v21  ;;  %2553 = vperm.xlu1 %5303, %v7406_v5  }
 0x2b2   :  { %v2602_v39 = vmul.f32 %v2509_v61, %v8786_v22  ;;  %v3710_v26 = vadd.f32 %v3709_v30, %v3708_v3  ;;  %v4235_v16 = vrot.slane %v4133_v57, 4  ;;  %4562 = vperm.xlu0 %5312, %v7451_v43   ;;  %v7640_v42 = vmul.f32 %v7482_v36, %v8790_v6  ;;  %v2504_v61 = vpop.permute.xlu1 %2503  ;;  %v3527_v21 = vpop.permute.xlu0 %3526 }
 0x2b3   :  { %8787 = vst [vmem:[#allocation68_spill] sm:$0xff] %v7628_v59  ;;  %v7642_v22 = vmul.f32 0.4, %v2701_v28  ;;  %v3704_v38 = vadd.f32 %v3703_v50, %v3702_v32  ;;  %v8792_v13 = vrot.slane %v8770_v46, 4  ;;  %v7648_v53 = vunpack.c.l.bf16 %v3913_v4  ;;  %v8793_v59 = vld [vmem:[#allocation21_spill] sm:$0xff]  ;;  %v8797_v4 = vld [vmem:[#allocation28_spill] sm:$0xff] }
 0x2b4   :  { %v2714_v27 = vrot.slane %v2602_v39, 4  ;;  %v4706_v3 = vadd.f32 %v4705_v11, %v4704_v48  ;;  %v4699_v8 = vrot.slane %v4698_v54, 1  ;;  %v3249_v30 = vrot.slane %v3248_v23, 1 }
 0x2b5   :  { %8791 = vst [vmem:[#allocation60_spill] sm:$0xff] %v7642_v22  ;;  %v7646_v19 = vunpack.c.l.bf16 %v8792_v13  ;;  %v3242_v20 = vadd.f32 %v3241_v29, %v3240_v63  ;;  %v4244_v47 = vadd.f32 %v4243_v7, %v4242_v51  ;;  %v8794_v36 = vunpack.c.l.bf16 %v8793_v59  ;;  %5305 = vset.pattern.permute.xlu1 %v8452_v18  ;;  %v8801_v59 = vld [vmem:[#allocation74_spill] sm:$0xff] }
 0x2b6   :  { %v2715_v1 = vadd.f32 %v2714_v27, %v2602_v39  ;;  %v8795_v28 = vunpack.c.l.bf16 %v7455_v49  ;;  %v7654_v50 = vmul.f32 0.4, %v3710_v26  ;;  %v4236_v13 = vadd.f32 %v4235_v16, %v4133_v57  ;;  %5314 = vset.pattern.permute.xlu0 %v8440_v25  ;;  %3562 = vperm.xlu1 %5305, %v7406_v5   ;;  %v3523_v27 = vpop.permute.xlu1 %3522  ;;  %v7674_v49 = vpop.f32.mrb[84].mxu1 }
 0x2b7   :  { %v2601_v6 = vmul.f32 %v2504_v61, %v8794_v36  ;;  %v7659_v11 = vmul.f32 0.4, %v3704_v38  ;;  %3104 = vperm.xlu0 %5314, %v7515_v31   ;;  %v7665_v51 = vmul.f32 0.4, %v4706_v3  ;;  %v4700_v57 = vadd.f32 %v4699_v8, %v4698_v54  ;;  %v4523_v38 = vpop.permute.xlu0 %4522 }
 0x2b8   :  { %v3605_v32 = vmul.f32 %v3527_v21, %v8795_v28  ;;  %8796 = vst [vmem:[#allocation59_spill] sm:$0xff] %v7654_v50  ;;  %v2716_v22 = vrot.slane %v2715_v1, 2  ;;  %v3250_v39 = vadd.f32 %v3249_v30, %v3248_v23  ;;  %v3243_v7 = vrot.slane %v3242_v20, 1  ;;  %v8831_v50 = vld [vmem:[#allocation110_spill] sm:$0xff] }
 0x2b9   :  { %8798 = vst [vmem:[#allocation27_spill] sm:$0xff] %v7659_v11  ;;  %8799 = vst [vmem:[#allocation15_spill] sm:$0xff] %v7665_v51  ;;  %v4245_v26 = vrot.slane %v4244_v47, 1  ;;  %v7669_v61 = vmul.f32 %v7542_v37, %v7394_v24  ;;  %v4237_v21 = vrot.slane %v4236_v13, 2  ;;  %v8800_v28 = vunpack.c.l.bf16 %v7390_v15 }
 0x2ba   :  { %v3717_v63 = vrot.slane %v3605_v32, 4  ;;  %v2717_v29 = vadd.f32 %v2716_v22, %v2715_v1  ;;  %v4601_v3 = vmul.f32 %v4523_v38, %v8801_v59  ;;  %v2708_v54 = vrot.slane %v2601_v6, 4  ;;  %5307 = vset.pattern.permute.xlu1 %v8459_v55  ;;  %v8804_v59 = vld [vmem:[#allocation30_spill] sm:$0xff] }
 0x2bb   :  { %v3604_v48 = vmul.f32 %v3523_v27, %v8800_v28  ;;  %5316 = vset.pattern.permute.xlu0 %v8446_v12  ;;  %v3916_v22 = vrot.slane %v7634_v44, 4  ;;  %v7680_v37 = vmul.f32 0.4, %v4700_v57  ;;  %v7682_v8 = vmul.f32 0.4, %v3250_v39  ;;  %4558 = vperm.xlu1 %5307, %v7406_v5   ;;  %v7690_v28 = vpop.f32.mrb[85].mxu1 }
 0x2bc   :  { %v3718_v16 = vadd.f32 %v3717_v63, %v3605_v32  ;;  %v2718_v36 = vrot.slane %v2717_v29, 1  ;;  %v4713_v30 = vrot.slane %v4601_v3, 4  ;;  %4100 = vperm.xlu0 %5316, %v7515_v31   ;;  %v3244_v1 = vadd.f32 %v3243_v7, %v3242_v20  ;;  %8806 = vst [vmem:[#allocation21_spill] sm:$0xff] %v7690_v28  ;;  %v8807_v5 = vld [vmem:[#allocation43_spill] sm:$0xff]  ;;  %v8808_v7 = vld [vmem:[#allocation73_spill] sm:$0xff] }
 0x2bd   :  { %8802 = vst [vmem:[#allocation114_spill] sm:$0xff] %v7680_v37  ;;  %8803 = vst [vmem:[#allocation48_spill] sm:$0xff] %v7682_v8  ;;  %v3711_v63 = vrot.slane %v3604_v48, 4  ;;  %v8805_v27 = vrot.slane %v8804_v59, 4  ;;  %v4246_v24 = vadd.f32 %v4245_v26, %v4244_v47  ;;  %v4238_v57 = vadd.f32 %v4237_v21, %v4236_v13  ;;  %v4519_v8 = vpop.permute.xlu1 %4518  ;;  %v8819_v47 = vld [vmem:[#allocation14_spill] sm:$0xff] }
 0x2be   :  { %v3719_v23 = vrot.slane %v3718_v16, 2  ;;  %v2719_v15 = vadd.f32 %v2718_v36, %v2717_v29  ;;  %v4714_v39 = vadd.f32 %v4713_v30, %v4601_v3  ;;  %v3065_v29 = vpop.permute.xlu0 %3064  ;;  %v2709_v36 = vadd.f32 %v2708_v54, %v2601_v6 }
 0x2bf   :  { %v7688_v38 = vunpack.c.l.bf16 %v8805_v27  ;;  %v4600_v51 = vmul.f32 %v4519_v8, %v8807_v5  ;;  %v3140_v20 = vmul.f32 %v3065_v29, %v7532_v62  ;;  %5309 = vset.pattern.permute.xlu1 %v8440_v25  ;;  %v7702_v13 = vpack.c.bf16 %v7432_v35, %v7425_v17  ;;  %v8812_v29 = vld [vmem:[#allocation8_spill] sm:$0xff] }
 0x2c0   :  { %v3720_v32 = vadd.f32 %v3719_v23, %v3718_v16  ;;  %v2826_v37 = vmul.f32 0.6, %v2719_v15  ;;  %v4715_v23 = vrot.slane %v4714_v39, 2  ;;  %5318 = vset.pattern.permute.xlu0 %v8445_v52  ;;  %v3712_v26 = vadd.f32 %v3711_v63, %v3604_v48  ;;  %3100 = vperm.xlu1 %5309, %v7451_v43  }
 0x2c1   :  { %v3257_v21 = vrot.slane %v3140_v20, 4  ;;  %2568 = vperm.xlu0 %5318, %v7550_v56   ;;  %v7706_v62 = vunpack.c.l.bf16 %v3916_v22  ;;  %v7708_v3 = vmul.f32 0.4, %v3244_v1  ;;  %v7710_v54 = vmul.f32 0.4, %v4246_v24  ;;  %v3061_v17 = vpop.permute.xlu1 %3060 }
 0x2c2   :  { %v3721_v11 = vrot.slane %v3720_v32, 1  ;;  %v7695_v16 = vadd.f32 %v2826_v37, %v8808_v7  ;;  %v4239_v37 = vrot.slane %v4238_v57, 1  ;;  %v4716_v8 = vadd.f32 %v4715_v23, %v4714_v39  ;;  %v4061_v35 = vpop.permute.xlu0 %4060 }
 0x2c3   :  { %8809 = vst [vmem:[#allocation28_spill] sm:$0xff] %v7708_v3  ;;  %8810 = vst [vmem:[#allocation74_spill] sm:$0xff] %v7710_v54  ;;  %v2710_v15 = vrot.slane %v2709_v36, 2  ;;  %v3258_v27 = vadd.f32 %v3257_v21, %v3140_v20  ;;  %v8811_v48 = vrot.slane %v8797_v4, 4  ;;  %v4707_v63 = vrot.slane %v4600_v51, 4 }
 0x2c4   :  { %v3722_v6 = vadd.f32 %v3721_v11, %v3720_v32  ;;  %v4717_v32 = vrot.slane %v4716_v8, 1  ;;  %v3139_v22 = vmul.f32 %v3061_v17, %v7556_v45  ;;  %v4136_v1 = vmul.f32 %v4061_v35, %v7560_v34  ;;  %5311 = vset.pattern.permute.xlu1 %v8446_v12  ;;  %v8816_v35 = vld [vmem:[#allocation77_spill] sm:$0xff] }
 0x2c5   :  { %v7714_v11 = vunpack.c.l.bf16 %v8811_v48  ;;  %v3713_v5 = vrot.slane %v3712_v26, 2  ;;  %v3259_v39 = vrot.slane %v3258_v27, 2  ;;  %5320 = vset.pattern.permute.xlu0 %v8452_v18  ;;  %v7725_v20 = vpack.c.bf16 %v7462_v10, %v7457_v33  ;;  %4096 = vperm.xlu1 %5311, %v7451_v43  }
 0x2c6   :  { %v3829_v30 = vmul.f32 0.6, %v3722_v6  ;;  %v7727_v7 = vadd.f32 %v4239_v37, %v4238_v57  ;;  %v4718_v23 = vadd.f32 %v4717_v32, %v4716_v8  ;;  %v3251_v6 = vrot.slane %v3139_v22, 4  ;;  %3574 = vperm.xlu0 %5320, %v7550_v56   ;;  %v4057_v8 = vpop.permute.xlu1 %4056  ;;  %v2519_v32 = vpop.permute.xlu0 %2518 }
 0x2c7   :  { %v4253_v45 = vrot.slane %v4136_v1, 4  ;;  %v7731_v34 = vadd.f32 %v2710_v15, %v2709_v36  ;;  %v3260_v21 = vadd.f32 %v3259_v39, %v3258_v27  ;;  %v7738_v10 = vadd.f32 %v4707_v63, %v4600_v51  ;;  %v7745_v39 = vpop.f32.mrb[86].mxu1 }
 0x2c8   :  { %v7719_v24 = vadd.f32 %v3829_v30, %v8812_v29  ;;  %8813 = vst [vmem:[#allocation30_spill] sm:$0xff] %v7727_v7  ;;  %v8815_v30 = vrot.slane %v7613_v14, 4  ;;  %v4825_v33 = vmul.f32 0.6, %v4718_v23  ;;  %v3252_v57 = vadd.f32 %v3251_v6, %v3139_v22  ;;  %8821 = vst [vmem:[#allocation77_spill] sm:$0xff] %v7745_v39  ;;  %v7753_v63 = vpop.f32.mrb[87].mxu1 }
 0x2c9   :  { %8814 = vst [vmem:[#allocation43_spill] sm:$0xff] %v7731_v34  ;;  %8817 = vst [vmem:[#allocation73_spill] sm:$0xff] %v7738_v10  ;;  %v4254_v37 = vadd.f32 %v4253_v45, %v4136_v1  ;;  %v7740_v29 = vadd.f32 %v3713_v5, %v3712_v26  ;;  %v3261_v43 = vrot.slane %v3260_v21, 1  ;;  %v4135_v36 = vmul.f32 %v4057_v8, %v8819_v47  ;;  %v8826_v5 = vld [vmem:[#allocation87_spill] sm:$0xff]  ;;  %v8841_v39 = vld [vmem:[#allocation106_spill] sm:$0xff] }
 0x2ca   :  { %v7735_v17 = vunpack.c.l.bf16 %v8815_v30  ;;  %v8820_v15 = vunpack.c.l.bf16 %v8770_v46  ;;  %v8822_v30 = vld [vmem:[#allocation51_spill] sm:$0xff]  ;;  %v3253_v23 = vrot.slane %v3252_v57, 2  ;;  %5313 = vset.pattern.permute.xlu1 %v8445_v52  ;;  %5322 = vset.pattern.permute.xlu0 %v8459_v55  ;;  %8823 = vst [vmem:[#allocation14_spill] sm:$0xff] %v7753_v63  ;;  %v8825_v1 = vunpack.c.l.bf16 %v7536_v58 }
 0x2cb   :  { %8818 = vst [vmem:[#allocation8_spill] sm:$0xff] %v7740_v29  ;;  %v7748_v3 = vadd.f32 %v4825_v33, %v8822_v30  ;;  %v4255_v51 = vrot.slane %v4254_v37, 2  ;;  %v3262_v22 = vadd.f32 %v3261_v43, %v3260_v21  ;;  %v4247_v47 = vrot.slane %v4135_v36, 4  ;;  %2563 = vperm.xlu1 %5313, %v7515_v31   ;;  %4570 = vperm.xlu0 %5322, %v7550_v56   ;;  %v2514_v30 = vpop.permute.xlu1 %2513  ;;  %v3535_v21 = vpop.permute.xlu0 %3534 }
 0x2cc   :  { %v2604_v27 = vmul.f32 %v2519_v32, %v8820_v15  ;;  %v3254_v6 = vadd.f32 %v3253_v23, %v3252_v57  ;;  %v3918_v33 = vrot.slane %v7725_v20, 4  ;;  %v8824_v29 = vunpack.c.l.bf16 %v8752_v2 }
 0x2cd   :  { %v4256_v45 = vadd.f32 %v4255_v51, %v4254_v37  ;;  %v3364_v8 = vmul.f32 0.6, %v3262_v22  ;;  %v4248_v32 = vadd.f32 %v4247_v47, %v4135_v36  ;;  %v3607_v34 = vmul.f32 %v3535_v21, %v8825_v1  ;;  %v8827_v36 = vld [vmem:[#allocation79_spill] sm:$0xff] }
 0x2ce   :  { %v2726_v46 = vrot.slane %v2604_v27, 4  ;;  %v3255_v26 = vrot.slane %v3254_v6, 1  ;;  %v2603_v7 = vmul.f32 %v2514_v30, %v8824_v29  ;;  %v8830_v10 = vunpack.c.l.bf16 %v7490_v40 }
 0x2cf   :  { %v4257_v48 = vrot.slane %v4256_v45, 1  ;;  %v3380_v57 = vadd.f32 %v3364_v8, %v8826_v5  ;;  %v4249_v37 = vrot.slane %v4248_v32, 2  ;;  %5315 = vset.pattern.permute.xlu1 %v8452_v18  ;;  %5324 = vset.pattern.permute.xlu0 %v8440_v25  ;;  %v3729_v2 = vrot.slane %v3607_v34, 4  ;;  %v7777_v8 = vpop.f32.mrb[88].mxu1 }
 0x2d0   :  { %v2727_v15 = vadd.f32 %v2726_v46, %v2604_v27  ;;  %v8828_v27 = vrot.slane %v8827_v36, 4  ;;  %v3256_v22 = vadd.f32 %v3255_v26, %v3254_v6  ;;  %v2720_v46 = vrot.slane %v2603_v7, 4  ;;  %3570 = vperm.xlu1 %5315, %v7515_v31   ;;  %3112 = vperm.xlu0 %5324, %v7601_v60   ;;  %8829 = vst [vmem:[#allocation51_spill] sm:$0xff] %v7777_v8  ;;  %v3531_v26 = vpop.permute.xlu1 %3530 }
 0x2d1   :  { %v4258_v47 = vadd.f32 %v4257_v48, %v4256_v45  ;;  %v4250_v58 = vadd.f32 %v4249_v37, %v4248_v32  ;;  %v7775_v5 = vunpack.c.l.bf16 %v3918_v33  ;;  %v3730_v43 = vadd.f32 %v3729_v2, %v3607_v34  ;;  %v3073_v48 = vpop.permute.xlu0 %3072 }
 0x2d2   :  { %v2728_v23 = vrot.slane %v2727_v15, 2  ;;  %v7770_v51 = vunpack.c.l.bf16 %v8828_v27  ;;  %v3363_v30 = vmul.f32 0.6, %v3256_v22  ;;  %v2721_v27 = vadd.f32 %v2720_v46, %v2603_v7 }
 0x2d3   :  { %v4360_v21 = vmul.f32 0.6, %v4258_v47  ;;  %v4251_v6 = vrot.slane %v4250_v58, 1  ;;  %v3606_v54 = vmul.f32 %v3531_v26, %v8830_v10  ;;  %v3142_v32 = vmul.f32 %v3073_v48, %v8831_v50 }
 0x2d4   :  { %v2729_v29 = vadd.f32 %v2728_v23, %v2727_v15  ;;  %v8832_v15 = vld [vmem:[#allocation53_spill] sm:$0xff]  ;;  %v2722_v1 = vrot.slane %v2721_v27, 2  ;;  %v3731_v63 = vrot.slane %v3730_v43, 2  ;;  %5317 = vset.pattern.permute.xlu1 %v8459_v55  ;;  %5326 = vset.pattern.permute.xlu0 %v8446_v12  ;;  %v8834_v46 = vrot.slane %v8816_v35, 4 }
 0x2d5   :  { %v3379_v37 = vadd.f32 %v3363_v30, %v8832_v15  ;;  %v8833_v23 = vld [vmem:[#allocation105_spill] sm:$0xff]  ;;  %v4252_v7 = vadd.f32 %v4251_v6, %v4250_v58  ;;  %v3723_v22 = vrot.slane %v3606_v54, 4  ;;  %v3269_v47 = vrot.slane %v3142_v32, 4  ;;  %4566 = vperm.xlu1 %5317, %v7515_v31   ;;  %4108 = vperm.xlu0 %5326, %v7601_v60   ;;  %v4069_v48 = vpop.permute.xlu0 %4068  ;;  %v8835_v31 = vld [vmem:[#allocation64_spill] sm:$0xff] }
 0x2d6   :  { %v2730_v45 = vrot.slane %v2729_v29, 1  ;;  %v4376_v33 = vadd.f32 %v4360_v21, %v8833_v23  ;;  %v2723_v50 = vadd.f32 %v2722_v1, %v2721_v27  ;;  %v3732_v10 = vadd.f32 %v3731_v63, %v3730_v43  ;;  %v8837_v1 = vld [vmem:[#allocation104_spill] sm:$0xff]  ;;  %v8838_v43 = vld [vmem:[#allocation9_spill] sm:$0xff] }
 0x2d7   :  { %v7789_v40 = vsel %vm2874_vm5, %v3380_v57, %v3379_v37  ;;  %v7793_v2 = vunpack.c.l.bf16 %v8834_v46  ;;  %v4359_v30 = vmul.f32 0.6, %v4252_v7  ;;  %v3724_v26 = vadd.f32 %v3723_v22, %v3606_v54  ;;  %v7797_v57 = vpop.f32.mrb[89].mxu1 }
 0x2d8   :  { %v2731_v34 = vadd.f32 %v2730_v45, %v2729_v29  ;;  %v3270_v58 = vadd.f32 %v3269_v47, %v3142_v32  ;;  %v4527_v29 = vpop.permute.xlu1 %4526  ;;  %v2724_v6 = vrot.slane %v2723_v50, 1  ;;  %v3733_v45 = vrot.slane %v3732_v10, 1  ;;  %8836 = vst [vmem:[#allocation87_spill] sm:$0xff] %v7797_v57  ;;  %v8840_v57 = vld [vmem:[#allocation82_spill] sm:$0xff] }
 0x2d9   :  { %v4602_v15 = vmul.f32 %v4527_v29, %v8835_v31  ;;  %v4138_v23 = vmul.f32 %v4069_v48, %v7623_v0  ;;  %v4375_v63 = vadd.f32 %v4359_v30, %v8837_v1  ;;  %v3725_v37 = vrot.slane %v3724_v26, 2  ;;  %5319 = vset.pattern.permute.xlu1 %v8440_v25  ;;  %5328 = vset.pattern.permute.xlu0 %v8445_v52  ;;  %v8839_v30 = vld [vmem:[#allocation25_spill] sm:$0xff] }
 0x2da   :  { %v2828_v21 = vmul.f32 0.6, %v2731_v34  ;;  %v3271_v7 = vrot.slane %v3270_v58, 2  ;;  %v2725_v54 = vadd.f32 %v2724_v6, %v2723_v50  ;;  %v3734_v32 = vadd.f32 %v3733_v45, %v3732_v10  ;;  %3108 = vperm.xlu1 %5319, %v7550_v56   ;;  %2578 = vperm.xlu0 %5328, %v7640_v42   ;;  %v4535_v10 = vpop.permute.xlu0 %4534 }
 0x2db   :  { %v4719_v34 = vrot.slane %v4602_v15, 4  ;;  %v4265_v22 = vrot.slane %v4138_v23, 4  ;;  %v7808_v0 = vsel %vm2874_vm5, %v4376_v33, %v4375_v63  ;;  %v3726_v47 = vadd.f32 %v3725_v37, %v3724_v26  ;;  %v8842_v33 = vld [vmem:[#allocation78_spill] sm:$0xff] }
 0x2dc   :  { %v7801_v27 = vadd.f32 %v2828_v21, %v8838_v43  ;;  %v3272_v46 = vadd.f32 %v3271_v7, %v3270_v58  ;;  %v2418_v21 = vunpack.c.l.bf16 %v8839_v30  ;;  %v2827_v29 = vmul.f32 0.6, %v2725_v54  ;;  %v3069_v50 = vpop.permute.xlu1 %3068  ;;  %v8843_v54 = vld [vmem:[#allocation22_spill] sm:$0xff] }
 0x2dd   :  { %v3831_v48 = vmul.f32 0.6, %v3734_v32  ;;  %v4720_v31 = vadd.f32 %v4719_v34, %v4602_v15  ;;  %v4266_v1 = vadd.f32 %v4265_v22, %v4138_v23  ;;  %v3727_v6 = vrot.slane %v3726_v47, 1  ;;  %v8844_v32 = vld [vmem:[#allocation65_spill] sm:$0xff] }
 0x2de   :  { %v3273_v45 = vrot.slane %v3272_v46, 1  ;;  %v3141_v43 = vmul.f32 %v3069_v50, %v7646_v19  ;;  %v4604_v8 = vmul.f32 %v4535_v10, %v8840_v57  ;;  %v2843_v28 = vadd.f32 %v2827_v29, %v8841_v39  ;;  %5321 = vset.pattern.permute.xlu1 %v8446_v12  ;;  %5330 = vset.pattern.permute.xlu0 %v8452_v18 }
 0x2df   :  { %v7815_v63 = vadd.f32 %v3831_v48, %v8842_v33  ;;  %v4721_v26 = vrot.slane %v4720_v31, 2  ;;  %v4267_v58 = vrot.slane %v4266_v1, 2  ;;  %v3728_v15 = vadd.f32 %v3727_v6, %v3726_v47  ;;  %4104 = vperm.xlu1 %5321, %v7550_v56   ;;  %3582 = vperm.xlu0 %5330, %v7640_v42   ;;  %v2529_v50 = vpop.permute.xlu0 %2528 }
 0x2e0   :  { %v3274_v23 = vadd.f32 %v3273_v45, %v3272_v46  ;;  %v3263_v37 = vrot.slane %v3141_v43, 4  ;;  %v4731_v7 = vrot.slane %v4604_v8, 4  ;;  %v2875_v19 = vsel %vm2874_vm5, %v2843_v28, %v7695_v16  ;;  %v4065_v46 = vpop.permute.xlu1 %4064  ;;  %v8846_v28 = vld [vmem:[#allocation10_spill] sm:$0xff] }
 0x2e1   :  { %v4722_v39 = vadd.f32 %v4721_v26, %v4720_v31  ;;  %v4268_v57 = vadd.f32 %v4267_v58, %v4266_v1  ;;  %v7825_v34 = vpack.c.bf16 %v8844_v32, %v8843_v54  ;;  %v3830_v22 = vmul.f32 0.6, %v3728_v15  ;;  %v8847_v31 = vld [vmem:[#allocation55_spill] sm:$0xff] }
 0x2e2   :  { %v3366_v29 = vmul.f32 0.6, %v3274_v23  ;;  %v3264_v48 = vadd.f32 %v3263_v37, %v3141_v43  ;;  %v4732_v47 = vadd.f32 %v4731_v7, %v4604_v8  ;;  %v4137_v56 = vmul.f32 %v4065_v46, %v7648_v53  ;;  %v7838_v53 = vpop.f32.mrb[90].mxu1 }
 0x2e3   :  { %v4723_v10 = vrot.slane %v4722_v39, 1  ;;  %v4269_v6 = vrot.slane %v4268_v57, 1  ;;  %v8845_v45 = vunpack.c.l.bf16 %v8797_v4  ;;  %v3846_v16 = vadd.f32 %v3830_v22, %v8846_v28  ;;  %5323 = vset.pattern.permute.xlu1 %v8445_v52  ;;  %5332 = vset.pattern.permute.xlu0 %v8459_v55  ;;  %v7846_v32 = vpop.f32.mrb[91].mxu1 }
 0x2e4   :  { %v7832_v1 = vadd.f32 %v3366_v29, %v8847_v31  ;;  %v3265_v26 = vrot.slane %v3264_v48, 2  ;;  %v4733_v58 = vrot.slane %v4732_v47, 2  ;;  %v4259_v15 = vrot.slane %v4137_v56, 4  ;;  %2573 = vperm.xlu1 %5323, %v7601_v60   ;;  %4578 = vperm.xlu0 %5332, %v7640_v42   ;;  %v4531_v46 = vpop.permute.xlu1 %4530  ;;  %v8851_v31 = vld [vmem:[#allocation108_spill] sm:$0xff] }
 0x2e5   :  { %v2606_v33 = vmul.f32 %v2529_v50, %v8845_v45  ;;  %v4724_v8 = vadd.f32 %v4723_v10, %v4722_v39  ;;  %v4270_v43 = vadd.f32 %v4269_v6, %v4268_v57  ;;  %v3877_v4 = vsel %vm2874_vm5, %v3846_v16, %v7719_v24  ;;  %v3543_v50 = vpop.permute.xlu0 %3542  ;;  %v8848_v45 = vld [vmem:[#allocation81_spill] sm:$0xff] }
 0x2e6   :  { %v3266_v37 = vadd.f32 %v3265_v26, %v3264_v48  ;;  %v4734_v7 = vadd.f32 %v4733_v58, %v4732_v47  ;;  %v7844_v54 = vsel %vm2876_vm6, %v7801_v27, %v2875_v19  ;;  %v4260_v22 = vadd.f32 %v4259_v15, %v4137_v56  ;;  %v8850_v47 = vld [vmem:[#allocation107_spill] sm:$0xff] }
 0x2e7   :  { %v2738_v23 = vrot.slane %v2606_v33, 4  ;;  %v4826_v39 = vmul.f32 0.6, %v4724_v8  ;;  %v4362_v57 = vmul.f32 0.6, %v4270_v43  ;;  %v4603_v28 = vmul.f32 %v4531_v46, %v8848_v45 }
 0x2e8   :  { %v3267_v10 = vrot.slane %v3266_v37, 1  ;;  %v4735_v6 = vrot.slane %v4734_v7, 1  ;;  %v8849_v24 = vunpack.c.l.bf16 %v7613_v14  ;;  %v4261_v19 = vrot.slane %v4260_v22, 2  ;;  %5325 = vset.pattern.permute.xlu1 %v8452_v18  ;;  %5334 = vset.pattern.permute.xlu0 %v8440_v25  ;;  %v2524_v46 = vpop.permute.xlu1 %2523 }
 0x2e9   :  { %v2739_v29 = vadd.f32 %v2738_v23, %v2606_v33  ;;  %v4842_v16 = vadd.f32 %v4826_v39, %v8850_v47  ;;  %v7853_v27 = vadd.f32 %v4362_v57, %v8851_v31  ;;  %v4725_v58 = vrot.slane %v4603_v28, 4  ;;  %3578 = vperm.xlu1 %5325, %v7601_v60   ;;  %3120 = vperm.xlu0 %5334, %v7669_v61   ;;  %v7870_v47 = vpop.f32.mrb[92].mxu1 }
 0x2ea   :  { %v3609_v48 = vmul.f32 %v3543_v50, %v8849_v24  ;;  %v3268_v56 = vadd.f32 %v3267_v10, %v3266_v37  ;;  %v4736_v33 = vadd.f32 %v4735_v6, %v4734_v7  ;;  %v4262_v43 = vadd.f32 %v4261_v19, %v4260_v22  ;;  %v3081_v50 = vpop.permute.xlu0 %3080  ;;  %v8853_v22 = vld [vmem:[#allocation50_spill] sm:$0xff] }
 0x2eb   :  { %v2740_v26 = vrot.slane %v2739_v29, 2  ;;  %v7861_v14 = vsel %vm2874_vm5, %v4842_v16, %v7748_v3  ;;  %v7865_v23 = vsel %vm2876_vm6, %v7815_v63, %v3877_v4  ;;  %v4726_v7 = vadd.f32 %v4725_v58, %v4603_v28  ;;  %v8854_v16 = vld [vmem:[#allocation94_spill] sm:$0xff] }
 0x2ec   :  { %v3741_v8 = vrot.slane %v3609_v48, 4  ;;  %v3365_v39 = vmul.f32 0.6, %v3268_v56  ;;  %v4828_v37 = vmul.f32 0.6, %v4736_v33  ;;  %v4263_v10 = vrot.slane %v4262_v43, 1 }
 0x2ed   :  { %v2741_v15 = vadd.f32 %v2740_v26, %v2739_v29  ;;  %v8852_v45 = vunpack.c.l.bf16 %v8782_v41  ;;  %v3144_v3 = vmul.f32 %v3081_v50, %v7688_v38  ;;  %v4727_v4 = vrot.slane %v4726_v7, 2  ;;  %5327 = vset.pattern.permute.xlu1 %v8459_v55  ;;  %5336 = vset.pattern.permute.xlu0 %v8446_v12 }
 0x2ee   :  { %v3742_v57 = vadd.f32 %v3741_v8, %v3609_v48  ;;  %v3381_v29 = vadd.f32 %v3365_v39, %v8853_v22  ;;  %v7874_v63 = vadd.f32 %v4828_v37, %v8854_v16  ;;  %v4264_v28 = vadd.f32 %v4263_v10, %v4262_v43  ;;  %4574 = vperm.xlu1 %5327, %v7601_v60  }
 0x2ef   :  { %v2742_v6 = vrot.slane %v2741_v15, 1  ;;  %v2605_v24 = vmul.f32 %v2524_v46, %v8852_v45  ;;  %v3281_v41 = vrot.slane %v3144_v3, 4  ;;  %4116 = vperm.xlu0 %5336, %v7669_v61   ;;  %v4728_v26 = vadd.f32 %v4727_v4, %v4726_v7  ;;  %v3539_v46 = vpop.permute.xlu1 %3538  ;;  %v4077_v43 = vpop.permute.xlu0 %4076  ;;  %v8856_v45 = vld [vmem:[#allocation54_spill] sm:$0xff] }
 0x2f0   :  { %v3743_v31 = vrot.slane %v3742_v57, 2  ;;  %v3412_v38 = vsel %vm2876_vm6, %v3381_v29, %v7789_v40  ;;  %v3919_v33 = vrot.slane %v7825_v34, 4  ;;  %v4361_v58 = vmul.f32 0.6, %v4264_v28  ;;  %v8857_v40 = vld [vmem:[#allocation12_spill] sm:$0xff] }
 0x2f1   :  { %v2743_v48 = vadd.f32 %v2742_v6, %v2741_v15  ;;  %v2732_v19 = vrot.slane %v2605_v24, 4  ;;  %v3282_v37 = vadd.f32 %v3281_v41, %v3144_v3  ;;  %v4729_v15 = vrot.slane %v4728_v26, 1 }
 0x2f2   :  { %v3744_v56 = vadd.f32 %v3743_v31, %v3742_v57  ;;  %v8855_v10 = vunpack.c.l.bf16 %v7564_v9  ;;  %v4140_v6 = vmul.f32 %v4077_v43, %v7706_v62  ;;  %v4377_v22 = vadd.f32 %v4361_v58, %v8856_v45  ;;  %5329 = vset.pattern.permute.xlu1 %v8440_v25  ;;  %v8858_v9 = vld [vmem:[#allocation85_spill] sm:$0xff]  ;;  %v7900_v25 = vpop.f32.mrb[93].mxu1 }
 0x2f3   :  { %v2830_v8 = vmul.f32 0.6, %v2743_v48  ;;  %v2733_v39 = vadd.f32 %v2732_v19, %v2605_v24  ;;  %v3283_v29 = vrot.slane %v3282_v37, 2  ;;  %5337 = vset.pattern.permute.xlu0 %v8459_v55  ;;  %v4730_v24 = vadd.f32 %v4729_v15, %v4728_v26  ;;  %3116 = vperm.xlu1 %5329, %v7640_v42   ;;  %v3077_v58 = vpop.permute.xlu1 %3076 }
 0x2f4   :  { %v3745_v50 = vrot.slane %v3744_v56, 1  ;;  %v3608_v60 = vmul.f32 %v3539_v46, %v8855_v10  ;;  %v4277_v4 = vrot.slane %v4140_v6, 4  ;;  %4550 = vperm.xlu0 %5337, %v8858_v9   ;;  %v4408_v62 = vsel %vm2876_vm6, %v4377_v22, %v7808_v0  ;;  %v8861_v10 = vld [vmem:[#allocation112_spill] sm:$0xff] }
 0x2f5   :  { %v7888_v7 = vadd.f32 %v2830_v8, %v8857_v40  ;;  %v2734_v57 = vrot.slane %v2733_v39, 2  ;;  %v3284_v28 = vadd.f32 %v3283_v29, %v3282_v37  ;;  %v7898_v48 = vsel %vm2878_vm7, %v7832_v1, %v3412_v38  ;;  %v4543_v8 = vpop.permute.xlu0 %4542 }
 0x2f6   :  { %v3746_v3 = vadd.f32 %v3745_v50, %v3744_v56  ;;  %v3735_v16 = vrot.slane %v3608_v60, 4  ;;  %v4827_v19 = vmul.f32 0.6, %v4730_v24  ;;  %v4278_v56 = vadd.f32 %v4277_v4, %v4140_v6  ;;  %v8859_v50 = vld [vmem:[#allocation41_spill] sm:$0xff] }
 0x2f7   :  { %v2735_v31 = vadd.f32 %v2734_v57, %v2733_v39  ;;  %v3285_v43 = vrot.slane %v3284_v28, 1  ;;  %v3143_v15 = vmul.f32 %v3077_v58, %v7714_v11  ;;  %v4606_v0 = vmul.f32 %v4543_v8, %v8859_v50  ;;  %v8860_v39 = vld [vmem:[#allocation89_spill] sm:$0xff]  ;;  %5331 = vset.pattern.permute.xlu1 %v8446_v12  ;;  %v4073_v9 = vpop.permute.xlu1 %4072 }
 0x2f8   :  { %v3833_v41 = vmul.f32 0.6, %v3746_v3  ;;  %v3736_v26 = vadd.f32 %v3735_v16, %v3608_v60  ;;  %v4843_v37 = vadd.f32 %v4827_v19, %v8860_v39  ;;  %v4279_v38 = vrot.slane %v4278_v56, 2  ;;  %4112 = vperm.xlu1 %5331, %v7640_v42  }
 0x2f9   :  { %v2736_v46 = vrot.slane %v2735_v31, 1  ;;  %v3286_v60 = vadd.f32 %v3285_v43, %v3284_v28  ;;  %v3275_v6 = vrot.slane %v3143_v15, 4  ;;  %v4743_v40 = vrot.slane %v4606_v0, 4 }
 0x2fa   :  { %v7906_v45 = vadd.f32 %v3833_v41, %v8861_v10  ;;  %v3737_v1 = vrot.slane %v3736_v26, 2  ;;  %v4874_v11 = vsel %vm2876_vm6, %v4843_v37, %v7861_v14  ;;  %v4280_v29 = vadd.f32 %v4279_v38, %v4278_v56  ;;  %v8863_v14 = vld [vmem:[#allocation111_spill] sm:$0xff]  ;;  %v8864_v56 = vld [vmem:[#allocation80_spill] sm:$0xff] }
 0x2fb   :  { %v2737_v22 = vadd.f32 %v2736_v46, %v2735_v31  ;;  %v7914_v24 = vsel %vm2878_vm7, %v7853_v27, %v4408_v62  ;;  %v3368_v16 = vmul.f32 0.6, %v3286_v60  ;;  %v3276_v4 = vadd.f32 %v3275_v6, %v3143_v15  ;;  %v2539_v31 = vpop.permute.xlu0 %2538 }
 0x2fc   :  { %v3738_v57 = vadd.f32 %v3737_v1, %v3736_v26  ;;  %v4744_v12 = vadd.f32 %v4743_v40, %v4606_v0  ;;  %v4281_v19 = vrot.slane %v4280_v29, 1  ;;  %v4139_v41 = vmul.f32 %v4073_v9, %v7735_v17  ;;  %5333 = vset.pattern.permute.xlu1 %v8445_v52  ;;  %v4539_v52 = vpop.permute.xlu1 %4538  ;;  %v8865_v40 = vld [vmem:[#allocation88_spill] sm:$0xff] }
 0x2fd   :  { %v2829_v3 = vmul.f32 0.6, %v2737_v22  ;;  %v8862_v42 = vunpack.c.l.bf16 %v8816_v35  ;;  %v7921_v8 = vadd.f32 %v3368_v16, %v8864_v56  ;;  %v3277_v27 = vrot.slane %v3276_v4, 2  ;;  %2583 = vperm.xlu1 %5333, %v7669_v61   ;;  %v8867_v16 = vld [vmem:[#allocation11_spill] sm:$0xff] }
 0x2fe   :  { %v3739_v28 = vrot.slane %v3738_v57, 1  ;;  %v4745_v62 = vrot.slane %v4744_v12, 2  ;;  %v4282_v43 = vadd.f32 %v4281_v19, %v4280_v29  ;;  %v4271_v15 = vrot.slane %v4139_v41, 4 }
 0x2ff   :  { %v2608_v58 = vmul.f32 %v2539_v31, %v8862_v42  ;;  %v2845_v26 = vadd.f32 %v2829_v3, %v8863_v14  ;;  %v3278_v35 = vadd.f32 %v3277_v27, %v3276_v4  ;;  %v7929_v39 = vsel %vm2878_vm7, %v7874_v63, %v4874_v11  ;;  %v3551_v22 = vpop.permute.xlu0 %3550 }
 0x300   :  { %v3740_v46 = vadd.f32 %v3739_v28, %v3738_v57  ;;  %v4746_v0 = vadd.f32 %v4745_v62, %v4744_v12  ;;  %v4364_v10 = vmul.f32 0.6, %v4282_v43  ;;  %v4272_v1 = vadd.f32 %v4271_v15, %v4139_v41  ;;  %v8868_v12 = vld [vmem:[#allocation90_spill] sm:$0xff] }
 0x301   :  { %v2750_v50 = vrot.slane %v2608_v58, 4  ;;  %v2879_v17 = vsel %vm2878_vm7, %v2845_v26, %v7844_v54  ;;  %v3279_v60 = vrot.slane %v3278_v35, 1  ;;  %v4605_v57 = vmul.f32 %v4539_v52, %v8865_v40  ;;  %v7934_v54 = vpop.f32.mrb[94].mxu1  ;;  %5335 = vset.pattern.permute.xlu1 %v8452_v18  ;;  %v2534_v43 = vpop.permute.xlu1 %2533 }
 0x302   :  { %v3832_v37 = vmul.f32 0.6, %v3740_v46  ;;  %v4747_v6 = vrot.slane %v4746_v0, 1  ;;  %v8866_v29 = vunpack.c.l.bf16 %v7702_v13  ;;  %v7938_v63 = vadd.f32 %v4364_v10, %v8868_v12  ;;  %v7941_v31 = vpop.f32.mrb[95].mxu1  ;;  %3586 = vperm.xlu1 %5335, %v7669_v61  }
 0x303   :  { %v2751_v38 = vadd.f32 %v2750_v50, %v2608_v58  ;;  %v4273_v11 = vrot.slane %v4272_v1, 2  ;;  %v3280_v28 = vadd.f32 %v3279_v60, %v3278_v35  ;;  %v4737_v41 = vrot.slane %v4605_v57, 4  ;;  %v3089_v15 = vpop.permute.xlu0 %3088 }
 0x304   :  { %v3611_v3 = vmul.f32 %v3551_v22, %v8866_v29  ;;  %v3848_v4 = vadd.f32 %v3832_v37, %v8867_v16  ;;  %v4748_v19 = vadd.f32 %v4747_v6, %v4746_v0  ;;  %v7948_v56 = vsel %vm2880_vm8, %v7888_v7, %v2879_v17 }
 0x305   :  { %v2752_v9 = vrot.slane %v2751_v38, 2  ;;  %v4274_v14 = vadd.f32 %v4273_v11, %v4272_v1  ;;  %v3367_v27 = vmul.f32 0.6, %v3280_v28  ;;  %v4738_v62 = vadd.f32 %v4737_v41, %v4605_v57 }
 0x306   :  { %v3753_v42 = vrot.slane %v3611_v3, 4  ;;  %v3879_v58 = vsel %vm2878_vm7, %v3848_v4, %v7865_v23  ;;  %v4830_v18 = vmul.f32 0.6, %v4748_v19  ;;  %v8869_v0 = vunpack.c.l.bf16 %v8804_v59  ;;  %v8870_v23 = vld [vmem:[#allocation58_spill] sm:$0xff]  ;;  %5338 = vset.pattern.permute.xlu1 %v8459_v55  ;;  %v3547_v55 = vpop.permute.xlu1 %3546 }
 0x307   :  { %v2753_v26 = vadd.f32 %v2752_v9, %v2751_v38  ;;  %v4275_v50 = vrot.slane %v4274_v14, 1  ;;  %v3146_v10 = vmul.f32 %v3089_v15, %v7770_v51  ;;  %v3383_v1 = vadd.f32 %v3367_v27, %v8870_v23  ;;  %v8871_v38 = vld [vmem:[#allocation37_spill] sm:$0xff]  ;;  %4582 = vperm.xlu1 %5338, %v7669_v61  }
 0x308   :  { %v3754_v46 = vadd.f32 %v3753_v42, %v3611_v3  ;;  %v2607_v37 = vmul.f32 %v2534_v43, %v8869_v0  ;;  %v7955_v52 = vadd.f32 %v4830_v18, %v8871_v38  ;;  %v4739_v7 = vrot.slane %v4738_v62, 2  ;;  %v4085_v11 = vpop.permute.xlu0 %4084 }
 0x309   :  { %v2754_v35 = vrot.slane %v2753_v26, 1  ;;  %v4276_v22 = vadd.f32 %v4275_v50, %v4274_v14  ;;  %v3293_v40 = vrot.slane %v3146_v10, 4  ;;  %v3414_v59 = vsel %vm2880_vm8, %v3383_v1, %v7898_v48  ;;  %v8873_v48 = vld [vmem:[#allocation7_spill] sm:$0xff]  ;;  %v8874_v14 = vld [vmem:[#allocation56_spill] sm:$0xff] }
 0x30a   :  { %v3755_v17 = vrot.slane %v3754_v46, 2  ;;  %v2744_v6 = vrot.slane %v2607_v37, 4  ;;  %v4740_v57 = vadd.f32 %v4739_v7, %v4738_v62  ;;  %v7963_v29 = vsel %vm2880_vm8, %v7906_v45, %v3879_v58 }
 0x30b   :  { %v2755_v60 = vadd.f32 %v2754_v35, %v2753_v26  ;;  %v4363_v3 = vmul.f32 0.6, %v4276_v22  ;;  %v3294_v12 = vadd.f32 %v3293_v40, %v3146_v10  ;;  %v8872_v19 = vunpack.c.l.bf16 %v7634_v44  ;;  %v3085_v10 = vpop.permute.xlu1 %3084 }
 0x30c   :  { %v3756_v51 = vadd.f32 %v3755_v17, %v3754_v46  ;;  %v2745_v4 = vadd.f32 %v2744_v6, %v2607_v37  ;;  %v4741_v9 = vrot.slane %v4740_v57, 1  ;;  %v4142_v41 = vmul.f32 %v4085_v11, %v7775_v5 }
 0x30d   :  { %v2832_v16 = vmul.f32 0.6, %v2755_v60  ;;  %v3610_v61 = vmul.f32 %v3547_v55, %v8872_v19  ;;  %v4379_v42 = vadd.f32 %v4363_v3, %v8873_v48  ;;  %v3295_v58 = vrot.slane %v3294_v12, 2  ;;  %v2549_v23 = vpop.permute.xlu0 %2548  ;;  %v8876_v60 = vld [vmem:[#allocation93_spill] sm:$0xff] }
 0x30e   :  { %v3757_v28 = vrot.slane %v3756_v51, 1  ;;  %v2746_v45 = vrot.slane %v2745_v4, 2  ;;  %v4742_v27 = vadd.f32 %v4741_v9, %v4740_v57  ;;  %v4289_v46 = vrot.slane %v4142_v41, 4 }
 0x30f   :  { %v7970_v26 = vadd.f32 %v2832_v16, %v8874_v14  ;;  %v3747_v62 = vrot.slane %v3610_v61, 4  ;;  %v4410_v43 = vsel %vm2880_vm8, %v4379_v42, %v7914_v24  ;;  %v3296_v50 = vadd.f32 %v3295_v58, %v3294_v12  ;;  %v8875_v24 = vld [vmem:[#allocation67_spill] sm:$0xff] }
 0x310   :  { %v3758_v18 = vadd.f32 %v3757_v28, %v3756_v51  ;;  %v2747_v15 = vadd.f32 %v2746_v45, %v2745_v4  ;;  %v7976_v44 = vsel %vm2882_vm9, %v7921_v8, %v3414_v59  ;;  %v4829_v5 = vmul.f32 0.6, %v4742_v27  ;;  %v8878_v45 = vld [vmem:[#allocation6_spill] sm:$0xff]  ;;  %v8879_v58 = vld [vmem:[#allocation35_spill] sm:$0xff] }
 0x311   :  { %v3748_v0 = vadd.f32 %v3747_v62, %v3610_v61  ;;  %v4290_v37 = vadd.f32 %v4289_v46, %v4142_v41  ;;  %v3297_v38 = vrot.slane %v3296_v50, 1  ;;  %v3145_v7 = vmul.f32 %v3085_v10, %v7793_v2 }
 0x312   :  { %v3835_v35 = vmul.f32 0.6, %v3758_v18  ;;  %v2748_v1 = vrot.slane %v2747_v15, 1  ;;  %v2610_v17 = vmul.f32 %v2549_v23, %v2418_v21  ;;  %v4845_v22 = vadd.f32 %v4829_v5, %v8875_v24  ;;  %v4081_v19 = vpop.permute.xlu1 %4080  ;;  %v3559_v61 = vpop.permute.xlu0 %3558  ;;  %v8880_v24 = vld [vmem:[#allocation52_spill] sm:$0xff] }
 0x313   :  { %v3749_v8 = vrot.slane %v3748_v0, 2  ;;  %v4291_v40 = vrot.slane %v4290_v37, 2  ;;  %v3298_v57 = vadd.f32 %v3297_v38, %v3296_v50  ;;  %v3287_v51 = vrot.slane %v3145_v7, 4 }
 0x314   :  { %v7983_v6 = vadd.f32 %v3835_v35, %v8876_v60  ;;  %v2749_v59 = vadd.f32 %v2748_v1, %v2747_v15  ;;  %v2762_v3 = vrot.slane %v2610_v17, 4  ;;  %v4876_v16 = vsel %vm2880_vm8, %v4845_v22, %v7929_v39  ;;  %v8881_v60 = vld [vmem:[#allocation95_spill] sm:$0xff] }
 0x315   :  { %v3750_v4 = vadd.f32 %v3749_v8, %v3748_v0  ;;  %v4292_v12 = vadd.f32 %v4291_v40, %v4290_v37  ;;  %v8877_v2 = vrot.slane %v7702_v13, 4  ;;  %v3370_v11 = vmul.f32 0.6, %v3298_v57 }
 0x316   :  { %v2831_v21 = vmul.f32 0.6, %v2749_v59  ;;  %v3288_v9 = vadd.f32 %v3287_v51, %v3145_v7  ;;  %v2763_v28 = vadd.f32 %v2762_v3, %v2610_v17  ;;  %v7991_v42 = vsel %vm2882_vm9, %v7938_v63, %v4410_v43  ;;  %v8883_v59 = vld [vmem:[#allocation99_spill] sm:$0xff] }
 0x317   :  { %v3981_v55 = vunpack.c.l.bf16 %v8877_v2  ;;  %v3751_v41 = vrot.slane %v3750_v4, 1  ;;  %v4293_v48 = vrot.slane %v4292_v12, 1  ;;  %v3386_v27 = vadd.f32 %v3370_v11, %v8879_v58  ;;  %v4547_v1 = vpop.permute.xlu1 %4546  ;;  %v4555_v38 = vpop.permute.xlu0 %4554  ;;  %v8884_v11 = vld [vmem:[#allocation76_spill] sm:$0xff] }
 0x318   :  { %v2847_v39 = vadd.f32 %v2831_v21, %v8878_v45  ;;  %v3289_v13 = vrot.slane %v3288_v9, 2  ;;  %v2764_v18 = vrot.slane %v2763_v28, 2  ;;  %v3453_v50 = vunpack.c.l.bf16 %v7825_v34 }
 0x319   :  { %v4141_v14 = vmul.f32 %v4081_v19, %v3981_v55  ;;  %v3752_v62 = vadd.f32 %v3751_v41, %v3750_v4  ;;  %v4294_v46 = vadd.f32 %v4293_v48, %v4292_v12  ;;  %v8000_v43 = vsel %vm2882_vm9, %v7955_v52, %v4876_v16 }
 0x31a   :  { %v2883_v5 = vsel %vm2882_vm9, %v2847_v39, %v7948_v56  ;;  %v3290_v35 = vadd.f32 %v3289_v13, %v3288_v9  ;;  %v2765_v63 = vadd.f32 %v2764_v18, %v2763_v28  ;;  %v3613_v23 = vmul.f32 %v3559_v61, %v3453_v50  ;;  %v8882_v56 = vld [vmem:[#allocation13_spill] sm:$0xff]  ;;  %v8885_v9 = vld [vmem:[#allocation40_spill] sm:$0xff] }
 0x31b   :  { %v4283_v15 = vrot.slane %v4141_v14, 4  ;;  %v3834_v0 = vmul.f32 0.6, %v3752_v62  ;;  %v4366_v37 = vmul.f32 0.6, %v4294_v46  ;;  %v4607_v22 = vmul.f32 %v4547_v1, %v8880_v24  ;;  %v8886_v62 = vld [vmem:[#allocation98_spill] sm:$0xff] }
 0x31c   :  { %v3291_v7 = vrot.slane %v3290_v35, 1  ;;  %v2766_v17 = vrot.slane %v2765_v63, 1  ;;  %v4609_v8 = vmul.f32 %v4555_v38, %v8881_v60  ;;  %v3765_v3 = vrot.slane %v3613_v23, 4  ;;  %v3097_v45 = vpop.permute.xlu0 %3096  ;;  %v8887_v46 = vld [vmem:[#allocation16_spill] sm:$0xff] }
 0x31d   :  { %v4284_v10 = vadd.f32 %v4283_v15, %v4141_v14  ;;  %v3850_v40 = vadd.f32 %v3834_v0, %v8882_v56  ;;  %v4382_v57 = vadd.f32 %v4366_v37, %v8883_v59  ;;  %v4749_v4 = vrot.slane %v4607_v22, 4  ;;  %v2544_v14 = vpop.permute.xlu1 %2543 }
 0x31e   :  { %v3292_v52 = vadd.f32 %v3291_v7, %v3290_v35  ;;  %v2767_v16 = vadd.f32 %v2766_v17, %v2765_v63  ;;  %v4761_v12 = vrot.slane %v4609_v8, 4  ;;  %v3766_v21 = vadd.f32 %v3765_v3, %v3613_v23  ;;  %v8890_v3 = vld [vmem:[#allocation113_spill] sm:$0xff] }
 0x31f   :  { %v4285_v51 = vrot.slane %v4284_v10, 2  ;;  %v3881_v2 = vsel %vm2882_vm9, %v3850_v40, %v7963_v29  ;;  %v8010_v28 = vpack.c.bf16 %v8885_v9, %v8884_v11  ;;  %v4750_v41 = vadd.f32 %v4749_v4, %v4607_v22 }
 0x320   :  { %v3369_v19 = vmul.f32 0.6, %v3292_v52  ;;  %v2834_v61 = vmul.f32 0.6, %v2767_v16  ;;  %v4762_v48 = vadd.f32 %v4761_v12, %v4609_v8  ;;  %v3767_v58 = vrot.slane %v3766_v21, 2 }
 0x321   :  { %v4286_v55 = vadd.f32 %v4285_v51, %v4284_v10  ;;  %v3920_v13 = vrot.slane %v8010_v28, 4  ;;  %v2417_v18 = vunpack.c.l.bf16 %v8827_v36  ;;  %v4751_v50 = vrot.slane %v4750_v41, 2  ;;  %v8888_v36 = vld [vmem:[#allocation39_spill] sm:$0xff]  ;;  %v3555_v56 = vpop.permute.xlu1 %3554  ;;  %v4093_v40 = vpop.permute.xlu0 %4092 }
 0x322   :  { %v3385_v29 = vadd.f32 %v3369_v19, %v8886_v62  ;;  %v8016_v15 = vadd.f32 %v2834_v61, %v8887_v46  ;;  %v4763_v35 = vrot.slane %v4762_v48, 2  ;;  %v3768_v0 = vadd.f32 %v3767_v58, %v3766_v21 }
 0x323   :  { %v4287_v39 = vrot.slane %v4286_v55, 1  ;;  %v8020_v37 = vsel %vm2884_vm10, %v7970_v26, %v2883_v5  ;;  %v2609_v10 = vmul.f32 %v2544_v14, %v2417_v18  ;;  %v4752_v1 = vadd.f32 %v4751_v50, %v4750_v41 }
 0x324   :  { %v3416_v23 = vsel %vm2884_vm10, %v3385_v29, %v7976_v44  ;;  %v4764_v38 = vadd.f32 %v4763_v35, %v4762_v48  ;;  %v8889_v7 = vrot.slane %v8888_v36, 4  ;;  %v3769_v60 = vrot.slane %v3768_v0, 1  ;;  %v8892_v29 = vld [vmem:[#allocation72_spill] sm:$0xff] }
 0x325   :  { %v4288_v63 = vadd.f32 %v4287_v39, %v4286_v55  ;;  %v3417_v24 = vsel %vm2886_vm11, %v3386_v27, %v3416_v23  ;;  %v2756_v8 = vrot.slane %v2609_v10, 4  ;;  %v4753_v59 = vrot.slane %v4752_v1, 1  ;;  %v8895_v23 = vld [vmem:[#allocation31_spill] sm:$0xff] }
 0x326   :  { %v2988_v17 = vunpack.c.l.bf16 %v8889_v7  ;;  %3427 = vst [vmem:[#allocation3 + $0x8] sm:$0xff] %v3417_v24  ;;  %v4765_v26 = vrot.slane %v4764_v38, 1  ;;  %v3452_v51 = vunpack.c.l.bf16 %v7725_v20  ;;  %v3770_v52 = vadd.f32 %v3769_v60, %v3768_v0  ;;  %v8896_v24 = vld [vmem:[#allocation21_spill] sm:$0xff] }
 0x327   :  { %v4365_v22 = vmul.f32 0.6, %v4288_v63  ;;  %v2757_v16 = vadd.f32 %v2756_v8, %v2609_v10  ;;  %v8031_v4 = vsel %vm2884_vm10, %v7983_v6, %v3881_v2  ;;  %v4754_v27 = vadd.f32 %v4753_v59, %v4752_v1  ;;  %v2559_v39 = vpop.permute.xlu0 %2558  ;;  %v8891_v6 = vld [vmem:[#allocation100_spill] sm:$0xff] }
 0x328   :  { %v3148_v5 = vmul.f32 %v3097_v45, %v2988_v17  ;;  %v4766_v12 = vadd.f32 %v4765_v26, %v4764_v38  ;;  %v3612_v21 = vmul.f32 %v3555_v56, %v3452_v51  ;;  %v3837_v9 = vmul.f32 0.6, %v3770_v52  ;;  %v3093_v45 = vpop.permute.xlu1 %3092 }
 0x329   :  { %v4381_v44 = vadd.f32 %v4365_v22, %v8890_v3  ;;  %v2758_v19 = vrot.slane %v2757_v16, 2  ;;  %v3984_v61 = vunpack.c.l.bf16 %v3920_v13  ;;  %v4831_v41 = vmul.f32 0.6, %v4754_v27 }
 0x32a   :  { %v3305_v55 = vrot.slane %v3148_v5, 4  ;;  %v4833_v48 = vmul.f32 0.6, %v4766_v12  ;;  %v8037_v2 = vadd.f32 %v3837_v9, %v8891_v6  ;;  %v3759_v18 = vrot.slane %v3612_v21, 4 }
 0x32b   :  { %v4412_v11 = vsel %vm2884_vm10, %v4381_v44, %v7991_v42  ;;  %v2759_v58 = vadd.f32 %v2758_v19, %v2757_v16  ;;  %v4144_v62 = vmul.f32 %v4093_v40, %v3984_v61  ;;  %v4847_v46 = vadd.f32 %v4831_v41, %v8892_v29  ;;  %v8893_v42 = vld [vmem:[#allocation32_spill] sm:$0xff] }
 0x32c   :  { %v4413_v20 = vsel %vm2886_vm11, %v4382_v57, %v4412_v11  ;;  %v3306_v14 = vadd.f32 %v3305_v55, %v3148_v5  ;;  %v8041_v50 = vadd.f32 %v4833_v48, %v8893_v42  ;;  %v8894_v57 = vrot.slane %v8839_v30, 4  ;;  %v4089_v40 = vpop.permute.xlu1 %4088  ;;  %v3567_v59 = vpop.permute.xlu0 %3566 }
 0x32d   :  { %4423 = vst [vmem:[#allocation3 + $0x18] sm:$0xff] %v4413_v20  ;;  %v2760_v63 = vrot.slane %v2759_v58, 1  ;;  %v3760_v0 = vadd.f32 %v3759_v18, %v3612_v21  ;;  %v4301_v10 = vrot.slane %v4144_v62, 4  ;;  %v2420_v1 = vunpack.c.l.bf16 %v8895_v23  ;;  %v8897_v21 = vld [vmem:[#allocation92_spill] sm:$0xff]  ;;  %v8898_v18 = vld [vmem:[#allocation63_spill] sm:$0xff] }
 0x32e   :  { %v3307_v13 = vrot.slane %v3306_v14, 2  ;;  %v2987_v35 = vunpack.c.l.bf16 %v8894_v57  ;;  %v8048_v38 = vsel %vm2884_vm10, %v4847_v46, %v8000_v43  ;;  %v8052_v22 = vpack.c.bf16 %v8896_v24, %v7674_v49 }
 0x32f   :  { %v2761_v60 = vadd.f32 %v2760_v63, %v2759_v58  ;;  %v3761_v8 = vrot.slane %v3760_v0, 2  ;;  %v4302_v56 = vadd.f32 %v4301_v10, %v4144_v62  ;;  %v2612_v30 = vmul.f32 %v2559_v39, %v2420_v1 }
 0x330   :  { %v3308_v7 = vadd.f32 %v3307_v13, %v3306_v14  ;;  %v3147_v17 = vmul.f32 %v3093_v45, %v2987_v35  ;;  %v3921_v51 = vrot.slane %v8052_v22, 4  ;;  %v3983_v43 = vunpack.c.l.bf16 %v3919_v33  ;;  %v2554_v34 = vpop.permute.xlu1 %2553 }
 0x331   :  { %v2833_v3 = vmul.f32 0.6, %v2761_v60  ;;  %v3762_v44 = vadd.f32 %v3761_v8, %v3760_v0  ;;  %v4303_v52 = vrot.slane %v4302_v56, 2  ;;  %v2774_v16 = vrot.slane %v2612_v30, 4  ;;  %v4563_v33 = vpop.permute.xlu0 %4562 }
 0x332   :  { %v3309_v26 = vrot.slane %v3308_v7, 1  ;;  %v3299_v5 = vrot.slane %v3147_v17, 4  ;;  %v4143_v12 = vmul.f32 %v4089_v40, %v3983_v43  ;;  %v3455_v55 = vunpack.c.l.bf16 %v8052_v22 }
 0x333   :  { %v2849_v11 = vadd.f32 %v2833_v3, %v8897_v21  ;;  %v3763_v9 = vrot.slane %v3762_v44, 1  ;;  %v4304_v19 = vadd.f32 %v4303_v52, %v4302_v56  ;;  %v2775_v61 = vadd.f32 %v2774_v16, %v2612_v30 }
 0x334   :  { %v3310_v27 = vadd.f32 %v3309_v26, %v3308_v7  ;;  %v3300_v49 = vadd.f32 %v3299_v5, %v3147_v17  ;;  %v4295_v48 = vrot.slane %v4143_v12, 4  ;;  %v3615_v14 = vmul.f32 %v3567_v59, %v3455_v55  ;;  %v8899_v7 = vld [vmem:[#allocation102_spill] sm:$0xff] }
 0x335   :  { %v2887_v45 = vsel %vm2886_vm11, %v2849_v11, %v8020_v37  ;;  %v3764_v39 = vadd.f32 %v3763_v9, %v3762_v44  ;;  %v4305_v6 = vrot.slane %v4304_v19, 1  ;;  %v2776_v58 = vrot.slane %v2775_v61, 2  ;;  %v8900_v37 = vld [vmem:[#allocation86_spill] sm:$0xff]  ;;  %v3563_v30 = vpop.permute.xlu1 %3562  ;;  %v8902_v9 = vld [vmem:[#allocation77_spill] sm:$0xff] }
 0x336   :  { %v3372_v20 = vmul.f32 0.6, %v3310_v27  ;;  %v3301_v41 = vrot.slane %v3300_v49, 2  ;;  %2897 = vst [vmem:[#allocation3] sm:$0xff] %v2887_v45  ;;  %v4296_v46 = vadd.f32 %v4295_v48, %v4143_v12  ;;  %v3777_v42 = vrot.slane %v3615_v14, 4  ;;  %v3105_v40 = vpop.permute.xlu0 %3104 }
 0x337   :  { %v3836_v13 = vmul.f32 0.6, %v3764_v39  ;;  %v4306_v57 = vadd.f32 %v4305_v6, %v4304_v19  ;;  %v2777_v35 = vadd.f32 %v2776_v58, %v2775_v61  ;;  %v2419_v63 = vunpack.c.l.bf16 %v8888_v36  ;;  %v8901_v36 = vld [vmem:[#allocation42_spill] sm:$0xff]  ;;  %v8905_v39 = vld [vmem:[#allocation69_spill] sm:$0xff] }
 0x338   :  { %v3388_v62 = vadd.f32 %v3372_v20, %v8898_v18  ;;  %v3302_v29 = vadd.f32 %v3301_v41, %v3300_v49  ;;  %v4297_v10 = vrot.slane %v4296_v46, 2  ;;  %v3778_v1 = vadd.f32 %v3777_v42, %v3615_v14  ;;  %v8903_v19 = vld [vmem:[#allocation14_spill] sm:$0xff]  ;;  %v8904_v41 = vld [vmem:[#allocation91_spill] sm:$0xff] }
 0x339   :  { %v4611_v17 = vmul.f32 %v4563_v33, %v8899_v7  ;;  %v3852_v24 = vadd.f32 %v3836_v13, %v8900_v37  ;;  %v4368_v60 = vmul.f32 0.6, %v4306_v57  ;;  %v2778_v8 = vrot.slane %v2777_v35, 1 }
 0x33a   :  { %v3303_v0 = vrot.slane %v3302_v29, 1  ;;  %v2611_v56 = vmul.f32 %v2554_v34, %v2419_v63  ;;  %v4298_v26 = vadd.f32 %v4297_v10, %v4296_v46  ;;  %v3779_v5 = vrot.slane %v3778_v1, 2  ;;  %v4559_v33 = vpop.permute.xlu1 %4558  ;;  %v8906_v63 = vld [vmem:[#allocation33_spill] sm:$0xff] }
 0x33b   :  { %v4773_v43 = vrot.slane %v4611_v17, 4  ;;  %v3883_v3 = vsel %vm2886_vm11, %v3852_v24, %v8031_v4  ;;  %v4384_v44 = vadd.f32 %v4368_v60, %v8901_v36  ;;  %v2779_v52 = vadd.f32 %v2778_v8, %v2777_v35  ;;  %v4101_v45 = vpop.permute.xlu0 %4100 }
 0x33c   :  { %v3304_v59 = vadd.f32 %v3303_v0, %v3302_v29  ;;  %v2768_v16 = vrot.slane %v2611_v56, 4  ;;  %3893 = vst [vmem:[#allocation3 + $0x10] sm:$0xff] %v3883_v3  ;;  %v4299_v49 = vrot.slane %v4298_v26, 1  ;;  %v3780_v12 = vadd.f32 %v3779_v5, %v3778_v1  ;;  %v8908_v1 = vld [vmem:[#allocation96_spill] sm:$0xff] }
 0x33d   :  { %v4774_v55 = vadd.f32 %v4773_v43, %v4611_v17  ;;  %v2836_v21 = vmul.f32 0.6, %v2779_v52  ;;  %v8070_v61 = vpack.c.bf16 %v8903_v19, %v8902_v9  ;;  %v3454_v20 = vunpack.c.l.bf16 %v8010_v28  ;;  %v8909_v17 = vld [vmem:[#allocation61_spill] sm:$0xff]  ;;  %v8910_v3 = vld [vmem:[#allocation84_spill] sm:$0xff] }
 0x33e   :  { %v3371_v27 = vmul.f32 0.6, %v3304_v59  ;;  %v2769_v11 = vadd.f32 %v2768_v16, %v2611_v56  ;;  %v4300_v4 = vadd.f32 %v4299_v49, %v4298_v26  ;;  %v3781_v14 = vrot.slane %v3780_v12, 1  ;;  %v8912_v19 = vld [vmem:[#allocation36_spill] sm:$0xff] }
 0x33f   :  { %v4775_v34 = vrot.slane %v4774_v55, 2  ;;  %v8075_v6 = vadd.f32 %v2836_v21, %v8905_v39  ;;  %v3922_v18 = vrot.slane %v8070_v61, 4  ;;  %v3614_v29 = vmul.f32 %v3563_v30, %v3454_v20  ;;  %v3101_v26 = vpop.permute.xlu1 %3100 }
 0x340   :  { %v3387_v48 = vadd.f32 %v3371_v27, %v8904_v41  ;;  %v2770_v58 = vrot.slane %v2769_v11, 2  ;;  %v4367_v42 = vmul.f32 0.6, %v4300_v4  ;;  %v3782_v13 = vadd.f32 %v3781_v14, %v3780_v12  ;;  %v2569_v5 = vpop.permute.xlu0 %2568  ;;  %v8913_v14 = vld [vmem:[#allocation17_spill] sm:$0xff] }
 0x341   :  { %v4776_v28 = vadd.f32 %v4775_v34, %v4774_v55  ;;  %v3771_v35 = vrot.slane %v3614_v29, 4  ;;  %v8907_v0 = vrot.slane %v8906_v63, 4  ;;  %v4610_v7 = vmul.f32 %v4559_v33, %v8908_v1  ;;  %v8916_v1 = vld [vmem:[#allocation87_spill] sm:$0xff] }
 0x342   :  { %v8079_v46 = vsel %vm2874_vm5, %v3388_v62, %v3387_v48  ;;  %v2771_v57 = vadd.f32 %v2770_v58, %v2769_v11  ;;  %v4383_v37 = vadd.f32 %v4367_v42, %v8909_v17  ;;  %v3839_v24 = vmul.f32 0.6, %v3782_v13 }
 0x343   :  { %v2990_v10 = vunpack.c.l.bf16 %v8907_v0  ;;  %v4777_v60 = vrot.slane %v4776_v28, 1  ;;  %v3986_v8 = vunpack.c.l.bf16 %v3922_v18  ;;  %v3772_v30 = vadd.f32 %v3771_v35, %v3614_v29  ;;  %v8914_v18 = vld [vmem:[#allocation83_spill] sm:$0xff] }
 0x344   :  { %v2772_v56 = vrot.slane %v2771_v57, 1  ;;  %v4767_v62 = vrot.slane %v4610_v7, 4  ;;  %v8086_v43 = vsel %vm2874_vm5, %v4384_v44, %v4383_v37  ;;  %v8089_v36 = vadd.f32 %v3839_v24, %v8910_v3  ;;  %v4097_v58 = vpop.permute.xlu1 %4096 }
 0x345   :  { %v3150_v59 = vmul.f32 %v3105_v40, %v2990_v10  ;;  %v4778_v52 = vadd.f32 %v4777_v60, %v4776_v28  ;;  %v4146_v16 = vmul.f32 %v4101_v45, %v3986_v8  ;;  %v3773_v49 = vrot.slane %v3772_v30, 2  ;;  %v8915_v10 = vld [vmem:[#allocation51_spill] sm:$0xff] }
 0x346   :  { %v2773_v27 = vadd.f32 %v2772_v56, %v2771_v57  ;;  %v4768_v55 = vadd.f32 %v4767_v62, %v4610_v7  ;;  %v8911_v9 = vrot.slane %v8895_v23, 4  ;;  %v2422_v20 = vunpack.c.l.bf16 %v8912_v19  ;;  %v3575_v23 = vpop.permute.xlu0 %3574 }
 0x347   :  { %v3317_v12 = vrot.slane %v3150_v59, 4  ;;  %v4835_v21 = vmul.f32 0.6, %v4778_v52  ;;  %v4313_v11 = vrot.slane %v4146_v16, 4  ;;  %v3774_v48 = vadd.f32 %v3773_v49, %v3772_v30 }
 0x348   :  { %v2989_v40 = vunpack.c.l.bf16 %v8911_v9  ;;  %v2835_v41 = vmul.f32 0.6, %v2773_v27  ;;  %v4769_v4 = vrot.slane %v4768_v55, 2  ;;  %v2614_v39 = vmul.f32 %v2569_v5, %v2422_v20 }
 0x349   :  { %v3318_v44 = vadd.f32 %v3317_v12, %v3150_v59  ;;  %v8095_v34 = vadd.f32 %v4835_v21, %v8913_v14  ;;  %v4314_v33 = vadd.f32 %v4313_v11, %v4146_v16  ;;  %v3775_v42 = vrot.slane %v3774_v48, 1  ;;  %v8917_v12 = vld [vmem:[#allocation18_spill] sm:$0xff] }
 0x34a   :  { %v3149_v45 = vmul.f32 %v3101_v26, %v2989_v40  ;;  %v2851_v29 = vadd.f32 %v2835_v41, %v8914_v18  ;;  %v4770_v28 = vadd.f32 %v4769_v4, %v4768_v55  ;;  %v2786_v0 = vrot.slane %v2614_v39, 4  ;;  %v2564_v52 = vpop.permute.xlu1 %2563  ;;  %v4571_v40 = vpop.permute.xlu0 %4570  ;;  %v8918_v4 = vld [vmem:[#allocation101_spill] sm:$0xff] }
 0x34b   :  { %v3319_v13 = vrot.slane %v3318_v44, 2  ;;  %v4315_v57 = vrot.slane %v4314_v33, 2  ;;  %v8100_v7 = vpack.c.bf16 %v8916_v1, %v8915_v10  ;;  %v3776_v37 = vadd.f32 %v3775_v42, %v3774_v48 }
 0x34c   :  { %v3311_v35 = vrot.slane %v3149_v45, 4  ;;  %v2888_v17 = vsel %vm2874_vm5, %v2851_v29, %v8016_v15  ;;  %v4771_v60 = vrot.slane %v4770_v28, 1  ;;  %v2787_v30 = vadd.f32 %v2786_v0, %v2614_v39 }
 0x34d   :  { %v3320_v24 = vadd.f32 %v3319_v13, %v3318_v44  ;;  %v4316_v8 = vadd.f32 %v4315_v57, %v4314_v33  ;;  %v3923_v59 = vrot.slane %v8100_v7, 4  ;;  %v3838_v62 = vmul.f32 0.6, %v3776_v37  ;;  %v8919_v13 = vld [vmem:[#allocation46_spill] sm:$0xff] }
 0x34e   :  { %v3312_v56 = vadd.f32 %v3311_v35, %v3149_v45  ;;  %v4772_v5 = vadd.f32 %v4771_v60, %v4770_v28  ;;  %v3985_v3 = vunpack.c.l.bf16 %v3921_v51  ;;  %v2788_v49 = vrot.slane %v2787_v30, 2  ;;  %v8920_v35 = vld [vmem:[#allocation66_spill] sm:$0xff] }
 0x34f   :  { %v3321_v26 = vrot.slane %v3320_v24, 1  ;;  %v4317_v16 = vrot.slane %v4316_v8, 1  ;;  %v3457_v15 = vunpack.c.l.bf16 %v8100_v7  ;;  %v3854_v55 = vadd.f32 %v3838_v62, %v8917_v12  ;;  %v3571_v42 = vpop.permute.xlu1 %3570  ;;  %v8935_v7 = vld [vmem:[#allocation24_spill] sm:$0xff] }
 0x350   :  { %v3313_v27 = vrot.slane %v3312_v56, 2  ;;  %v4834_v11 = vmul.f32 0.6, %v4772_v5  ;;  %v4145_v9 = vmul.f32 %v4097_v58, %v3985_v3  ;;  %v2789_v48 = vadd.f32 %v2788_v49, %v2787_v30  ;;  %v3113_v30 = vpop.permute.xlu0 %3112 }
 0x351   :  { %v3322_v21 = vadd.f32 %v3321_v26, %v3320_v24  ;;  %v4318_v20 = vadd.f32 %v4317_v16, %v4316_v8  ;;  %v3617_v44 = vmul.f32 %v3575_v23, %v3457_v15  ;;  %v3884_v22 = vsel %vm2874_vm5, %v3854_v55, %v8037_v2  ;;  %v8921_v8 = vld [vmem:[#allocation75_spill] sm:$0xff]  ;;  %v8922_v15 = vld [vmem:[#allocation45_spill] sm:$0xff] }
 0x352   :  { %v3314_v41 = vadd.f32 %v3313_v27, %v3312_v56  ;;  %v4850_v14 = vadd.f32 %v4834_v11, %v8918_v4  ;;  %v4307_v33 = vrot.slane %v4145_v9, 4  ;;  %v2790_v18 = vrot.slane %v2789_v48, 1 }
 0x353   :  { %v3374_v51 = vmul.f32 0.6, %v3322_v21  ;;  %v4370_v45 = vmul.f32 0.6, %v4318_v20  ;;  %v3789_v29 = vrot.slane %v3617_v44, 4  ;;  %v2421_v23 = vunpack.c.l.bf16 %v8906_v63  ;;  %v8924_v20 = vld [vmem:[#allocation26_spill] sm:$0xff] }
 0x354   :  { %v3315_v39 = vrot.slane %v3314_v41, 1  ;;  %v4880_v58 = vsel %vm2874_vm5, %v4850_v14, %v8041_v50  ;;  %v4308_v57 = vadd.f32 %v4307_v33, %v4145_v9  ;;  %v2791_v10 = vadd.f32 %v2790_v18, %v2789_v48  ;;  %v4567_v49 = vpop.permute.xlu1 %4566  ;;  %v4109_v33 = vpop.permute.xlu0 %4108 }
 0x355   :  { %v8113_v28 = vadd.f32 %v3374_v51, %v8919_v13  ;;  %v8119_v2 = vadd.f32 %v4370_v45, %v8920_v35  ;;  %v3790_v1 = vadd.f32 %v3789_v29, %v3617_v44  ;;  %v8123_v24 = vsel %vm2876_vm6, %v8075_v6, %v2888_v17  ;;  %v8923_v17 = vld [vmem:[#allocation49_spill] sm:$0xff] }
 0x356   :  { %v3316_v0 = vadd.f32 %v3315_v39, %v3314_v41  ;;  %v4309_v37 = vrot.slane %v4308_v57, 2  ;;  %v2613_v60 = vmul.f32 %v2564_v52, %v2421_v23  ;;  %v4613_v56 = vmul.f32 %v4571_v40, %v8921_v8  ;;  %v8928_v8 = vld [vmem:[#allocation23_spill] sm:$0xff] }
 0x357   :  { %v2838_v50 = vmul.f32 0.6, %v2791_v10  ;;  %v3791_v26 = vrot.slane %v3790_v1, 2  ;;  %v8128_v63 = vpack.c.bf16 %v7846_v32, %v7838_v53  ;;  %v3456_v27 = vunpack.c.l.bf16 %v8070_v61 }
 0x358   :  { %v3373_v62 = vmul.f32 0.6, %v3316_v0  ;;  %v4310_v5 = vadd.f32 %v4309_v37, %v4308_v57  ;;  %v2780_v3 = vrot.slane %v2613_v60, 4  ;;  %v4785_v16 = vrot.slane %v4613_v56, 4 }
 0x359   :  { %v8133_v52 = vadd.f32 %v2838_v50, %v8923_v17  ;;  %v3792_v12 = vadd.f32 %v3791_v26, %v3790_v1  ;;  %v3924_v55 = vrot.slane %v8128_v63, 4  ;;  %v8138_v53 = vsel %vm2876_vm6, %v8089_v36, %v3884_v22  ;;  %v8926_v22 = vld [vmem:[#allocation103_spill] sm:$0xff]  ;;  %v3109_v29 = vpop.permute.xlu1 %3108 }
 0x35a   :  { %v3389_v6 = vadd.f32 %v3373_v62, %v8922_v15  ;;  %v4311_v21 = vrot.slane %v4310_v5, 1  ;;  %v2781_v11 = vadd.f32 %v2780_v3, %v2613_v60  ;;  %v4786_v9 = vadd.f32 %v4785_v16, %v4613_v56  ;;  %v8927_v1 = vld [vmem:[#allocation115_spill] sm:$0xff] }
 0x35b   :  { %v3793_v61 = vrot.slane %v3792_v12, 1  ;;  %v3616_v40 = vmul.f32 %v3571_v42, %v3456_v27  ;;  %v8925_v41 = vrot.slane %v8924_v20, 4  ;;  %v8146_v14 = vsel %vm2876_vm6, %v8095_v34, %v4880_v58  ;;  %v2579_v27 = vpop.permute.xlu0 %2578 }
 0x35c   :  { %v3419_v32 = vsel %vm2876_vm6, %v3389_v6, %v8079_v46  ;;  %v4312_v44 = vadd.f32 %v4311_v21, %v4310_v5  ;;  %v2782_v51 = vrot.slane %v2781_v11, 2  ;;  %v4787_v4 = vrot.slane %v4786_v9, 2 }
 0x35d   :  { %v2992_v48 = vunpack.c.l.bf16 %v8925_v41  ;;  %v3794_v45 = vadd.f32 %v3793_v61, %v3792_v12  ;;  %v3783_v39 = vrot.slane %v3616_v40, 4  ;;  %v4612_v18 = vmul.f32 %v4567_v49, %v8926_v22 }
 0x35e   :  { %v4369_v46 = vmul.f32 0.6, %v4312_v44  ;;  %v2783_v13 = vadd.f32 %v2782_v51, %v2781_v11  ;;  %v4788_v42 = vadd.f32 %v4787_v4, %v4786_v9  ;;  %v3988_v57 = vunpack.c.l.bf16 %v3924_v55  ;;  %v4105_v49 = vpop.permute.xlu1 %4104  ;;  %v8930_v44 = vld [vmem:[#allocation20_spill] sm:$0xff]  ;;  %v8931_v4 = vld [vmem:[#allocation71_spill] sm:$0xff] }
 0x35f   :  { %v3152_v36 = vmul.f32 %v3113_v30, %v2992_v48  ;;  %v3841_v23 = vmul.f32 0.6, %v3794_v45  ;;  %v3784_v35 = vadd.f32 %v3783_v39, %v3616_v40  ;;  %v4779_v10 = vrot.slane %v4612_v18, 4  ;;  %v8932_v39 = vld [vmem:[#allocation38_spill] sm:$0xff] }
 0x360   :  { %v4385_v37 = vadd.f32 %v4369_v46, %v8927_v1  ;;  %v2784_v60 = vrot.slane %v2783_v13, 1  ;;  %v4789_v34 = vrot.slane %v4788_v42, 1  ;;  %v4148_v58 = vmul.f32 %v4109_v33, %v3988_v57  ;;  %v3583_v57 = vpop.permute.xlu0 %3582 }
 0x361   :  { %v3329_v0 = vrot.slane %v3152_v36, 4  ;;  %v8151_v56 = vadd.f32 %v3841_v23, %v8928_v8  ;;  %v3785_v30 = vrot.slane %v3784_v35, 2  ;;  %v4780_v50 = vadd.f32 %v4779_v10, %v4612_v18 }
 0x362   :  { %v4415_v26 = vsel %vm2876_vm6, %v4385_v37, %v8086_v43  ;;  %v2785_v5 = vadd.f32 %v2784_v60, %v2783_v13  ;;  %v4790_v3 = vadd.f32 %v4789_v34, %v4788_v42  ;;  %v4325_v16 = vrot.slane %v4148_v58, 4 }
 0x363   :  { %v3330_v62 = vadd.f32 %v3329_v0, %v3152_v36  ;;  %v3786_v15 = vadd.f32 %v3785_v30, %v3784_v35  ;;  %v4781_v17 = vrot.slane %v4780_v50, 2  ;;  %v8929_v12 = vrot.slane %v8912_v19, 4  ;;  %v2574_v13 = vpop.permute.xlu1 %2573 }
 0x364   :  { %v2837_v21 = vmul.f32 0.6, %v2785_v5  ;;  %v4837_v11 = vmul.f32 0.6, %v4790_v3  ;;  %v4326_v9 = vadd.f32 %v4325_v16, %v4148_v58  ;;  %v8159_v61 = vsel %vm2878_vm7, %v8113_v28, %v3419_v32  ;;  %v8933_v58 = vld [vmem:[#allocation19_spill] sm:$0xff] }
 0x365   :  { %v3331_v6 = vrot.slane %v3330_v62, 2  ;;  %v2991_v55 = vunpack.c.l.bf16 %v8929_v12  ;;  %v3787_v40 = vrot.slane %v3786_v15, 1  ;;  %v4782_v41 = vadd.f32 %v4781_v17, %v4780_v50 }
 0x366   :  { %v2853_v51 = vadd.f32 %v2837_v21, %v8930_v44  ;;  %v8163_v33 = vadd.f32 %v4837_v11, %v8931_v4  ;;  %v4327_v45 = vrot.slane %v4326_v9, 2  ;;  %v2424_v19 = vunpack.c.l.bf16 %v8932_v39  ;;  %v4579_v11 = vpop.permute.xlu0 %4578  ;;  %v8937_v4 = vld [vmem:[#allocation34_spill] sm:$0xff] }
 0x367   :  { %v3332_v43 = vadd.f32 %v3331_v6, %v3330_v62  ;;  %v3151_v48 = vmul.f32 %v3109_v29, %v2991_v55  ;;  %v3788_v36 = vadd.f32 %v3787_v40, %v3786_v15  ;;  %v4783_v18 = vrot.slane %v4782_v41, 1 }
 0x368   :  { %v2890_v28 = vsel %vm2878_vm7, %v2853_v51, %v8123_v24  ;;  %v4328_v32 = vadd.f32 %v4327_v45, %v4326_v9  ;;  %v2616_v42 = vmul.f32 %v2579_v27, %v2424_v19  ;;  %v8170_v29 = vpack.c.bf16 %v7900_v25, %v7870_v47  ;;  %v3579_v3 = vpop.permute.xlu1 %3578  ;;  %v8934_v27 = vld [vmem:[#allocation116_spill] sm:$0xff]  ;;  %v8936_v9 = vld [vmem:[#allocation70_spill] sm:$0xff] }
 0x369   :  { %v3333_v22 = vrot.slane %v3332_v43, 1  ;;  %v3323_v46 = vrot.slane %v3151_v48, 4  ;;  %v3840_v23 = vmul.f32 0.6, %v3788_v36  ;;  %v4784_v0 = vadd.f32 %v4783_v18, %v4782_v41 }
 0x36a   :  { %v4329_v1 = vrot.slane %v4328_v32, 1  ;;  %v2798_v37 = vrot.slane %v2616_v42, 4  ;;  %v3925_v60 = vrot.slane %v8170_v29, 4  ;;  %v3987_v34 = vunpack.c.l.bf16 %v3923_v59 }
 0x36b   :  { %v3334_v35 = vadd.f32 %v3333_v22, %v3332_v43  ;;  %v3324_v10 = vadd.f32 %v3323_v46, %v3151_v48  ;;  %v3856_v24 = vadd.f32 %v3840_v23, %v8933_v58  ;;  %v4836_v30 = vmul.f32 0.6, %v4784_v0  ;;  %v8939_v58 = vld [vmem:[#allocation29_spill] sm:$0xff] }
 0x36c   :  { %v4330_v50 = vadd.f32 %v4329_v1, %v4328_v32  ;;  %v2799_v47 = vadd.f32 %v2798_v37, %v2616_v42  ;;  %v8178_v25 = vsel %vm2878_vm7, %v8119_v2, %v4415_v26  ;;  %v4147_v5 = vmul.f32 %v4105_v49, %v3987_v34 }
 0x36d   :  { %v3376_v8 = vmul.f32 0.6, %v3334_v35  ;;  %v3325_v62 = vrot.slane %v3324_v10, 2  ;;  %v3886_v16 = vsel %vm2878_vm7, %v3856_v24, %v8138_v53  ;;  %v4852_v59 = vadd.f32 %v4836_v30, %v8935_v7  ;;  %v4575_v19 = vpop.permute.xlu1 %4574 }
 0x36e   :  { %v4372_v17 = vmul.f32 0.6, %v4330_v50  ;;  %v2800_v12 = vrot.slane %v2799_v47, 2  ;;  %v4319_v55 = vrot.slane %v4147_v5, 4  ;;  %v3459_v21 = vunpack.c.l.bf16 %v8170_v29 }
 0x36f   :  { %v8183_v15 = vadd.f32 %v3376_v8, %v8934_v27  ;;  %v3326_v6 = vadd.f32 %v3325_v62, %v3324_v10  ;;  %v4882_v2 = vsel %vm2878_vm7, %v4852_v59, %v8146_v14  ;;  %v2423_v49 = vunpack.c.l.bf16 %v8924_v20 }
 0x370   :  { %v8192_v53 = vsel %vm2880_vm8, %v8133_v52, %v2890_v28  ;;  %v8195_v40 = vadd.f32 %v4372_v17, %v8936_v9  ;;  %v2801_v43 = vadd.f32 %v2800_v12, %v2799_v47  ;;  %v4320_v41 = vadd.f32 %v4319_v55, %v4147_v5  ;;  %v8941_v5 = vld [vmem:[#allocation68_spill] sm:$0xff] }
 0x371   :  { %v3327_v26 = vrot.slane %v3326_v6, 1  ;;  %v3619_v48 = vmul.f32 %v3583_v57, %v3459_v21  ;;  %v2615_v51 = vmul.f32 %v2574_v13, %v2423_v49  ;;  %v4615_v45 = vmul.f32 %v4579_v11, %v8937_v4 }
 0x372   :  { %v8200_v14 = vpack.c.bf16 %v7941_v31, %v7934_v54  ;;  %v2802_v20 = vrot.slane %v2801_v43, 1  ;;  %v4321_v36 = vrot.slane %v4320_v41, 2  ;;  %v3458_v52 = vunpack.c.l.bf16 %v8128_v63  ;;  %v3121_v54 = vpop.permute.xlu0 %3120  ;;  %v8938_v31 = vld [vmem:[#allocation47_spill] sm:$0xff]  ;;  %v3117_v30 = vpop.permute.xlu1 %3116 }
 0x373   :  { %v3328_v44 = vadd.f32 %v3327_v26, %v3326_v6  ;;  %v3801_v22 = vrot.slane %v3619_v48, 4  ;;  %v2792_v46 = vrot.slane %v2615_v51, 4  ;;  %v4797_v28 = vrot.slane %v4615_v45, 4 }
 0x374   :  { %v3926_v32 = vrot.slane %v8200_v14, 4  ;;  %v2803_v42 = vadd.f32 %v2802_v20, %v2801_v43  ;;  %v4322_v57 = vadd.f32 %v4321_v36, %v4320_v41  ;;  %v8206_v23 = vsel %vm2880_vm8, %v8151_v56, %v3886_v16 }
 0x375   :  { %v3375_v18 = vmul.f32 0.6, %v3328_v44  ;;  %v3802_v13 = vadd.f32 %v3801_v22, %v3619_v48  ;;  %v2793_v0 = vadd.f32 %v2792_v46, %v2615_v51  ;;  %v4798_v10 = vadd.f32 %v4797_v28, %v4615_v45  ;;  %v8943_v51 = vld [vmem:[#allocation62_spill] sm:$0xff] }
 0x376   :  { %v3618_v1 = vmul.f32 %v3579_v3, %v3458_v52  ;;  %v2840_v37 = vmul.f32 0.6, %v2803_v42  ;;  %v4323_v63 = vrot.slane %v4322_v57, 1  ;;  %v8940_v24 = vrot.slane %v8939_v58, 4  ;;  %v4117_v49 = vpop.permute.xlu0 %4116 }
 0x377   :  { %v3391_v35 = vadd.f32 %v3375_v18, %v8938_v31  ;;  %v3803_v34 = vrot.slane %v3802_v13, 2  ;;  %v2794_v50 = vrot.slane %v2793_v0, 2  ;;  %v4799_v47 = vrot.slane %v4798_v10, 2  ;;  %v4113_v44 = vpop.permute.xlu1 %4112 }
 0x378   :  { %v2994_v8 = vunpack.c.l.bf16 %v8940_v24  ;;  %v3795_v56 = vrot.slane %v3618_v1, 4  ;;  %v8214_v16 = vadd.f32 %v2840_v37, %v8941_v5  ;;  %v4324_v27 = vadd.f32 %v4323_v63, %v4322_v57 }
 0x379   :  { %v3421_v62 = vsel %vm2880_vm8, %v3391_v35, %v8159_v61  ;;  %v3804_v7 = vadd.f32 %v3803_v34, %v3802_v13  ;;  %v2795_v3 = vadd.f32 %v2794_v50, %v2793_v0  ;;  %v4800_v6 = vadd.f32 %v4799_v47, %v4798_v10  ;;  %v8942_v61 = vld [vmem:[#allocation109_spill] sm:$0xff]  ;;  %v8946_v34 = vld [vmem:[#allocation60_spill] sm:$0xff] }
 0x37a   :  { %v3154_v59 = vmul.f32 %v3121_v54, %v2994_v8  ;;  %v3796_v17 = vadd.f32 %v3795_v56, %v3618_v1  ;;  %v8218_v12 = vsel %vm2880_vm8, %v8163_v33, %v4882_v2  ;;  %v4371_v55 = vmul.f32 0.6, %v4324_v27  ;;  %v8944_v54 = vld [vmem:[#allocation59_spill] sm:$0xff]  ;;  %v4551_v37 = vpop.permute.xlu0 %4550 }
 0x37b   :  { %v3805_v21 = vrot.slane %v3804_v7, 1  ;;  %v4614_v26 = vmul.f32 %v4575_v19, %v8942_v61  ;;  %v2796_v9 = vrot.slane %v2795_v3, 1  ;;  %v4801_v43 = vrot.slane %v4800_v6, 1  ;;  %v8947_v8 = vld [vmem:[#allocation15_spill] sm:$0xff] }
 0x37c   :  { %v3341_v11 = vrot.slane %v3154_v59, 4  ;;  %v3797_v41 = vrot.slane %v3796_v17, 2  ;;  %v3990_v48 = vunpack.c.l.bf16 %v3926_v32  ;;  %v4387_v4 = vadd.f32 %v4371_v55, %v8943_v51  ;;  %v2584_v63 = vpop.permute.xlu1 %2583 }
 0x37d   :  { %v3806_v45 = vadd.f32 %v3805_v21, %v3804_v7  ;;  %v4791_v36 = vrot.slane %v4614_v26, 4  ;;  %v2797_v22 = vadd.f32 %v2796_v9, %v2795_v3  ;;  %v4802_v52 = vadd.f32 %v4801_v43, %v4800_v6  ;;  %v8948_v6 = vld [vmem:[#allocation57_spill] sm:$0xff] }
 0x37e   :  { %v3342_v20 = vadd.f32 %v3341_v11, %v3154_v59  ;;  %v3798_v33 = vadd.f32 %v3797_v41, %v3796_v17  ;;  %v4150_v2 = vmul.f32 %v4117_v49, %v3990_v48  ;;  %v4417_v18 = vsel %vm2880_vm8, %v4387_v4, %v8178_v25 }
 0x37f   :  { %v3843_v46 = vmul.f32 0.6, %v3806_v45  ;;  %v4792_v28 = vadd.f32 %v4791_v36, %v4614_v26  ;;  %v2839_v42 = vmul.f32 0.6, %v2797_v22  ;;  %v4839_v57 = vmul.f32 0.6, %v4802_v52 }
 0x380   :  { %v3343_v19 = vrot.slane %v3342_v20, 2  ;;  %v3799_v13 = vrot.slane %v3798_v33, 1  ;;  %v4337_v32 = vrot.slane %v4150_v2, 4  ;;  %v8945_v10 = vrot.slane %v8932_v39, 4  ;;  %v8949_v26 = vld [vmem:[#allocation27_spill] sm:$0xff] }
 0x381   :  { %v3859_v31 = vadd.f32 %v3843_v46, %v8944_v54  ;;  %v4793_v0 = vrot.slane %v4792_v28, 2  ;;  %v2855_v24 = vadd.f32 %v2839_v42, %v8946_v34  ;;  %v4855_v25 = vadd.f32 %v4839_v57, %v8947_v8 }
 0x382   :  { %v3344_v35 = vadd.f32 %v3343_v19, %v3342_v20  ;;  %v2993_v1 = vunpack.c.l.bf16 %v8945_v10  ;;  %v3800_v50 = vadd.f32 %v3799_v13, %v3798_v33  ;;  %v4338_v47 = vadd.f32 %v4337_v32, %v4150_v2  ;;  %v8952_v10 = vld [vmem:[#allocation74_spill] sm:$0xff] }
 0x383   :  { %v4794_v5 = vadd.f32 %v4793_v0, %v4792_v28  ;;  %v8231_v27 = vsel %vm2882_vm9, %v8183_v15, %v3421_v62  ;;  %v2892_v59 = vsel %vm2882_vm9, %v2855_v24, %v8192_v53  ;;  %v4608_v17 = vmul.f32 %v4551_v37, %v8948_v6 }
 0x384   :  { %v3345_v56 = vrot.slane %v3344_v35, 1  ;;  %v3153_v7 = vmul.f32 %v3117_v30, %v2993_v1  ;;  %v3842_v39 = vmul.f32 0.6, %v3800_v50  ;;  %v4339_v3 = vrot.slane %v4338_v47, 2  ;;  %v3587_v30 = vpop.permute.xlu1 %3586  ;;  %v8953_v50 = vld [vmem:[#allocation97_spill] sm:$0xff] }
 0x385   :  { %v4795_v21 = vrot.slane %v4794_v5, 1  ;;  %v3989_v61 = vunpack.c.l.bf16 %v3925_v60  ;;  %v4755_v43 = vrot.slane %v4608_v17, 4  ;;  %v8241_v15 = vsel %vm2882_vm9, %v8195_v40, %v4417_v18  ;;  %v8950_v60 = vld [vmem:[#allocation48_spill] sm:$0xff] }
 0x386   :  { %v3346_v55 = vadd.f32 %v3345_v56, %v3344_v35  ;;  %v3335_v11 = vrot.slane %v3153_v7, 4  ;;  %v3858_v49 = vadd.f32 %v3842_v39, %v8949_v26  ;;  %v4340_v9 = vadd.f32 %v4339_v3, %v4338_v47 }
 0x387   :  { %v4796_v62 = vadd.f32 %v4795_v21, %v4794_v5  ;;  %v4149_v48 = vmul.f32 %v4113_v44, %v3989_v61  ;;  %v4756_v45 = vadd.f32 %v4755_v43, %v4608_v17  ;;  %v2425_v29 = vunpack.c.l.bf16 %v8939_v58  ;;  %v8951_v44 = vld [vmem:[#allocation114_spill] sm:$0xff]  ;;  %v8955_v5 = vld [vmem:[#allocation73_spill] sm:$0xff] }
 0x388   :  { %v3378_v53 = vmul.f32 0.6, %v3346_v55  ;;  %v3336_v41 = vadd.f32 %v3335_v11, %v3153_v7  ;;  %v3888_v51 = vsel %vm2882_vm9, %v3858_v49, %v8206_v23  ;;  %v4341_v4 = vrot.slane %v4340_v9, 1  ;;  %v4583_v32 = vpop.permute.xlu1 %4582  ;;  %v8957_v21 = vld [vmem:[#allocation30_spill] sm:$0xff] }
 0x389   :  { %v4838_v36 = vmul.f32 0.6, %v4796_v62  ;;  %v4331_v52 = vrot.slane %v4149_v48, 4  ;;  %v4757_v40 = vrot.slane %v4756_v45, 2  ;;  %v8249_v2 = vsel %vm2884_vm10, %v8214_v16, %v2892_v59 }
 0x38a   :  { %v3394_v20 = vadd.f32 %v3378_v53, %v8950_v60  ;;  %v3337_v22 = vrot.slane %v3336_v41, 2  ;;  %v4342_v33 = vadd.f32 %v4341_v4, %v4340_v9  ;;  %v2617_v18 = vmul.f32 %v2584_v63, %v2425_v29  ;;  %v8959_v9 = vld [vmem:[#allocation28_spill] sm:$0xff] }
 0x38b   :  { %v4854_v46 = vadd.f32 %v4838_v36, %v8951_v44  ;;  %v4332_v23 = vadd.f32 %v4331_v52, %v4149_v48  ;;  %v3460_v28 = vunpack.c.l.bf16 %v8200_v14  ;;  %v4758_v58 = vadd.f32 %v4757_v40, %v4756_v45 }
 0x38c   :  { %v3338_v19 = vadd.f32 %v3337_v22, %v3336_v41  ;;  %v4374_v42 = vmul.f32 0.6, %v4342_v33  ;;  %v2804_v57 = vrot.slane %v2617_v18, 4  ;;  %v8254_v13 = vsel %vm2884_vm10, %v3859_v31, %v3888_v51  ;;  %v8954_v31 = vld [vmem:[#allocation43_spill] sm:$0xff]  ;;  %v8960_v51 = vld [vmem:[#allocation44_spill] sm:$0xff] }
 0x38d   :  { %v4884_v54 = vsel %vm2882_vm9, %v4854_v46, %v8218_v12  ;;  %v4333_v16 = vrot.slane %v4332_v23, 2  ;;  %v3620_v0 = vmul.f32 %v3587_v30, %v3460_v28  ;;  %v4759_v37 = vrot.slane %v4758_v58, 1 }
 0x38e   :  { %v3339_v35 = vrot.slane %v3338_v19, 1  ;;  %v4390_v1 = vadd.f32 %v4374_v42, %v8952_v10  ;;  %v2805_v63 = vadd.f32 %v2804_v57, %v2617_v18  ;;  %v4885_v34 = vsel %vm2884_vm10, %v4855_v25, %v4884_v54  ;;  %v8958_v25 = vld [vmem:[#allocation8_spill] sm:$0xff] }
 0x38f   :  { %v4334_v24 = vadd.f32 %v4333_v16, %v4332_v23  ;;  %v3807_v8 = vrot.slane %v3620_v0, 4  ;;  %v4616_v47 = vmul.f32 %v4583_v32, %v8953_v50  ;;  %v2712_v56 = vrot.slane %v8954_v31, 1 }
 0x390   :  { %v3340_v14 = vadd.f32 %v3339_v35, %v3338_v19  ;;  %v8956_v7 = vrot.slane %v8955_v5, 2  ;;  %v4760_v59 = vadd.f32 %v4759_v37, %v4758_v58  ;;  %v2806_v39 = vrot.slane %v2805_v63, 2 }
 0x391   :  { %v4335_v6 = vrot.slane %v4334_v24, 1  ;;  %v3808_v17 = vadd.f32 %v3807_v8, %v3620_v0  ;;  %v4803_v55 = vrot.slane %v4616_v47, 4  ;;  %v4357_v11 = vmul.f32 0.4, %v8957_v21 }
 0x392   :  { %v4710_v12 = vadd.f32 %v8956_v7, %v8955_v5  ;;  %v3377_v3 = vmul.f32 0.6, %v3340_v14  ;;  %v3715_v61 = vrot.slane %v8958_v25, 1  ;;  %v4832_v26 = vmul.f32 0.6, %v4760_v59 }
 0x393   :  { %v2807_v49 = vadd.f32 %v2806_v39, %v2805_v63  ;;  %v4336_v30 = vadd.f32 %v4335_v6, %v4334_v24  ;;  %v3809_v53 = vrot.slane %v3808_v17, 2  ;;  %v4804_v62 = vadd.f32 %v4803_v55, %v4616_v47 }
 0x394   :  { %v3393_v43 = vadd.f32 %v3377_v3, %v8959_v9  ;;  %v2713_v41 = vadd.f32 %v2712_v56, %v8954_v31  ;;  %v4711_v48 = vrot.slane %v4710_v12, 1  ;;  %v4848_v4 = vadd.f32 %v4832_v26, %v8960_v51 }
 0x395   :  { %v2808_v45 = vrot.slane %v2807_v49, 1  ;;  %v4373_v60 = vmul.f32 0.6, %v4336_v30  ;;  %v3810_v36 = vadd.f32 %v3809_v53, %v3808_v17  ;;  %v4805_v22 = vrot.slane %v4804_v62, 2 }
 0x396   :  { %v3423_v29 = vsel %vm2884_vm10, %v3393_v43, %v8231_v27  ;;  %v4879_v33 = vsel %vm2886_vm11, %v4848_v4, %v8048_v38  ;;  %v3716_v18 = vadd.f32 %v3715_v61, %v8958_v25  ;;  %v2825_v23 = vmul.f32 0.4, %v2713_v41 }
 0x397   :  { %v3424_v52 = vsel %vm2886_vm11, %v3394_v20, %v3423_v29  ;;  %v2809_v40 = vadd.f32 %v2808_v45, %v2807_v49  ;;  %4889 = vst [vmem:[#allocation3 + $0x20] sm:$0xff] %v4879_v33  ;;  %v4389_v44 = vadd.f32 %v4373_v60, %v4357_v11  ;;  %v3811_v46 = vrot.slane %v3810_v36, 1 }
 0x398   :  { %3428 = vst [vmem:[#allocation3 + $0x30] sm:$0xff] %v3424_v52  ;;  %v4806_v19 = vadd.f32 %v4805_v22, %v4804_v62  ;;  %v4712_v42 = vadd.f32 %v4711_v48, %v4710_v12  ;;  %v3828_v38 = vmul.f32 0.4, %v3716_v18 }
 0x399   :  { %v2841_v28 = vmul.f32 0.6, %v2809_v40  ;;  %v4419_v27 = vsel %vm2884_vm10, %v4389_v44, %v8241_v15  ;;  %v3812_v58 = vadd.f32 %v3811_v46, %v3810_v36 }
 0x39a   :  { %v4807_v57 = vrot.slane %v4806_v19, 1  ;;  %v4420_v20 = vsel %vm2886_vm11, %v4390_v1, %v4419_v27  ;;  %v4824_v0 = vmul.f32 0.4, %v4712_v42 }
 0x39b   :  { %v2857_v32 = vadd.f32 %v2841_v28, %v2825_v23  ;;  %4424 = vst [vmem:[#allocation3 + $0x40] sm:$0xff] %v4420_v20  ;;  %v3844_v54 = vmul.f32 0.6, %v3812_v58 }
 0x39c   :  { %v4808_v35 = vadd.f32 %v4807_v57, %v4806_v19 }
 0x39d   :  { %v2894_v16 = vsel %vm2886_vm11, %v2857_v32, %v8249_v2  ;;  %v3860_v10 = vadd.f32 %v3844_v54, %v3828_v38 }
 0x39e   :  { %2898 = vst [vmem:[#allocation3 + $0x28] sm:$0xff] %v2894_v16  ;;  %v4840_v37 = vmul.f32 0.6, %v4808_v35 }
 0x39f   :  { %v3890_v15 = vsel %vm2886_vm11, %v3860_v10, %v8254_v13 }
 0x3a0   :  { %v4856_v63 = vadd.f32 %v4840_v37, %v4824_v0  ;;  %3894 = vst [vmem:[#allocation3 + $0x38] sm:$0xff] %v3890_v15 }
 0x3a2   :  { %v4886_v1 = vsel %vm2886_vm11, %v4856_v63, %v4885_v34 }
 0x3a3   :  { %4890 = vst [vmem:[#allocation3 + $0x48] sm:$0xff] %v4886_v1 }
 0x3a4   :  { %5502 = shalt.err (!%p5499_p4)
}
 0x3a5   :  { %s5503_s10 = scalar_lea.hbm %s8300_s4, 1280 }
 0x3a6   :  { %p5504_p5 = scmp.ne.s32.totalorder %s8300_s4, %s5503_s10  ;;  %p5507_p6 = scmp.lt.u32.totalorder %s5503_s10, %s8300_s4 }
 0x3a8   :  { %p5509_p7 = pnand %p5507_p6, %p5504_p5 }
 0x3aa   :  { %5512 = shalt.err (!%p5509_p7)
}
 0x3ab   :  { %s5521_s15 = smov 640   ;;  %s5522_s16 = smov 40  }
 0x3ac   :  { %4902 = dma.vmem_to_hbm [thread:$0]  %s4897_s6, 1280, %s8300_s4, [#allocation4], %s5521_s15, %s5521_s15, %s5522_s16  }
 0x3ad   :  { %5513 = dma.done.wait [#allocation4], 1280  }
 0x3ae   :  { %5514 = vsyncadd [#allocation4], 4294966016 }
 0x3af   :  { %4906 = vsyncpa [#allocation4], 1 }

</bundles_post_ra>
